<compile_context>
chip_gen: v5e
topology: v5e:2x2
jax: 0.10.0
libtpu: 0.0.40
codegen_flags: <defaults>
</compile_context>

<pallas_src>
import math

import jax
import jax.numpy as jnp
from jax.experimental import pallas as pl
from jax.experimental.pallas import tpu as pltpu


# ----------------------------- Pallas kernel ------------------------------ #
def _diffusion_loss_kernel(
    x_ref,       # VMEM (R,  HWT) bf16   packed clean images (TB batches x C chans rows)
    noise_ref,   # VMEM (R,  HWT) bf16   packed gaussian noise
    coef_a_ref,  # VMEM (NB, R, 1) f32   resident: sqrt_alphas_cumprod[t] per row
    coef_b_ref,  # VMEM (NB, R, 1) f32   resident: sqrt_one_minus_alphas_cumprod[t]
    temb_ref,    # VMEM (NB, RH, 1) f32  resident: gathered time embedding per row
    w1_ref,      # VMEM (RH, R) bf16     resident: block-diag 1x1-conv weight
    b1_ref,      # VMEM (RH, 1) f32      resident
    w2_ref,      # VMEM (R, RH) bf16     resident: block-diag 1x1-conv weight
    b2_ref,      # VMEM (R, 1) f32       resident
    out_ref,     # VMEM (1, HWT) f32     lane-dense partial sum of squared error
):
    i = pl.program_id(0)  # batch-tile index (first axis of the resident tables)

    x = x_ref[...].astype(jnp.float32)
    n = noise_ref[...].astype(jnp.float32)

    ca = coef_a_ref[i]  # (R, 1)
    cb = coef_b_ref[i]  # (R, 1)

    # perturb_x: sqrt(acp_t) * x + sqrt(1 - acp_t) * noise   (f32 VPU math)
    xp = ca * x + cb * n

    # noise-estimator model: 1x1 conv -> +temb -> SiLU -> 1x1 conv
    # block-diagonal weights mix channels independently for each packed batch row
    h = jnp.dot(w1_ref[...], xp.astype(jnp.bfloat16),
                preferred_element_type=jnp.float32)
    h = h + b1_ref[...] + temb_ref[i]
    h = h * jax.nn.sigmoid(h)
    est = jnp.dot(w2_ref[...], h.astype(jnp.bfloat16),
                  preferred_element_type=jnp.float32) + b2_ref[...]

    # squared error reduced over sublanes only -> lane-dense (1, HWT) partial.
    # Final cross-lane sum + mean happen in the wrapper (keeps grid "parallel").
    diff = est - n
    out_ref[...] = jnp.sum(diff * diff, axis=0, keepdims=True)


# ------------------------------ JAX wrapper ------------------------------- #
class GaussianDiffusionPallas:
    def __init__(self, img_size, img_channels, num_timesteps, hidden, key,
                 loss_type="l2", batch_tile=8, hw_tile_max=2048):
        if loss_type != "l2":
            raise ValueError("only l2 loss implemented")
        self.img_size = img_size
        self.img_channels = img_channels
        self.num_timesteps = num_timesteps
        self.hidden = hidden
        self.batch_tile = batch_tile
        self.hw_tile_max = hw_tile_max

        # diffusion schedule buffers (same math as the PyTorch module)
        betas = jnp.linspace(1e-4, 2e-2, num_timesteps, dtype=jnp.float32)
        alphas = 1.0 - betas
        alphas_cumprod = jnp.cumprod(alphas)
        self.sqrt_alphas_cumprod = jnp.sqrt(alphas_cumprod)
        self.sqrt_one_minus_alphas_cumprod = jnp.sqrt(1.0 - alphas_cumprod)

        # deterministic synthetic noise-estimator parameters (f32 masters)
        k1, k2, k3 = jax.random.split(key, 3)
        c, hid, t = img_channels, hidden, num_timesteps
        self.w1 = jax.random.normal(k1, (hid, c), jnp.float32) * 0.2
        self.b1 = jnp.zeros((hid, 1), jnp.float32)
        self.temb = jax.random.normal(k2, (t, hid), jnp.float32) * 0.2
        self.w2 = jax.random.normal(k3, (c, hid), jnp.float32) * 0.2
        self.b2 = jnp.zeros((c, 1), jnp.float32)

    def forward(self, x, key, y=None):
        """x: (B, C, H, W) float32 (NCHW, matching the PyTorch module)."""
        b, c, h, w = x.shape
        if h != self.img_size[0]:
            raise ValueError("image height does not match diffusion parameters")
        if w != self.img_size[1]:
            raise ValueError("image width does not match diffusion parameters")
        hw = h * w
        hid = self.hidden

        # --- tiling decisions ------------------------------------------------
        tb = math.gcd(b, self.batch_tile)   # batch elements packed per grid step
        nb = b // tb
        r = tb * c                          # sublane rows per packed tile
        rh = tb * hid

        if hw <= self.hw_tile_max:
            hw_tile = hw
        else:
            cands = [tt for tt in range(128, self.hw_tile_max + 1, 128)
                     if hw % tt == 0]
            hw_tile = max(cands) if cands else hw
        nhw = hw // hw_tile

        # --- randomness (matches forward_ref) --------------------------------
        kt, kn = jax.random.split(key)
        t = jax.random.randint(kt, (b,), 0, self.num_timesteps)
        noise = jax.random.normal(kn, x.shape, jnp.float32)

        # --- pack batch onto sublanes; stream images/noise as bf16 -----------
        x_p = x.reshape(b, c, hw).reshape(nb, r, hw).astype(jnp.bfloat16)
        n_p = noise.reshape(b, c, hw).reshape(nb, r, hw).astype(jnp.bfloat16)

        # per-row "extract" gathers (done here, consumed as resident VMEM tables)
        ca_rows = jnp.repeat(self.sqrt_alphas_cumprod[t][:, None], c,
                             axis=1).reshape(nb, r, 1)
        cb_rows = jnp.repeat(self.sqrt_one_minus_alphas_cumprod[t][:, None], c,
                             axis=1).reshape(nb, r, 1)
        temb_rows = self.temb[t].reshape(nb, rh, 1)

        # block-diagonal weights so TB packed batch elements share one matmul
        eye = jnp.eye(tb, dtype=jnp.float32)
        w1_big = jnp.kron(eye, self.w1).astype(jnp.bfloat16)   # (rh, r)
        w2_big = jnp.kron(eye, self.w2).astype(jnp.bfloat16)   # (r, rh)
        b1_big = jnp.tile(self.b1, (tb, 1))                    # (rh, 1)
        b2_big = jnp.tile(self.b2, (tb, 1))                    # (r, 1)

        partials = pl.pallas_call(
            _diffusion_loss_kernel,
            out_shape=jax.ShapeDtypeStruct((nb, 1, hw), jnp.float32),
            grid=(nb, nhw),
            in_specs=[
                pl.BlockSpec((None, r, hw_tile), lambda i, j: (i, 0, j)),
                pl.BlockSpec((None, r, hw_tile), lambda i, j: (i, 0, j)),
                pl.BlockSpec((nb, r, 1), lambda i, j: (0, 0, 0)),
                pl.BlockSpec((nb, r, 1), lambda i, j: (0, 0, 0)),
                pl.BlockSpec((nb, rh, 1), lambda i, j: (0, 0, 0)),
                pl.BlockSpec((rh, r), lambda i, j: (0, 0)),
                pl.BlockSpec((rh, 1), lambda i, j: (0, 0)),
                pl.BlockSpec((r, rh), lambda i, j: (0, 0)),
                pl.BlockSpec((r, 1), lambda i, j: (0, 0)),
            ],
            out_specs=pl.BlockSpec((None, 1, hw_tile), lambda i, j: (i, 0, j)),
            compiler_params=pltpu.CompilerParams(
                dimension_semantics=("parallel", "parallel")),
        )(x_p, n_p, ca_rows, cb_rows, temb_rows, w1_big, b1_big, w2_big, b2_big)

        return jnp.sum(partials) / float(b * c * hw)

    # pure-JAX reference (mirrors the kernel's bf16 input / matmul numerics)
    def forward_ref(self, x, key):
        b, c, h, w = x.shape
        hw = h * w
        kt, kn = jax.random.split(key)
        t = jax.random.randint(kt, (b,), 0, self.num_timesteps)
        noise = jax.random.normal(kn, x.shape, jnp.float32)

        xb = x.astype(jnp.bfloat16).astype(jnp.float32).reshape(b, c, hw)
        nb_ = noise.astype(jnp.bfloat16).astype(jnp.float32).reshape(b, c, hw)

        ca = self.sqrt_alphas_cumprod[t][:, None, None]
        cb = self.sqrt_one_minus_alphas_cumprod[t][:, None, None]
        xp = ca * xb + cb * nb_

        w1b = self.w1.astype(jnp.bfloat16)
        w2b = self.w2.astype(jnp.bfloat16)
        hcur = jnp.einsum("oc,bcp->bop", w1b, xp.astype(jnp.bfloat16),
                          preferred_element_type=jnp.float32)
        hcur = hcur + self.b1[None] + self.temb[t][:, :, None]
        hcur = hcur * jax.nn.sigmoid(hcur)
        est = jnp.einsum("oc,bcp->bop", w2b, hcur.astype(jnp.bfloat16),
                         preferred_element_type=jnp.float32) + self.b2[None]
        return jnp.mean((est - nb_) ** 2)


# --------------------------------- main ----------------------------------- #
if __name__ == "__main__":
    key = jax.random.PRNGKey(0)
    k_param, k_x, k_fwd = jax.random.split(key, 3)

    B, C, H, W = 16, 3, 16, 16
    model = GaussianDiffusionPallas(
        img_size=(H, W), img_channels=C, num_timesteps=8, hidden=32,
        key=k_param)

    x = jax.random.normal(k_x, (B, C, H, W), jnp.float32)

    loss = jax.block_until_ready(model.forward(x, k_fwd))
    loss_ref = jax.block_until_ready(model.forward_ref(x, k_fwd))
    assert jnp.allclose(loss, loss_ref, rtol=1e-4, atol=1e-5), (loss, loss_ref)

    print("KERNEL_OK")
</pallas_src>

<mosaic_0001>
module attributes {stable_mosaic.version = 11 : i64} {
  func.func @_diffusion_loss_kernel(%arg0: i32, %arg1: i32, %arg2: memref<1x24x256xbf16, #tpu.memory_space<vmem>>, %arg3: memref<1x24x256xbf16, #tpu.memory_space<vmem>>, %arg4: memref<2x24x1xf32, #tpu.memory_space<vmem>>, %arg5: memref<2x24x1xf32, #tpu.memory_space<vmem>>, %arg6: memref<2x256x1xf32, #tpu.memory_space<vmem>>, %arg7: memref<256x24xbf16, #tpu.memory_space<vmem>>, %arg8: memref<256x1xf32, #tpu.memory_space<vmem>>, %arg9: memref<24x256xbf16, #tpu.memory_space<vmem>>, %arg10: memref<24x1xf32, #tpu.memory_space<vmem>>, %arg11: memref<1x1x256xf32, #tpu.memory_space<vmem>>) attributes {dimension_semantics = [#tpu.dimension_semantics<parallel>, #tpu.dimension_semantics<parallel>], iteration_bounds = array<i64: 2, 1>, scalar_prefetch = 0 : i64, scratch_operands = 0 : i64, tpu.core_type = #tpu.core_type<tc>, window_params = [{transform_indices = @transform_0, window_bounds = array<i64: 1, 24, 256>}, {transform_indices = @transform_1, window_bounds = array<i64: 1, 24, 256>}, {pipeline_mode = #tpu.pipeline_mode<synchronous>, transform_indices = @transform_2, window_bounds = array<i64: 2, 24, 1>}, {pipeline_mode = #tpu.pipeline_mode<synchronous>, transform_indices = @transform_3, window_bounds = array<i64: 2, 24, 1>}, {pipeline_mode = #tpu.pipeline_mode<synchronous>, transform_indices = @transform_4, window_bounds = array<i64: 2, 256, 1>}, {pipeline_mode = #tpu.pipeline_mode<synchronous>, transform_indices = @transform_5, window_bounds = array<i64: 256, 24>}, {pipeline_mode = #tpu.pipeline_mode<synchronous>, transform_indices = @transform_6, window_bounds = array<i64: 256, 1>}, {pipeline_mode = #tpu.pipeline_mode<synchronous>, transform_indices = @transform_7, window_bounds = array<i64: 24, 256>}, {pipeline_mode = #tpu.pipeline_mode<synchronous>, transform_indices = @transform_8, window_bounds = array<i64: 24, 1>}, {transform_indices = @transform_9, window_bounds = array<i64: 1, 1, 256>}]} {
    %c0 = arith.constant 0 : index
    %c0_0 = arith.constant 0 : index
    %c0_1 = arith.constant 0 : index
    %0 = vector.load %arg2[%c0, %c0_0, %c0_1] : memref<1x24x256xbf16, #tpu.memory_space<vmem>>, vector<1x24x256xbf16>
    %1 = vector.shape_cast %0 : vector<1x24x256xbf16> to vector<24x256xbf16>
    %2 = arith.extf %1 : vector<24x256xbf16> to vector<24x256xf32>
    %c0_2 = arith.constant 0 : index
    %c0_3 = arith.constant 0 : index
    %c0_4 = arith.constant 0 : index
    %3 = vector.load %arg3[%c0_2, %c0_3, %c0_4] : memref<1x24x256xbf16, #tpu.memory_space<vmem>>, vector<1x24x256xbf16>
    %4 = vector.shape_cast %3 : vector<1x24x256xbf16> to vector<24x256xbf16>
    %5 = arith.extf %4 : vector<24x256xbf16> to vector<24x256xf32>
    %6 = arith.index_cast %arg0 : i32 to index
    %c0_5 = arith.constant 0 : index
    %c0_6 = arith.constant 0 : index
    %7 = vector.load %arg4[%6, %c0_5, %c0_6] : memref<2x24x1xf32, #tpu.memory_space<vmem>>, vector<1x24x1xf32>
    %8 = vector.shape_cast %7 : vector<1x24x1xf32> to vector<24x1xf32>
    %9 = arith.index_cast %arg0 : i32 to index
    %c0_7 = arith.constant 0 : index
    %c0_8 = arith.constant 0 : index
    %10 = vector.load %arg5[%9, %c0_7, %c0_8] : memref<2x24x1xf32, #tpu.memory_space<vmem>>, vector<1x24x1xf32>
    %11 = vector.shape_cast %10 : vector<1x24x1xf32> to vector<24x1xf32>
    %12 = vector.broadcast %8 : vector<24x1xf32> to vector<24x256xf32>
    %13 = arith.mulf %12, %2 : vector<24x256xf32>
    %14 = vector.broadcast %11 : vector<24x1xf32> to vector<24x256xf32>
    %15 = arith.mulf %14, %5 : vector<24x256xf32>
    %16 = arith.addf %13, %15 : vector<24x256xf32>
    %c0_9 = arith.constant 0 : index
    %c0_10 = arith.constant 0 : index
    %17 = vector.load %arg7[%c0_9, %c0_10] : memref<256x24xbf16, #tpu.memory_space<vmem>>, vector<256x24xbf16>
    %18 = arith.truncf %16 : vector<24x256xf32> to vector<24x256xbf16>
    %cst = arith.constant dense<0.000000e+00> : vector<256x256xf32>
    %19 = tpu.matmul %17, %18, %cst {dimension_numbers = #tpu.dot_dimension_numbers<[1], [0], [0], [1], [0, 0, 1, 1], [], []>} : vector<256x24xbf16>, vector<24x256xbf16>, vector<256x256xf32> -> vector<256x256xf32>
    %c0_11 = arith.constant 0 : index
    %c0_12 = arith.constant 0 : index
    %20 = vector.load %arg8[%c0_11, %c0_12] : memref<256x1xf32, #tpu.memory_space<vmem>>, vector<256x1xf32>
    %21 = vector.broadcast %20 : vector<256x1xf32> to vector<256x256xf32>
    %22 = arith.addf %19, %21 : vector<256x256xf32>
    %23 = arith.index_cast %arg0 : i32 to index
    %c0_13 = arith.constant 0 : index
    %c0_14 = arith.constant 0 : index
    %24 = vector.load %arg6[%23, %c0_13, %c0_14] : memref<2x256x1xf32, #tpu.memory_space<vmem>>, vector<1x256x1xf32>
    %25 = vector.shape_cast %24 : vector<1x256x1xf32> to vector<256x1xf32>
    %26 = vector.broadcast %25 : vector<256x1xf32> to vector<256x256xf32>
    %27 = arith.addf %22, %26 : vector<256x256xf32>
    %28 = arith.negf %27 : vector<256x256xf32>
    %29 = math.exp %28 : vector<256x256xf32>
    %cst_15 = arith.constant 1.000000e+00 : f32
    %30 = vector.broadcast %cst_15 : f32 to vector<256x256xf32>
    %31 = arith.addf %30, %29 : vector<256x256xf32>
    %32 = arith.divf %30, %31 : vector<256x256xf32>
    %33 = arith.mulf %27, %32 : vector<256x256xf32>
    %c0_16 = arith.constant 0 : index
    %c0_17 = arith.constant 0 : index
    %34 = vector.load %arg9[%c0_16, %c0_17] : memref<24x256xbf16, #tpu.memory_space<vmem>>, vector<24x256xbf16>
    %35 = arith.truncf %33 : vector<256x256xf32> to vector<256x256xbf16>
    %cst_18 = arith.constant dense<0.000000e+00> : vector<24x256xf32>
    %36 = tpu.matmul %34, %35, %cst_18 {dimension_numbers = #tpu.dot_dimension_numbers<[1], [0], [0], [1], [0, 0, 1, 1], [], []>} : vector<24x256xbf16>, vector<256x256xbf16>, vector<24x256xf32> -> vector<24x256xf32>
    %c0_19 = arith.constant 0 : index
    %c0_20 = arith.constant 0 : index
    %37 = vector.load %arg10[%c0_19, %c0_20] : memref<24x1xf32, #tpu.memory_space<vmem>>, vector<24x1xf32>
    %38 = vector.broadcast %37 : vector<24x1xf32> to vector<24x256xf32>
    %39 = arith.addf %36, %38 : vector<24x256xf32>
    %40 = arith.subf %39, %5 : vector<24x256xf32>
    %41 = arith.mulf %40, %40 : vector<24x256xf32>
    %cst_21 = arith.constant dense<0.000000e+00> : vector<256xf32>
    %42 = vector.multi_reduction <add>, %41, %cst_21 [0] : vector<24x256xf32> to vector<256xf32>
    %43 = vector.shape_cast %42 : vector<256xf32> to vector<1x256xf32>
    %c0_22 = arith.constant 0 : index
    %c0_23 = arith.constant 0 : index
    %c0_24 = arith.constant 0 : index
    %44 = vector.load %arg11[%c0_22, %c0_23, %c0_24] : memref<1x1x256xf32, #tpu.memory_space<vmem>>, vector<1x1x256xf32>
    %45 = vector.shape_cast %44 : vector<1x1x256xf32> to vector<1x256xf32>
    %46 = vector.shape_cast %43 : vector<1x256xf32> to vector<1x1x256xf32>
    tpu.vector_store %arg11[%c0_22, %c0_23, %c0_24], %46 {strides = array<i32>} : memref<1x1x256xf32, #tpu.memory_space<vmem>>, vector<1x1x256xf32>,
    return
  }
  func.func @transform_0(%arg0: i32, %arg1: i32) -> (i32, i32, i32) {
    %c0_i32 = arith.constant 0 : i32
    %c0_i32_0 = arith.constant 0 : i32
    return %arg0, %c0_i32, %arg1 : i32, i32, i32
  }
  func.func @transform_1(%arg0: i32, %arg1: i32) -> (i32, i32, i32) {
    %c0_i32 = arith.constant 0 : i32
    %c0_i32_0 = arith.constant 0 : i32
    return %arg0, %c0_i32, %arg1 : i32, i32, i32
  }
  func.func @transform_2(%arg0: i32, %arg1: i32) -> (i32, i32, i32) {
    %c0_i32 = arith.constant 0 : i32
    %c0_i32_0 = arith.constant 0 : i32
    %c0_i32_1 = arith.constant 0 : i32
    %c0_i32_2 = arith.constant 0 : i32
    return %c0_i32, %c0_i32_0, %c0_i32_1 : i32, i32, i32
  }
  func.func @transform_3(%arg0: i32, %arg1: i32) -> (i32, i32, i32) {
    %c0_i32 = arith.constant 0 : i32
    %c0_i32_0 = arith.constant 0 : i32
    %c0_i32_1 = arith.constant 0 : i32
    %c0_i32_2 = arith.constant 0 : i32
    return %c0_i32, %c0_i32_0, %c0_i32_1 : i32, i32, i32
  }
  func.func @transform_4(%arg0: i32, %arg1: i32) -> (i32, i32, i32) {
    %c0_i32 = arith.constant 0 : i32
    %c0_i32_0 = arith.constant 0 : i32
    %c0_i32_1 = arith.constant 0 : i32
    %c0_i32_2 = arith.constant 0 : i32
    return %c0_i32, %c0_i32_0, %c0_i32_1 : i32, i32, i32
  }
  func.func @transform_5(%arg0: i32, %arg1: i32) -> (i32, i32) {
    %c0_i32 = arith.constant 0 : i32
    %c0_i32_0 = arith.constant 0 : i32
    %c0_i32_1 = arith.constant 0 : i32
    return %c0_i32, %c0_i32_0 : i32, i32
  }
  func.func @transform_6(%arg0: i32, %arg1: i32) -> (i32, i32) {
    %c0_i32 = arith.constant 0 : i32
    %c0_i32_0 = arith.constant 0 : i32
    %c0_i32_1 = arith.constant 0 : i32
    return %c0_i32, %c0_i32_0 : i32, i32
  }
  func.func @transform_7(%arg0: i32, %arg1: i32) -> (i32, i32) {
    %c0_i32 = arith.constant 0 : i32
    %c0_i32_0 = arith.constant 0 : i32
    %c0_i32_1 = arith.constant 0 : i32
    return %c0_i32, %c0_i32_0 : i32, i32
  }
  func.func @transform_8(%arg0: i32, %arg1: i32) -> (i32, i32) {
    %c0_i32 = arith.constant 0 : i32
    %c0_i32_0 = arith.constant 0 : i32
    %c0_i32_1 = arith.constant 0 : i32
    return %c0_i32, %c0_i32_0 : i32, i32
  }
  func.func @transform_9(%arg0: i32, %arg1: i32) -> (i32, i32, i32) {
    %c0_i32 = arith.constant 0 : i32
    %c0_i32_0 = arith.constant 0 : i32
    return %arg0, %c0_i32, %arg1 : i32, i32, i32
  }
}

</mosaic_0001>

<bundles_post_ra>
// kernel: tpu_custom_call.1
= control target key start
LH: loop header
LB: loop body
LE: loop exit
PB: predicated region body
PF: predicated region fallthrough
CT: control target
= control target key end

     0   :  { %14 = vsyncpa [#allocation3], 0  ;;  %s6025_s0 = inlined_call_operand.vmem [shape: bf16[2,24,256], index: 0, kind: input, shape index: {}]   ;;  %s6026_s1 = inlined_call_operand.vmem [shape: bf16[2,24,256], index: 1, kind: input, shape index: {}]   ;;  %s6027_s2 = inlined_call_operand.vmem [shape: f32[2,24,1], index: 2, kind: input, shape index: {}]   ;;  %s6028_s3 = inlined_call_operand.vmem [shape: f32[2,24,1], index: 3, kind: input, shape index: {}]   ;;  %s6029_s4 = inlined_call_operand.vmem [shape: f32[2,256,1], index: 4, kind: input, shape index: {}]   ;;  %s6030_s5 = inlined_call_operand.vmem [shape: bf16[256,24], index: 5, kind: input, shape index: {}]   ;;  %s6031_s6 = inlined_call_operand.vmem [shape: f32[256,1], index: 6, kind: input, shape index: {}]   ;;  %s6032_s7 = inlined_call_operand.vmem [shape: bf16[24,256], index: 7, kind: input, shape index: {}]   ;;  %s6033_s8 = inlined_call_operand.vmem [shape: f32[24,1], index: 8, kind: input, shape index: {}]   ;;  %s6034_s9 = inlined_call_operand.hbm [shape: f32[2,1,256], index: 9, kind: output, shape index: {}]  }
   0x1   :  { %16 = vsyncpa [#allocation3 + $0x1], 0  ;;  %s3502_s30 = smov 0   ;;  %s3504_s10 = smov 0  }
   0x2   :  { %s3506_s11 = smov 0   ;;  %s3508_s12 = smov 0  }
   0x3   :  { %s3510_s13 = smov 0   ;;  %s3512_s14 = smov 0  }
   0x4 LB: > { %s2852_s15 = sadd.s32 4294967295, %s3449_s14   ;;  %s2853_s16 = sadd.s32 4294967294, %s3449_s14   ;;  %s3449_s14 = sphi %s3512_s14, %s22_s14   ;;  %s3445_s13 = sphi %s3510_s13, %s6574_s13   ;;  %s3441_s12 = sphi %s3508_s12, %s6573_s12   ;;  %s3437_s11 = sphi %s3506_s11, %s6572_s11   ;;  %s3433_s10 = sphi %s3504_s10, %s6571_s10   ;;  %s3429_s30 = sphi %s3502_s30, %s6570_s30  }
   0x5   : > { %s34_s17 = sadd.s32 1, %s3445_s13  ;;  %s246_s18 = sadd.s32 1, %s3437_s11 }
   0x6   : > { %p36_p0 = scmp.ge.s32.totalorder %s34_s17, 2  ;;  %p256_p1 = scmp.ne.s32.totalorder %s3437_s11, %s3433_s10 }
   0x7   : > { %p257_p2 = scmp.eq.s32.totalorder %s2852_s15, 1  ;;  %p262_p3 = scmp.ne.s32.totalorder %s3433_s10, %s3429_s30 }
   0x8   : > { %s6576_s17 = smov (%p36_p0, %s34_s17), 0  ;;  %p263_p5 = scmp.eq.s32.totalorder %s2853_s16, 1 }
   0x9   : > { %p3542_p4 = por %p257_p2, %p256_p1  ;;  %s241_s20 = ssub.s32 %s3445_s13, %s6576_s17 }
   0xa   : > { %p2856_p6 = scmp.ge.s32.totalorder %s3449_s14, 1  ;;  %p244_p7 = scmp.eq.s32.totalorder %s241_s20, 0 }
   0xb   : > { %p3549_p8 = por %p263_p5, %p262_p3  ;;  %p328_p9 = scmp.lt.s32.totalorder %s3449_s14, 3 }
   0xc   : > { %s3555_s22 = scalar_select %p244_p7, %s3437_s11, %s246_s18  }
   0xd   : > { %p329_p10 = pnand %p2856_p6, %p328_p9 }
   0xf   : > { %332 = sbr.rel (%p329_p10) target bundleno = 817 (0x331), region = 56 }
  0x14   : > { %s417_s23 = smul.u32 24, %s3441_s12  ;;  %v3451_v0 = vmov 0   ;;  %v512_v7 = vld [vmem:[%s6031_s6 + $0x10] sm:$0xff]  ;;  %v510_v8 = vld [vmem:[%s6031_s6] sm:$0xff]  ;;  %v511_v9 = vld [vmem:[%s6031_s6 + $0x8] sm:$0xff]  ;;  %s2956_s20 = sshll.u32 %s3441_s12, 8 }
  0x15   : > { %3114 = vset.pattern.permute.xlu2 %v3451_v0  ;;  %3113 = vset.pattern.permute.xlu1 %v3451_v0  ;;  %v515_v10 = vld [vmem:[%s6031_s6 + $0x28] sm:$0xff]  ;;  %v513_v11 = vld [vmem:[%s6031_s6 + $0x18] sm:$0xff]  ;;  %v514_v12 = vld [vmem:[%s6031_s6 + $0x20] sm:$0xff]  ;;  %s3622_s25 = scalar_lea.vmem %s6029_s4, %s2956_s20  ;;  %p378_p11 = scmp.lt.s32.totalorder %s3441_s12, 1  ;;  %vm831_vm0 = vcmask 1043456   ;;  %vm782_vm1 = vcmask 195584  }
  0x16   : > { %3112 = vset.pattern.permute.xlu0 %v3451_v0  ;;  %s422_s26 = scalar_lea.vmem %s6028_s3, %s417_s23  ;;  %s418_s29 = scalar_lea.vmem %s6027_s2, %s417_s23  ;;  %v518_v13 = vld [vmem:[%s6031_s6 + $0x40] sm:$0xff]  ;;  %v516_v14 = vld [vmem:[%s6031_s6 + $0x30] sm:$0xff]  ;;  %v517_v15 = vld [vmem:[%s6031_s6 + $0x38] sm:$0xff] }
  0x17   : > { %v423_v1 = vld [vmem:[%s422_s26] sm:$0xff]  ;;  %v421_v2 = vld [vmem:[%s418_s29 + $0x10] sm:$0xff]  ;;  %v424_v4 = vld [vmem:[%s422_s26 + $0x8] sm:$0xff]  ;;  %s379_s28 = scalar_select %p378_p11, %s3441_s12, 1 }
  0x18   : > { %v419_v3 = vld [vmem:[%s418_s29] sm:$0xff]  ;;  %449 = vperm.xlu2 %3114, %v423_v1   ;;  %438 = vperm.xlu0 %3112, %v421_v2   ;;  %v425_v5 = vld [vmem:[%s422_s26 + $0x10] sm:$0xff]  ;;  %v420_v6 = vld [vmem:[%s418_s29 + $0x8] sm:$0xff]  ;;  %s374_s27 = sand.u32 1, %s3433_s10   ;;  %s3030_s15 = sshll.u32 %s3441_s12, 1 }
  0x19   : > { %428 = vperm.xlu1 %3113, %v419_v3   ;;  %v521_v16 = vld [vmem:[%s6031_s6 + $0x58] sm:$0xff]  ;;  %v519_v17 = vld [vmem:[%s6031_s6 + $0x48] sm:$0xff]  ;;  %v520_v18 = vld [vmem:[%s6031_s6 + $0x50] sm:$0xff]  ;;  %s3055_s29 = smul.u32 24, %s379_s28  ;;  %s2857_s28 = sshll.u32 %s374_s27, 1 }
  0x1a   : > { %v524_v19 = vld [vmem:[%s6031_s6 + $0x70] sm:$0xff]  ;;  %v522_v20 = vld [vmem:[%s6031_s6 + $0x60] sm:$0xff]  ;;  %v523_v21 = vld [vmem:[%s6031_s6 + $0x68] sm:$0xff]  ;;  %s376_s20 = scalar_lea.vmem [#allocation2], %s2857_s28  ;;  %s2736_s12 = scalar_lea.sflag [#allocation3], %s374_s27 }
  0x1b   : > { %v541_v22 = vld [vmem:[%s6031_s6 + $0xf8] sm:$0xff]  ;;  %v540_v24 = vld [vmem:[%s6031_s6 + $0xf0] sm:$0xff]  ;;  %v539_v28 = vld [vmem:[%s6031_s6 + $0xe8] sm:$0xff]  ;;  %s385_s18 = scalar_lea.vmem %s6025_s0, %s3055_s29  ;;  %s395_s24 = scalar_lea.vmem %s6026_s1, %s3055_s29 }
  0x1c   : > { %v525_v23 = vld [vmem:[%s6031_s6 + $0x78] sm:$0xff]  ;;  %v1048_v25 = vld [vmem:[%s3622_s25 + $0xf0] sm:$0xff]  ;;  %v538_v30 = vld [vmem:[%s6031_s6 + $0xe0] sm:$0xff]  ;;  %s3391_s29 = scalar_lea.hbm %s6034_s9, 4 }
  0x1d   : > { %v1032_v26 = vld [vmem:[%s3622_s25 + $0x70] sm:$0xff]  ;;  %v1033_v27 = vld [vmem:[%s3622_s25 + $0x78] sm:$0xff]  ;;  %v1046_v31 = vld [vmem:[%s3622_s25 + $0xe0] sm:$0xff] }
  0x1e   : > { %v1049_v29 = vld [vmem:[%s3622_s25 + $0xf8] sm:$0xff]  ;;  %v1030_v32 = vld [vmem:[%s3622_s25 + $0x60] sm:$0xff]  ;;  %v1031_v33 = vld [vmem:[%s3622_s25 + $0x68] sm:$0xff] }
  0x1f   : > { %v537_v34 = vld [vmem:[%s6031_s6 + $0xd8] sm:$0xff]  ;;  %v1047_v35 = vld [vmem:[%s3622_s25 + $0xe8] sm:$0xff]  ;;  %v536_v36 = vld [vmem:[%s6031_s6 + $0xd0] sm:$0xff] }
  0x20   : > { %454 = vperm.xlu2 %3114, %v424_v4   ;;  %459 = vperm.xlu0 %3112, %v425_v5   ;;  %v1044_v37 = vld [vmem:[%s3622_s25 + $0xd0] sm:$0xff]  ;;  %v1029_v39 = vld [vmem:[%s3622_s25 + $0x58] sm:$0xff]  ;;  %v535_v40 = vld [vmem:[%s6031_s6 + $0xc8] sm:$0xff] }
  0x21   : > { %433 = vperm.xlu1 %3113, %v420_v6   ;;  %v1028_v38 = vld [vmem:[%s3622_s25 + $0x50] sm:$0xff]  ;;  %v1045_v41 = vld [vmem:[%s3622_s25 + $0xd8] sm:$0xff]  ;;  %v534_v42 = vld [vmem:[%s6031_s6 + $0xc0] sm:$0xff] }
  0x22   : > { %v1042_v44 = vld [vmem:[%s3622_s25 + $0xc0] sm:$0xff]  ;;  %v1027_v46 = vld [vmem:[%s3622_s25 + $0x48] sm:$0xff]  ;;  %v401_v49 = vld [vmem:[%s385_s18 + $0x10] sm:$0xff] }
  0x23   : > { %v1026_v45 = vld [vmem:[%s3622_s25 + $0x40] sm:$0xff]  ;;  %v3665_v50 = vld [vmem:[%s395_s24 + $0x10] sm:$0xff]  ;;  %v533_v52 = vld [vmem:[%s6031_s6 + $0xb8] sm:$0xff]  ;;  %v406_v58 = vunpack.c.l.bf16 %v401_v49  ;;  %v407_v59 = vunpack.c.h.bf16 %v401_v49 }
  0x24   : > { %6179 = vst [vmem:[#allocation5_spill] sm:$0xff] %v3665_v50  ;;  %v1043_v53 = vld [vmem:[%s3622_s25 + $0xc8] sm:$0xff]  ;;  %v3671_v55 = vld [vmem:[%s395_s24] sm:$0xff]  ;;  %v532_v56 = vld [vmem:[%s6031_s6 + $0xb0] sm:$0xff]  ;;  %v6038_v61 = vunpack.c.l.bf16 %v3665_v50  ;;  %v6035_v62 = vunpack.c.h.bf16 %v3665_v50 }
  0x25   : > { %v400_v54 = vld [vmem:[%s385_s18 + $0x8] sm:$0xff]  ;;  %6180 = vst [vmem:[#allocation6_spill] sm:$0xff] %v3671_v55  ;;  %v399_v60 = vld [vmem:[%s385_s18] sm:$0xff]  ;;  %v6039_v0 = vunpack.c.l.bf16 %v3671_v55  ;;  %v6036_v1 = vunpack.c.h.bf16 %v3671_v55  ;;  %s2748_s18 = scalar_lea.hbm %s6034_s9, %s3030_s15 }
  0x26   : > { %v3676_v57 = vld [vmem:[%s395_s24 + $0x8] sm:$0xff]  ;;  %v404_v63 = vunpack.c.l.bf16 %v400_v54  ;;  %v405_v2 = vunpack.c.h.bf16 %v400_v54  ;;  %v402_v5 = vunpack.c.l.bf16 %v399_v60  ;;  %v403_v6 = vunpack.c.h.bf16 %v399_v60  ;;  %v1022_v49 = vld [vmem:[%s3622_s25 + $0x20] sm:$0xff]  ;;  %v528_v60 = vld [vmem:[%s6031_s6 + $0x90] sm:$0xff]  ;;  %s2752_s23 = sshll.u32 %s2748_s18, 4  ;;  %s2753_s23 = int_to_ptr.hbm [resolvable:$true] %s2752_s23 }
  0x27   : > { %6181 = vst [vmem:[#allocation7_spill] sm:$0xff] %v3676_v57  ;;  %v6040_v3 = vunpack.c.l.bf16 %v3676_v57  ;;  %v6037_v4 = vunpack.c.h.bf16 %v3676_v57  ;;  %s3385_s24 = sshra.s32 %s2753_s23, 4  ;;  %s3386_s24 = int_to_ptr.hbm [resolvable:$true] %s3385_s24 }
  0x28   : > { %554 = vperm.xlu2 %3114, %v512_v7   ;;  %544 = vperm.xlu0 %3112, %v510_v8   ;;  %s3387_s26 = scalar_lea.hbm %s3386_s24, 2  ;;  %p3392_p1 = scmp.lt.s32.totalorder %s3386_s24, %s6034_s9 }
  0x29   : > { %549 = vperm.xlu1 %3113, %v511_v9   ;;  %p3388_p12 = scmp.ne.s32.totalorder %s3386_s24, %s3387_s26  ;;  %p3393_p2 = scmp.lt.s32.totalorder %s3391_s29, %s3387_s26 }
  0x2b   : > { %p3389_p13 = pnand %p3388_p12, %p3542_p4  ;;  %p3394_p3 = por %p3393_p2, %p3392_p1 }
  0x2d   : > { %p3390_p0 = pneg %p3389_p13 }
  0x2f   : > { %p3395_p5 = pnand %p3394_p3, %p3390_p0 }
  0x30   : > { %569 = vperm.xlu2 %3114, %v515_v10   ;;  %559 = vperm.xlu0 %3112, %v513_v11  }
  0x31   : > { %564 = vperm.xlu1 %3113, %v514_v12  }
  0x38   : > { %584 = vperm.xlu2 %3114, %v518_v13   ;;  %574 = vperm.xlu0 %3112, %v516_v14  }
  0x39   : > { %579 = vperm.xlu1 %3113, %v517_v15  }
  0x40   : > { %599 = vperm.xlu2 %3114, %v521_v16   ;;  %589 = vperm.xlu0 %3112, %v519_v17   ;;  %v1040_v16 = vld [vmem:[%s3622_s25 + $0xb0] sm:$0xff] }
  0x41   : > { %594 = vperm.xlu1 %3113, %v520_v18   ;;  %v1024_v17 = vld [vmem:[%s3622_s25 + $0x30] sm:$0xff] }
  0x48   : > { %614 = vperm.xlu2 %3114, %v524_v19   ;;  %604 = vperm.xlu0 %3112, %v522_v20  }
  0x49   : > { %609 = vperm.xlu1 %3113, %v523_v21  }
  0x50   : > { %699 = vperm.xlu2 %3114, %v541_v22   ;;  %619 = vperm.xlu0 %3112, %v525_v23   ;;  %v1025_v23 = vld [vmem:[%s3622_s25 + $0x38] sm:$0xff] }
  0x51   : > { %694 = vperm.xlu1 %3113, %v540_v24  }
  0x58   : > { %1202 = vperm.xlu2 %3114, %v1048_v25   ;;  %1122 = vperm.xlu0 %3112, %v1032_v26  }
  0x59   : > { %1127 = vperm.xlu1 %3113, %v1033_v27  }
  0x60   : > { %689 = vperm.xlu2 %3114, %v539_v28   ;;  %1207 = vperm.xlu0 %3112, %v1049_v29  }
  0x61   : > { %684 = vperm.xlu1 %3113, %v538_v30  }
  0x68   : > { %1192 = vperm.xlu2 %3114, %v1046_v31   ;;  %1112 = vperm.xlu0 %3112, %v1030_v32  }
  0x69   : > { %1117 = vperm.xlu1 %3113, %v1031_v33  }
  0x70   : > { %679 = vperm.xlu2 %3114, %v537_v34   ;;  %1197 = vperm.xlu0 %3112, %v1047_v35  }
  0x71   : > { %674 = vperm.xlu1 %3113, %v536_v36  }
  0x72   : > { %v450_v43 = vpop.permute.xlu2 %449 }
  0x73   : > { %v462_v14 = vmul.f32 %v450_v43, %v6039_v0  ;;  %v463_v20 = vmul.f32 %v450_v43, %v6036_v1  ;;  %v3044_v43 = vld [vmem:[%s6030_s5 + $0x58] sm:$0xff] }
  0x78   : > { %1182 = vperm.xlu2 %3114, %v1044_v37   ;;  %1102 = vperm.xlu0 %3112, %v1028_v38  }
  0x79   : > { %1107 = vperm.xlu1 %3113, %v1029_v39   ;;  %v531_v39 = vld [vmem:[%s6031_s6 + $0xa8] sm:$0xff] }
  0x7a   : > { %v455_v51 = vpop.permute.xlu2 %454 }
  0x7b   : > { %v464_v21 = vmul.f32 %v455_v51, %v6040_v3  ;;  %v465_v24 = vmul.f32 %v455_v51, %v6037_v4  ;;  %v1023_v51 = vld [vmem:[%s3622_s25 + $0x28] sm:$0xff] }
  0x80   : > { %669 = vperm.xlu2 %3114, %v535_v40   ;;  %1187 = vperm.xlu0 %3112, %v1045_v41   ;;  %v1041_v40 = vld [vmem:[%s3622_s25 + $0xb8] sm:$0xff]  ;;  %v3033_v41 = vld [vmem:[%s6030_s5] sm:$0xff] }
  0x81   : > { %664 = vperm.xlu1 %3113, %v534_v42   ;;  %v530_v42 = vld [vmem:[%s6031_s6 + $0xa0] sm:$0xff] }
  0x82   : > { %v3699_v25 = vpop.permute.xlu2 %554 }
  0x88   : > { %1172 = vperm.xlu2 %3114, %v1042_v44   ;;  %1092 = vperm.xlu0 %3112, %v1026_v45   ;;  %v3721_v44 = vld [vmem:[%s6030_s5 + $0x50] sm:$0xff] }
  0x89   : > { %1097 = vperm.xlu1 %3113, %v1027_v46  }
  0x8a   : > { %v439_v47 = vpop.permute.xlu0 %438  ;;  %v3723_v45 = vpop.permute.xlu2 %569 }
  0x8b   : > { %v429_v48 = vpop.permute.xlu1 %428  ;;  %v445_v8 = vmul.f32 %v439_v47, %v406_v58  ;;  %v446_v9 = vmul.f32 %v439_v47, %v407_v59  ;;  %v1039_v58 = vld [vmem:[%s3622_s25 + $0xa8] sm:$0xff] }
  0x8c   : > { %v441_v22 = vmul.f32 %v429_v48, %v402_v5  ;;  %v442_v26 = vmul.f32 %v429_v48, %v403_v6  ;;  %v1038_v48 = vld [vmem:[%s3622_s25 + $0xa0] sm:$0xff]  ;;  %v3034_v59 = vld [vmem:[%s6030_s5 + $0x8] sm:$0xff] }
  0x8e   : > { %v468_v34 = vadd.f32 %v462_v14, %v441_v22  ;;  %v469_v36 = vadd.f32 %v463_v20, %v442_v26  ;;  %v3035_v14 = vld [vmem:[%s6030_s5 + $0x10] sm:$0xff]  ;;  %v1034_v20 = vld [vmem:[%s3622_s25 + $0x80] sm:$0xff]  ;;  %v1019_v22 = vld [vmem:[%s3622_s25 + $0x8] sm:$0xff] }
  0x90   : > { %659 = vperm.xlu2 %3114, %v533_v52   ;;  %1177 = vperm.xlu0 %3112, %v1043_v53  }
  0x91   : > { %654 = vperm.xlu1 %3113, %v532_v56   ;;  %v529_v56 = vld [vmem:[%s6031_s6 + $0x98] sm:$0xff] }
  0x92   : > { %v460_v7 = vpop.permute.xlu0 %459  ;;  %v3739_v53 = vpop.permute.xlu2 %584 }
  0x93   : > { %v466_v10 = vmul.f32 %v460_v7, %v6038_v61  ;;  %v467_v11 = vmul.f32 %v460_v7, %v6035_v62  ;;  %v434_v12 = vpop.permute.xlu1 %433  ;;  %v1036_v7 = vld [vmem:[%s3622_s25 + $0x90] sm:$0xff] }
  0x94   : > { %v443_v13 = vmul.f32 %v434_v12, %v404_v63  ;;  %v444_v15 = vmul.f32 %v434_v12, %v405_v2  ;;  %v3045_v63 = vld [vmem:[%s6030_s5 + $0x60] sm:$0xff]  ;;  %v527_v12 = vld [vmem:[%s6031_s6 + $0x88] sm:$0xff] }
  0x95   : > { %v472_v18 = vadd.f32 %v466_v10, %v445_v8  ;;  %v473_v19 = vadd.f32 %v467_v11, %v446_v9  ;;  %v1020_v8 = vld [vmem:[%s3622_s25 + $0x10] sm:$0xff]  ;;  %v1021_v9 = vld [vmem:[%s3622_s25 + $0x18] sm:$0xff] }
  0x96   : > { %v470_v29 = vadd.f32 %v464_v21, %v443_v13  ;;  %v471_v32 = vadd.f32 %v465_v24, %v444_v15  ;;  %v1037_v13 = vld [vmem:[%s3622_s25 + $0x98] sm:$0xff]  ;;  %v526_v15 = vld [vmem:[%s6031_s6 + $0x80] sm:$0xff] }
  0x97   : > { %v508_v27 = vpack.c.bf16 %v472_v18, %v472_v18  ;;  %v509_v28 = vpack.c.bf16 %v473_v19, %v473_v19  ;;  %v1018_v21 = vld [vmem:[%s3622_s25] sm:$0xff] }
  0x98   : > { %1162 = vperm.xlu2 %3114, %v1040_v16   ;;  %1082 = vperm.xlu0 %3112, %v1024_v17   ;;  %v506_v37 = vpack.c.bf16 %v470_v29, %v468_v34  ;;  %v507_v38 = vpack.c.bf16 %v471_v32, %v469_v36  ;;  %v3046_v16 = vld [vmem:[%s6030_s5 + $0x68] sm:$0xff]  ;;  %v3036_v29 = vld [vmem:[%s6030_s5 + $0x18] sm:$0xff] }
  0x99   : > { %1087 = vperm.xlu1 %3113, %v1025_v23   ;;  %v833_v30 = vsel %vm831_vm0, %v508_v27, 0  ;;  %v836_v31 = vsel %vm831_vm0, %v509_v28, 0  ;;  %v2590_v27 = vld [vmem:[%s6033_s8 + $0x8] sm:$0xff] }
  0x9a   : > { %v3701_v33 = vpop.permute.xlu0 %544  ;;  %844 = vmatpush.bf16.msra.mxu0 %v833_v30  ;;  %3051 = vmatpush.bf16.msra.mxu2 %v833_v30  ;;  %v3764_v6 = vpop.permute.xlu2 %599  ;;  %v1035_v28 = vld [vmem:[%s3622_s25 + $0x88] sm:$0xff]  ;;  %v2589_v30 = vld [vmem:[%s6033_s8] sm:$0xff]  ;;  %s2750_s25 = sshll.u32 %s376_s20, 4  ;;  %s2751_s25 = int_to_ptr.vmem [resolvable:$true] %s2750_s25 }
  0x9b   : > { %v3703_v35 = vpop.permute.xlu1 %549  ;;  %933 = vmatpush.bf16.msra.mxu1 %v836_v31  ;;  %3053 = vmatpush.bf16.msra.mxu3 %v836_v31  ;;  %6183 = vst [vmem:[#allocation9_spill] sm:$0xff] %v3764_v6  ;;  %v3047_v31 = vld [vmem:[%s6030_s5 + $0x70] sm:$0xff] }
  0x9e   : > { %845 = vmatpush.bf16.msra.mxu0 %v506_v37  ;;  %3052 = vmatpush.bf16.msra.mxu2 %v506_v37  ;;  %v2591_v37 = vld [vmem:[%s6033_s8 + $0x10] sm:$0xff] }
  0x9f   : > { %934 = vmatpush.bf16.msra.mxu1 %v507_v38  ;;  %3054 = vmatpush.bf16.msra.mxu3 %v507_v38 }
  0xa0   : > { %649 = vperm.xlu2 %3114, %v531_v39   ;;  %1167 = vperm.xlu0 %3112, %v1041_v40   ;;  %v3037_v40 = vld [vmem:[%s6030_s5 + $0x20] sm:$0xff] }
  0xa1   : > { %644 = vperm.xlu1 %3113, %v530_v42   ;;  %2924 = vmatmul.msk.bf16.vlgmr.msra.gmra.mxu0 %vm782_vm1, %v3033_v41 }
  0xa2   : > { %2935 = vmatmul.msk.bf16.vlgmr.msra.gmra.mxu2 %vm782_vm1, %v3044_v43  ;;  %2940 = vmatmul.msk.bf16.vlgmr.msra.gmra.mxu1 %vm782_vm1, %v3033_v41  ;;  %v3728_v46 = vpop.permute.xlu0 %559  ;;  %v3786_v17 = vpop.permute.xlu2 %614  ;;  %v3048_v41 = vld [vmem:[%s6030_s5 + $0x78] sm:$0xff] }
  0xa3   : > { %2950 = vmatmul.msk.bf16.vlgmr.msra.gmra.mxu3 %vm782_vm1, %v3721_v44  ;;  %v3732_v47 = vpop.permute.xlu1 %564  ;;  %6186 = vst [vmem:[#allocation12_spill] sm:$0xff] %v3786_v17 }
  0xa8   : > { %1152 = vperm.xlu2 %3114, %v1038_v48   ;;  %1072 = vperm.xlu0 %3112, %v1022_v49  }
  0xa9   : > { %1077 = vperm.xlu1 %3113, %v1023_v51  }
  0xaa   : > { %v3737_v52 = vpop.permute.xlu0 %574  ;;  %v3799_v23 = vpop.permute.xlu2 %699 }
  0xab   : > { %v3741_v54 = vpop.permute.xlu1 %579  ;;  %6189 = vst [vmem:[#allocation15_spill] sm:$0xff] %v3799_v23 }
  0xb0   : > { %639 = vperm.xlu2 %3114, %v529_v56   ;;  %1157 = vperm.xlu0 %3112, %v1039_v58   ;;  %v3038_v56 = vld [vmem:[%s6030_s5 + $0x28] sm:$0xff] }
  0xb1   : > { %634 = vperm.xlu1 %3113, %v528_v60   ;;  %2925 = vmatmul.msk.bf16.gmra.mxu0 %vm782_vm1, %v3034_v59 }
  0xb2   : > { %2936 = vmatmul.msk.bf16.gmra.mxu2 %vm782_vm1, %v3045_v63  ;;  %2941 = vmatmul.msk.bf16.gmra.mxu1 %vm782_vm1, %v3034_v59  ;;  %v3759_v2 = vpop.permute.xlu0 %589  ;;  %v3823_v34 = vpop.permute.xlu2 %1202 }
  0xb3   : > { %2951 = vmatmul.msk.bf16.gmra.mxu3 %vm782_vm1, %v3044_v43  ;;  %v3762_v5 = vpop.permute.xlu1 %594  ;;  %6193 = vst [vmem:[#allocation19_spill] sm:$0xff] %v3823_v34 }
  0xb4   : > { %6182 = vst [vmem:[#allocation8_spill] sm:$0xff] %v3762_v5 }
  0xb8   : > { %1142 = vperm.xlu2 %3114, %v1036_v7   ;;  %1062 = vperm.xlu0 %3112, %v1020_v8   ;;  %v3039_v8 = vld [vmem:[%s6030_s5 + $0x30] sm:$0xff] }
  0xb9   : > { %1067 = vperm.xlu1 %3113, %v1021_v9  }
  0xba   : > { %v3769_v10 = vpop.permute.xlu0 %604  ;;  %v3833_v39 = vpop.permute.xlu2 %689 }
  0xbb   : > { %6184 = vst [vmem:[#allocation10_spill] sm:$0xff] %v3769_v10  ;;  %v3771_v11 = vpop.permute.xlu1 %609 }
  0xbc   : > { %6185 = vst [vmem:[#allocation11_spill] sm:$0xff] %v3771_v11 }
  0xbd   : > { %6195 = vst [vmem:[#allocation21_spill] sm:$0xff] %v3833_v39 }
  0xc0   : > { %629 = vperm.xlu2 %3114, %v527_v12   ;;  %1147 = vperm.xlu0 %3112, %v1037_v13  }
  0xc1   : > { %624 = vperm.xlu1 %3113, %v526_v15   ;;  %2926 = vmatmul.msk.bf16.gmra.mxu0 %vm782_vm1, %v3035_v14  ;;  %v3040_v15 = vld [vmem:[%s6030_s5 + $0x38] sm:$0xff] }
  0xc2   : > { %2937 = vmatmul.msk.bf16.gmra.mxu2 %vm782_vm1, %v3046_v16  ;;  %2942 = vmatmul.msk.bf16.gmra.mxu1 %vm782_vm1, %v3035_v14  ;;  %v3791_v18 = vpop.permute.xlu0 %619  ;;  %v3849_v48 = vpop.permute.xlu2 %1192 }
  0xc3   : > { %6187 = vst [vmem:[#allocation13_spill] sm:$0xff] %v3791_v18  ;;  %2952 = vmatmul.msk.bf16.gmra.mxu3 %vm782_vm1, %v3045_v63  ;;  %v3794_v19 = vpop.permute.xlu1 %694 }
  0xc4   : > { %6188 = vst [vmem:[#allocation14_spill] sm:$0xff] %v3794_v19 }
  0xc8   : > { %1132 = vperm.xlu2 %3114, %v1034_v20   ;;  %1052 = vperm.xlu0 %3112, %v1018_v21  }
  0xc9   : > { %1057 = vperm.xlu1 %3113, %v1019_v22  }
  0xca   : > { %v3801_v24 = vpop.permute.xlu0 %1122  ;;  %v3858_v58 = vpop.permute.xlu2 %679 }
  0xcb   : > { %6190 = vst [vmem:[#allocation16_spill] sm:$0xff] %v3801_v24  ;;  %v3803_v26 = vpop.permute.xlu1 %1127 }
  0xcc   : > { %6191 = vst [vmem:[#allocation17_spill] sm:$0xff] %v3803_v26 }
  0xd0   : > { %2599 = vperm.xlu2 %3114, %v2590_v27   ;;  %1137 = vperm.xlu0 %3112, %v1035_v28  }
  0xd1   : > { %2594 = vperm.xlu1 %3113, %v2589_v30   ;;  %2927 = vmatmul.msk.bf16.gmra.mxu0 %vm782_vm1, %v3036_v29 }
  0xd2   : > { %2938 = vmatmul.msk.bf16.gmra.mxu2 %vm782_vm1, %v3047_v31  ;;  %2943 = vmatmul.msk.bf16.gmra.mxu1 %vm782_vm1, %v3036_v29  ;;  %v3821_v32 = vpop.permute.xlu0 %1207  ;;  %v3867_v63 = vpop.permute.xlu2 %1182  ;;  %v3041_v29 = vld [vmem:[%s6030_s5 + $0x40] sm:$0xff] }
  0xd3   : > { %6192 = vst [vmem:[#allocation18_spill] sm:$0xff] %v3821_v32  ;;  %2953 = vmatmul.msk.bf16.gmra.mxu3 %vm782_vm1, %v3046_v16  ;;  %v3826_v36 = vpop.permute.xlu1 %684 }
  0xd8   : > { %2604 = vperm.xlu0 %3112, %v2591_v37  }
  0xda   : > { %v3831_v38 = vpop.permute.xlu0 %1112  ;;  %v3878_v12 = vpop.permute.xlu2 %669 }
  0xdb   : > { %6194 = vst [vmem:[#allocation20_spill] sm:$0xff] %v3831_v38  ;;  %v3841_v42 = vpop.permute.xlu1 %1117 }
  0xdc   : > { %6196 = vst [vmem:[#allocation22_spill] sm:$0xff] %v3841_v42 }
  0xe1   : > { %2928 = vmatmul.msk.bf16.gmra.mxu0 %vm782_vm1, %v3037_v40 }
  0xe2   : > { %2939 = vmatmul.msk.bf16.gmra.mxu2 %vm782_vm1, %v3048_v41  ;;  %2944 = vmatmul.msk.bf16.gmra.mxu1 %vm782_vm1, %v3037_v40  ;;  %v3846_v43 = vpop.permute.xlu0 %1197  ;;  %v3887_v16 = vpop.permute.xlu2 %1172 }
  0xe3   : > { %6197 = vst [vmem:[#allocation23_spill] sm:$0xff] %v3846_v43  ;;  %2954 = vmatmul.msk.bf16.gmra.mxu3 %vm782_vm1, %v3047_v31  ;;  %v3851_v49 = vpop.permute.xlu1 %674 }
  0xea   : > { %v3853_v51 = vpop.permute.xlu0 %1102  ;;  %v660_v22 = vpop.permute.xlu2 %659 }
  0xeb   : > { %6198 = vst [vmem:[#allocation24_spill] sm:$0xff] %v3853_v51  ;;  %v3862_v59 = vpop.permute.xlu1 %1107 }
  0xec   : > { %6199 = vst [vmem:[#allocation25_spill] sm:$0xff] %v3862_v59 }
  0xf1   : > { %2929 = vmatmul.msk.bf16.gmra.mxu0 %vm782_vm1, %v3038_v56 }
  0xf2   : > { %2945 = vmatmul.msk.bf16.gmra.mxu1 %vm782_vm1, %v3038_v56  ;;  %v3865_v60 = vpop.permute.xlu0 %1187  ;;  %v1163_v30 = vpop.permute.xlu2 %1162  ;;  %v3042_v56 = vld [vmem:[%s6030_s5 + $0x48] sm:$0xff] }
  0xf3   : > { %2955 = vmatmul.msk.bf16.gmra.mxu3 %vm782_vm1, %v3048_v41  ;;  %v3869_v7 = vpop.permute.xlu1 %664 }
  0xfa   : > { %v3874_v9 = vpop.permute.xlu0 %1092  ;;  %v3904_v41 = vpop.permute.xlu2 %649 }
  0xfb   : > { %v3880_v13 = vpop.permute.xlu1 %1097  ;;  %6201 = vst [vmem:[#allocation27_spill] sm:$0xff] %v3904_v41 }
 0x101   : > { %2930 = vmatmul.msk.bf16.gmra.mxu0 %vm782_vm1, %v3039_v8 }
 0x102   : > { %2946 = vmatmul.msk.bf16.gmra.mxu1 %vm782_vm1, %v3039_v8  ;;  %v3882_v14 = vpop.permute.xlu0 %1177 }
 0x103   : > { %v655_v20 = vpop.permute.xlu1 %654 }
 0x10a   : > { %v3890_v21 = vpop.permute.xlu0 %1082 }
 0x10b   : > { %v3893_v27 = vpop.permute.xlu1 %1087 }
 0x111   : > { %2931 = vmatmul.msk.bf16.gmra.mxu0 %vm782_vm1, %v3040_v15 }
 0x112   : > { %2947 = vmatmul.msk.bf16.gmra.mxu1 %vm782_vm1, %v3040_v15  ;;  %v1168_v28 = vpop.permute.xlu0 %1167 }
 0x113   : > { %v3900_v31 = vpop.permute.xlu1 %644 }
 0x114   : > { %6200 = vst [vmem:[#allocation26_spill] sm:$0xff] %v3900_v31 }
 0x11a   : > { %v3902_v37 = vpop.permute.xlu0 %1072 }
 0x11b   : > { %v3909_v62 = vpop.permute.xlu1 %1077 }
 0x11e   : > { %v3920_v50 = vpop.f32.mrf.mxu0 }
 0x11f   : > { %v936_v8 = vpop.f32.mrf.mxu1 }
 0x121   : > { %2932 = vmatmul.msk.bf16.gmra.mxu0 %vm782_vm1, %v3041_v29 }
 0x122   : > { %2948 = vmatmul.msk.bf16.gmra.mxu1 %vm782_vm1, %v3041_v29  ;;  %v3912_v4 = vpop.permute.xlu0 %1157 }
 0x123   : > { %6202 = vst [vmem:[#allocation28_spill] sm:$0xff] %v3912_v4  ;;  %v3922_v57 = vpop.permute.xlu1 %634 }
 0x124   : > { %6203 = vst [vmem:[#allocation29_spill] sm:$0xff] %v3922_v57 }
 0x126   : > { %v986_v40 = vpop.f32.mrf.mxu3 }
 0x127   : > { %v987_v0 = vadd.f32 %v986_v40, %v3900_v31  ;;  %v938_v55 = vpop.f32.mrf.mxu1 }
 0x12b   : > { %v3936_v31 = vpop.permute.xlu1 %1067 }
 0x12e   : > { %v988_v15 = vpop.f32.mrf.mxu3 }
 0x12f   : > { %v989_v1 = vadd.f32 %v988_v15, %v3904_v41  ;;  %v3926_v15 = vpop.permute.xlu2 %1152  ;;  %v902_v41 = vpop.f32.mrf.mxu2 }
 0x130   : > { %6204 = vst [vmem:[#allocation30_spill] sm:$0xff] %v3926_v15  ;;  %v941_v40 = vpop.f32.mrf.mxu1  ;;  %v903_v17 = vadd.f32 %v902_v41, %v655_v20 }
 0x131   : > { %v3915_v29 = vadd.f32 %v3912_v4, %v989_v1  ;;  %2933 = vmatmul.msk.bf16.gmra.mxu0 %vm782_vm1, %v3042_v56  ;;  %v3929_v1 = vadd.f32 %v3926_v15, %v987_v0  ;;  %v942_v57 = vadd.f32 %v941_v40, %v3699_v25 }
 0x132   : > { %2949 = vmatmul.msk.bf16.gmra.mxu1 %vm782_vm1, %v3042_v56  ;;  %v1063_v56 = vpop.permute.xlu0 %1062  ;;  %v3951_v6 = vadd.f32 %v1163_v30, %v903_v17  ;;  %v937_v17 = vadd.f32 %v936_v8, %v3701_v33 }
 0x133   : > { %v2998_v4 = vmul.f32 -1.442695, %v3929_v1  ;;  %v3000_v24 = vmul.f32 -1.442695, %v3915_v29  ;;  %v3940_v18 = vadd.f32 %v1063_v56, %v942_v57  ;;  %v3949_v40 = vpop.permute.xlu1 %624 }
 0x134   : > { %6207 = vst [vmem:[#allocation33_spill] sm:$0xff] %v3949_v40 }
 0x135   : > { %3115 = vpow2.f32 %v2998_v4  ;;  %v2962_v59 = vmul.f32 -1.442695, %v3940_v18  ;;  %6208 = vst [vmem:[#allocation34_spill] sm:$0xff] %v3951_v6 }
 0x136   : > { %v991_v61 = vpop.f32.mrf.mxu3  ;;  %3117 = vpow2.f32 %v3000_v24 }
 0x137   : > { %v992_v3 = vadd.f32 %v991_v61, %v655_v20  ;;  %v3934_v61 = vpop.f32.mrf.mxu0  ;;  %v904_v42 = vpop.f32.mrf.mxu2 }
 0x138   : > { %v905_v10 = vadd.f32 %v904_v42, %v660_v22 }
 0x139   : > { %v3924_v26 = vadd.f32 %v1163_v30, %v992_v3 }
 0x13a   : > { %v3942_v11 = vpop.permute.xlu0 %1147  ;;  %v3955_v24 = vadd.f32 %v1168_v28, %v905_v10 }
 0x13b   : > { %v3116_v15 = vpop.eup %3115  ;;  %6205 = vst [vmem:[#allocation31_spill] sm:$0xff] %v3942_v11 }
 0x13c   : > { %v3946_v38 = vadd.f32 1.0, %v3116_v15  ;;  %v3118_v20 = vpop.eup %3117  ;;  %6209 = vst [vmem:[#allocation35_spill] sm:$0xff] %v3955_v24  ;;  %v3001_v15 = vmul.f32 -1.442695, %v3951_v6  ;;  %v3003_v30 = vmul.f32 -1.442695, %v3955_v24 }
 0x13d   : > { %v3959_v42 = vadd.f32 1.0, %v3118_v20  ;;  %v3002_v20 = vmul.f32 -1.442695, %v3924_v26 }
 0x13e   : > { %v993_v3 = vpop.f32.mrf.mxu3  ;;  %3119 = vrcp.f32 %v3946_v38  ;;  %vm2150_vm2 = vweird.f32 %v3946_v38 }
 0x13f   : > { %v994_v0 = vadd.f32 %v993_v3, %v660_v22  ;;  %v852_v4 = vpop.f32.mrf.mxu0  ;;  %v943_v3 = vpop.f32.mrf.mxu1  ;;  %3121 = vpow2.f32 %v2962_v59  ;;  %vm2180_vm6 = vweird.f32 %v3959_v42 }
 0x140   : > { %v853_v57 = vadd.f32 %v852_v4, %v3699_v25  ;;  %v944_v41 = vadd.f32 %v943_v3, %v3728_v46  ;;  %v907_v25 = vpop.f32.mrf.mxu2  ;;  %3123 = vpow2.f32 %v3001_v15 }
 0x141   : > { %2934 = vmatmul.msk.bf16.gmra.mxu0 %vm782_vm1, %v3721_v44  ;;  %v3944_v44 = vadd.f32 %v1168_v28, %v994_v0  ;;  %3125 = vrcp.f32 %v3959_v42  ;;  %v908_v8 = vadd.f32 %v907_v25, %v3869_v7 }
 0x142   : > { %v3961_v22 = vadd.f32 %v1063_v56, %v853_v57  ;;  %v1053_v0 = vpop.permute.xlu0 %1052  ;;  %v3966_v4 = vadd.f32 %v3936_v31, %v944_v41  ;;  %v1058_v56 = vpop.permute.xlu1 %1057  ;;  %v939_v57 = vadd.f32 %v938_v55, %v3703_v35  ;;  %3127 = vpow2.f32 %v3003_v30 }
 0x143   : > { %6206 = vst [vmem:[#allocation32_spill] sm:$0xff] %v3944_v44  ;;  %v3972_v3 = vadd.f32 %v1053_v0, %v937_v17  ;;  %v3989_v40 = vadd.f32 %v3887_v16, %v908_v8 }
 0x144   : > { %6210 = vst [vmem:[#allocation36_spill] sm:$0xff] %v3961_v22  ;;  %v3968_v10 = vpop.eup %3119  ;;  %v2961_v28 = vmul.f32 -1.442695, %v3961_v22  ;;  %v2964_v15 = vmul.f32 -1.442695, %v3966_v4  ;;  %v3982_v6 = vadd.f32 %v1058_v56, %v939_v57 }
 0x145   : > { %v3122_v59 = vpop.eup %3121  ;;  %v2146_v41 = vmul.f32 %v3968_v10, %v3946_v38  ;;  %v2958_v25 = vmul.f32 -1.442695, %v3972_v3  ;;  %6211 = vst [vmem:[#allocation37_spill] sm:$0xff] %v3989_v40  ;;  %vm2151_vm3 = vweird.f32 %v3968_v10 }
 0x146   : > { %v3980_v24 = vadd.f32 1.0, %v3122_v59  ;;  %3129 = vpow2.f32 %v2961_v28  ;;  %v3124_v22 = vpop.eup %3123  ;;  %v848_v59 = vadd.f32 %v3920_v50, %v3701_v33  ;;  %v2960_v28 = vmul.f32 -1.442695, %v3982_v6  ;;  %vm4040_vm5 = vmor %vm2150_vm2, %vm2151_vm3 }
 0x147   : > { %v854_v11 = vpop.f32.mrf.mxu0  ;;  %v3984_v17 = vpop.f32.mrf.mxu1  ;;  %3131 = vpow2.f32 %v3002_v20  ;;  %v2147_v30 = vsub.f32 1.0, %v2146_v41  ;;  %v3005_v20 = vmul.f32 -1.442695, %v3989_v40  ;;  %v850_v33 = vadd.f32 %v3934_v61, %v3703_v35 }
 0x148   : > { %v855_v55 = vadd.f32 %v854_v11, %v3728_v46  ;;  %v3991_v51 = vpop.eup %3125  ;;  %3133 = vpow2.f32 %v2964_v15  ;;  %v3997_v46 = vadd.f32 1.0, %v3124_v22  ;;  %v4005_v41 = vadd.f32 %v1053_v0, %v848_v59 }
 0x149   : > { %3135 = vrcp.f32 %v3980_v24  ;;  %v3128_v57 = vpop.eup %3127  ;;  %v2176_v8 = vmul.f32 %v3991_v51, %v3959_v42  ;;  %v2148_v50 = vmul.f32 %v3968_v10, %v2147_v30  ;;  %v2154_v22 = vand.u32 2147483647, %v3946_v38 }
 0x14a   : > { %6212 = vst [vmem:[#allocation38_spill] sm:$0xff] %v3997_v46  ;;  %v4000_v11 = vadd.f32 %v3936_v31, %v855_v55  ;;  %3137 = vpow2.f32 %v2958_v25  ;;  %v2156_v31 = vand.u32 2147483648, %v3946_v38  ;;  %v4012_v55 = vadd.f32 1.0, %v3128_v57 }
 0x14b   : > { %6214 = vst [vmem:[#allocation40_spill] sm:$0xff] %v4005_v41  ;;  %3139 = vpow2.f32 %v2960_v28  ;;  %v4016_v59 = vadd.f32 %v1058_v56, %v850_v33  ;;  %v2177_v30 = vsub.f32 1.0, %v2176_v8  ;;  %v2957_v35 = vmul.f32 -1.442695, %v4005_v41  ;;  %v909_v41 = vpop.f32.mrf.mxu2 }
 0x14c   : > { %6213 = vst [vmem:[#allocation39_spill] sm:$0xff] %v4000_v11  ;;  %v3130_v15 = vpop.eup %3129  ;;  %3141 = vrcp.f32 %v3997_v46  ;;  %v2963_v0 = vmul.f32 -1.442695, %v4000_v11  ;;  %v2149_v57 = vadd.f32 %v3968_v10, %v2148_v50  ;;  %vm4028_vm4 = vcmp.eq.f32.partialorder %v2154_v22, 8.507059e+37 }
 0x14d   : > { %v3132_v32 = vpop.eup %3131  ;;  %6215 = vst [vmem:[#allocation41_spill] sm:$0xff] %v4012_v55  ;;  %3143 = vpow2.f32 %v3005_v20  ;;  %v2157_v33 = vor.u32 1.1754944e-38, %v2156_v31  ;;  %v4035_v20 = vadd.f32 1.0, %v3130_v15  ;;  %v2959_v38 = vmul.f32 -1.442695, %v4016_v59 }
 0x14e   : > { %v3134_v25 = vpop.eup %3133  ;;  %6216 = vst [vmem:[#allocation42_spill] sm:$0xff] %v4016_v59  ;;  %v4026_v28 = vadd.f32 1.0, %v3132_v32  ;;  %3145 = vrcp.f32 %v4012_v55  ;;  %v2178_v31 = vmul.f32 %v3991_v51, %v2177_v30  ;;  %v2184_v59 = vand.u32 2147483647, %v3959_v42 }
 0x14f   : > { %v4018_v40 = vpop.eup %3135  ;;  %v4021_v61 = vpop.f32.mrf.mxu1  ;;  %v4033_v8 = vadd.f32 1.0, %v3134_v25  ;;  %6219 = vst [vmem:[#allocation43_spill] sm:$0xff] %v4035_v20  ;;  %3147 = vpow2.f32 %v2963_v0  ;;  %v2153_v0 = vsel %vm4040_vm5, %v3968_v10, %v2149_v57  ;;  %v2186_v11 = vand.u32 2147483648, %v3959_v42 }
 0x150   : > { %v3138_v5 = vpop.eup %3137  ;;  %v1606_v50 = vmul.f32 %v4018_v40, %v3980_v24  ;;  %3149 = vpow2.f32 %v2957_v35  ;;  %v910_v30 = vadd.f32 %v909_v41, %v3878_v12  ;;  %v947_v35 = vadd.f32 %v3984_v17, %v3732_v47 }
 0x151   : > { %v3140_v32 = vpop.eup %3139  ;;  %v4046_v25 = vadd.f32 1.0, %v3138_v5  ;;  %3151 = vrcp.f32 %v4026_v28  ;;  %v3004_v5 = vmul.f32 -1.442695, %v3944_v44  ;;  %v1616_v10 = vand.u32 2147483648, %v3980_v24 }
 0x152   : > { %v4048_v15 = vpop.eup %3141  ;;  %3153 = vrcp.f32 %v4033_v8  ;;  %v1607_v22 = vsub.f32 1.0, %v1606_v50  ;;  %v4063_v57 = vadd.f32 1.0, %v3140_v32  ;;  %v2158_v23 = vsel %vm4028_vm4, %v2157_v33, %v2153_v0 }
 0x153   : > { %6222 = vst [vmem:[#allocation44_spill] sm:$0xff] %v4048_v15  ;;  %v3144_v55 = vpop.eup %3143  ;;  %3155 = vrcp.f32 %v4035_v20  ;;  %v857_v15 = vpop.f32.mrf.mxu0  ;;  %v2179_v41 = vadd.f32 %v3991_v51, %v2178_v31  ;;  %vm2181_vm7 = vweird.f32 %v3991_v51  ;;  %vm4072_vm8 = vcmp.eq.f32.partialorder %v2184_v59, 8.507059e+37 }
 0x154   : > { %v4065_v46 = vpop.eup %3145  ;;  %3157 = vrcp.f32 %v4046_v25  ;;  %v2187_v50 = vor.u32 1.1754944e-38, %v2186_v11  ;;  %v1614_v32 = vand.u32 2147483647, %v3980_v24  ;;  %v4077_v34 = vadd.f32 1.0, %v3144_v55  ;;  %vm4097_vm10 = vmor %vm2180_vm6, %vm2181_vm7 }
 0x155   : > { %6223 = vst [vmem:[#allocation45_spill] sm:$0xff] %v4065_v46  ;;  %v3148_v17 = vpop.eup %3147  ;;  %v996_v46 = vpop.f32.mrf.mxu3  ;;  %vm1610_vm9 = vweird.f32 %v3980_v24  ;;  %v4081_v56 = vadd.f32 %v3882_v14, %v910_v30  ;;  %3159 = vpow2.f32 %v3004_v5  ;;  %v4084_v33 = vadd.f32 %v3902_v37, %v947_v35 }
 0x156   : > { %6226 = vst [vmem:[#allocation46_spill] sm:$0xff] %v4077_v34  ;;  %v3150_v19 = vpop.eup %3149  ;;  %v4091_v11 = vmul.f32 %v2158_v23, %v3929_v1  ;;  %v1608_v0 = vmul.f32 %v4018_v40, %v1607_v22  ;;  %v1617_v30 = vor.u32 1.1754944e-38, %v1616_v10  ;;  %3161 = vrcp.f32 %v4063_v57 }
 0x157   : > { %6227 = vst [vmem:[#allocation47_spill] sm:$0xff] %v4081_v56  ;;  %v4086_v59 = vpop.f32.mrf.mxu1  ;;  %v4088_v31 = vpop.eup %3151  ;;  %v2183_v23 = vsel %vm4097_vm10, %v3991_v51, %v2179_v41  ;;  %v2216_v1 = vand.u32 2147483648, %v4026_v28  ;;  %v4109_v35 = vadd.f32 1.0, %v3148_v17  ;;  %v949_v42 = vadd.f32 %v4021_v61, %v3723_v45 }
 0x158   : > { %6228 = vst [vmem:[#allocation48_spill] sm:$0xff] %v4084_v33  ;;  %v4103_v5 = vpop.eup %3153  ;;  %vm4115_vm11 = vcmp.eq.f32.partialorder %v1614_v32, 8.507059e+37  ;;  %3163 = vrcp.f32 %v4077_v34  ;;  %v1646_v55 = vand.u32 2147483648, %v4033_v8  ;;  %v4122_v51 = vadd.f32 1.0, %v3150_v19 }
 0x159   : > { %6229 = vst [vmem:[#allocation49_spill] sm:$0xff] %v4091_v11  ;;  %v4113_v11 = vpop.eup %3155  ;;  %v2206_v17 = vmul.f32 %v4088_v31, %v4026_v28  ;;  %3165 = vpow2.f32 %v2959_v38  ;;  %v3007_v61 = vmul.f32 -1.442695, %v4081_v56  ;;  %v2966_v32 = vmul.f32 -1.442695, %v4084_v33  ;;  %v912_v56 = vpop.f32.mrf.mxu2 }
 0x15a   : > { %6232 = vst [vmem:[#allocation50_spill] sm:$0xff] %v4109_v35  ;;  %v4124_v41 = vpop.eup %3157  ;;  %v1609_v34 = vadd.f32 %v4018_v40, %v1608_v0  ;;  %vm1611_vm12 = vweird.f32 %v4018_v40  ;;  %v1636_v19 = vmul.f32 %v4103_v5, %v4033_v8  ;;  %v4136_v43 = vor.u32 1.1754944e-38, %v2216_v1 }
 0x15b   : > { %6233 = vst [vmem:[#allocation51_spill] sm:$0xff] %v4113_v11  ;;  %v2188_v11 = vsel %vm4072_vm8, %v2187_v50, %v2183_v23  ;;  %v3160_v10 = vpop.eup %3159  ;;  %3167 = vrcp.f32 %v4109_v35  ;;  %v858_v38 = vadd.f32 %v857_v15, %v3732_v47  ;;  %v4141_v33 = vadd.f32 %v3909_v62, %v949_v42  ;;  %v859_v1 = vpop.f32.mrf.mxu0  ;;  %vm4158_vm13 = vmor %vm1610_vm9, %vm1611_vm12 }
 0x15c   : > { %6236 = vst [vmem:[#allocation52_spill] sm:$0xff] %v4122_v51  ;;  %v4143_v20 = vpop.eup %3161  ;;  %v1644_v50 = vand.u32 2147483647, %v4033_v8  ;;  %v4146_v0 = vor.u32 1.1754944e-38, %v1646_v55  ;;  %3169 = vrcp.f32 %v4122_v51  ;;  %v1546_v23 = vmul.f32 %v4124_v41, %v4046_v25 }
 0x15d   : > { %6237 = vst [vmem:[#allocation53_spill] sm:$0xff] %v4141_v33  ;;  %v4152_v35 = vmul.f32 %v2188_v11, %v3915_v29  ;;  %v2207_v15 = vsub.f32 1.0, %v2206_v17  ;;  %vm2211_vm14 = vweird.f32 %v4088_v31  ;;  %3171 = vpow2.f32 %v2966_v32  ;;  %v998_v51 = vpop.f32.mrf.mxu3 }
 0x15e   : > { %v997_v42 = vadd.f32 %v996_v46, %v3869_v7  ;;  %v4164_v55 = vpop.eup %3163  ;;  %v1613_v29 = vsel %vm4158_vm13, %v4018_v40, %v1609_v34  ;;  %v1637_v11 = vsub.f32 1.0, %v1636_v19  ;;  %v4170_v24 = vadd.f32 1.0, %v3160_v10 }
 0x15f   : > { %6238 = vst [vmem:[#allocation54_spill] sm:$0xff] %v4152_v35  ;;  %v1554_v35 = vand.u32 2147483647, %v4046_v25  ;;  %v3166_v44 = vpop.eup %3165  ;;  %vm2210_vm15 = vweird.f32 %v4026_v28  ;;  %v1576_v7 = vmul.f32 %v4143_v20, %v4063_v57  ;;  %v913_v46 = vadd.f32 %v912_v56, %v3851_v49  ;;  %v953_v47 = vpop.f32.mrf.mxu1 }
 0x160   : > { %6241 = vst [vmem:[#allocation55_spill] sm:$0xff] %v4164_v55  ;;  %v2968_v32 = vmul.f32 -1.442695, %v4141_v33  ;;  %vm1640_vm0 = vweird.f32 %v4033_v8  ;;  %v1547_v34 = vsub.f32 1.0, %v1546_v23  ;;  %3173 = vpow2.f32 %v3007_v61  ;;  %vm4254_vm7 = vmor %vm2210_vm15, %vm2211_vm14 }
 0x161   : > { %v4180_v40 = vadd.f32 %v3902_v37, %v858_v38  ;;  %v860_v10 = vadd.f32 %v859_v1, %v3723_v45  ;;  %v4183_v19 = vpop.eup %3167  ;;  %v1618_v17 = vsel %vm4115_vm11, %v1617_v30, %v1613_v29  ;;  %v2208_v55 = vmul.f32 %v4088_v31, %v2207_v15 }
 0x162   : > { %6243 = vst [vmem:[#allocation57_spill] sm:$0xff] %v4183_v19  ;;  %v4189_v56 = vadd.f32 %v3887_v16, %v997_v42  ;;  %v999_v33 = vadd.f32 %v998_v51, %v3878_v12  ;;  %v4192_v39 = vpop.eup %3169  ;;  %v1638_v61 = vmul.f32 %v4103_v5, %v1637_v11  ;;  %vm1550_vm1 = vweird.f32 %v4046_v25  ;;  %v914_v42 = vpop.f32.mrf.mxu2  ;;  %v6326_v19 = vld [vmem:[#allocation18_spill] sm:$0xff] }
 0x163   : > { %6242 = vst [vmem:[#allocation56_spill] sm:$0xff] %v4180_v40  ;;  %3175 = vrcp.f32 %v4170_v24  ;;  %v952_v45 = vadd.f32 %v4086_v59, %v3737_v52  ;;  %v954_v37 = vadd.f32 %v953_v47, %v3741_v54  ;;  %v3172_v30 = vpop.eup %3171  ;;  %v4200_v22 = vadd.f32 1.0, %v3166_v44 }
 0x164   : > { %6244 = vst [vmem:[#allocation58_spill] sm:$0xff] %v4189_v56  ;;  %v1577_v16 = vsub.f32 1.0, %v1576_v7  ;;  %v4203_v38 = vadd.f32 %v3867_v63, %v913_v46  ;;  %3177 = vpow2.f32 %v2968_v32  ;;  %v4206_v12 = vmul.f32 %v1618_v17, %v3940_v18  ;;  %v4236_v46 = vpop.f32.mrf.mxu0 }
 0x165   : > { %6245 = vst [vmem:[#allocation59_spill] sm:$0xff] %v4192_v39  ;;  %v1548_v51 = vmul.f32 %v4124_v41, %v1547_v34  ;;  %v2965_v23 = vmul.f32 -1.442695, %v4180_v40  ;;  %v4211_v1 = vadd.f32 %v3909_v62, %v860_v10  ;;  %v2209_v59 = vadd.f32 %v4088_v31, %v2208_v55 }
 0x166   : > { %6246 = vst [vmem:[#allocation60_spill] sm:$0xff] %v4200_v22  ;;  %v6249_v44 = vand.u32 2147483647, %v4026_v28  ;;  %vm1641_vm3 = vweird.f32 %v4103_v5  ;;  %v3006_v18 = vmul.f32 -1.442695, %v4189_v56  ;;  %v4223_v29 = vadd.f32 %v3882_v14, %v999_v33  ;;  %v3174_v11 = vpop.eup %3173 }
 0x167   : > { %6247 = vst [vmem:[#allocation61_spill] sm:$0xff] %v4206_v12  ;;  %v1639_v62 = vadd.f32 %v4103_v5, %v1638_v61  ;;  %vm4226_vm4 = vcmp.eq.f32.partialorder %v1644_v50, 8.507059e+37  ;;  %vm4230_vm5 = vcmp.eq.f32.partialorder %v1554_v35, 8.507059e+37  ;;  %v4234_v7 = vadd.f32 1.0, %v3172_v30  ;;  %vm4265_vm8 = vmor %vm1640_vm0, %vm1641_vm3 }
 0x168   : > { %6248 = vst [vmem:[#allocation62_spill] sm:$0xff] %v4211_v1  ;;  %vm4216_vm2 = vcmp.eq.f32.partialorder %v6249_v44, 8.507059e+37  ;;  %v4239_v32 = vadd.f32 %v3890_v21, %v952_v45  ;;  %v4242_v14 = vadd.f32 %v3893_v27, %v954_v37  ;;  %vm1551_vm6 = vweird.f32 %v4124_v41 }
 0x169   : > { %6252 = vst [vmem:[#allocation63_spill] sm:$0xff] %v4223_v29  ;;  %3179 = vrcp.f32 %v4200_v22  ;;  %v1578_v33 = vmul.f32 %v4143_v20, %v1577_v16  ;;  %v3009_v35 = vmul.f32 -1.442695, %v4203_v38  ;;  %v4248_v50 = vpop.eup %3175  ;;  %v1549_v34 = vadd.f32 %v4124_v41, %v1548_v51  ;;  %v1001_v51 = vpop.f32.mrf.mxu3  ;;  %vm4284_vm9 = vmor %vm1550_vm1, %vm1551_vm6 }
 0x16a   : > { %3181 = vpow2.f32 %v2965_v23  ;;  %v2967_v10 = vmul.f32 -1.442695, %v4211_v1  ;;  %v915_v61 = vadd.f32 %v914_v42, %v3858_v58  ;;  %v3178_v45 = vpop.eup %3177  ;;  %v1584_v28 = vand.u32 2147483647, %v4063_v57 }
 0x16b   : > { %v1586_v30 = vand.u32 2147483648, %v4063_v57  ;;  %3183 = vpow2.f32 %v3006_v18  ;;  %v3008_v16 = vmul.f32 -1.442695, %v4223_v29  ;;  %v2213_v23 = vsel %vm4254_vm7, %v4088_v31, %v2209_v59 }
 0x16c   : > { %v1643_v8 = vsel %vm4265_vm8, %v4103_v5, %v1639_v62  ;;  %3185 = vrcp.f32 %v4234_v7  ;;  %v2970_v44 = vmul.f32 -1.442695, %v4239_v32  ;;  %v1579_v42 = vadd.f32 %v4143_v20, %v1578_v33  ;;  %v864_v17 = vpop.f32.mrf.mxu0 }
 0x16d   : > { %vm1581_vm10 = vweird.f32 %v4143_v20  ;;  %v2236_v31 = vmul.f32 %v4248_v50, %v4170_v24  ;;  %3187 = vpow2.f32 %v3009_v35  ;;  %v1553_v5 = vsel %vm4284_vm9, %v4124_v41, %v1549_v34 }
 0x16e   : > { %3189 = vpow2.f32 %v2967_v10  ;;  %v4295_v59 = vadd.f32 1.0, %v3178_v45  ;;  %v4298_v62 = vadd.f32 %v3865_v60, %v915_v61  ;;  %v6264_v33 = vand.u32 2147483648, %v4046_v25  ;;  %v956_v61 = vpop.f32.mrf.mxu1 }
 0x16f   : > { %v4300_v47 = vpop.eup %3179  ;;  %vm1580_vm11 = vweird.f32 %v4063_v57  ;;  %v4305_v56 = vadd.f32 1.0, %v3174_v11  ;;  %3191 = vpow2.f32 %v3008_v16  ;;  %v2218_v41 = vsel %vm4216_vm2, %v4136_v43, %v2213_v23 }
 0x170   : > { %6263 = vst [vmem:[#allocation64_spill] sm:$0xff] %v4300_v47  ;;  %v1557_v37 = vor.u32 1.1754944e-38, %v6264_v33  ;;  %v3182_v35 = vpop.eup %3181  ;;  %vm4310_vm12 = vmor %vm1580_vm11, %vm1581_vm10  ;;  %vm4314_vm13 = vcmp.eq.f32.partialorder %v1584_v28, 8.507059e+37  ;;  %v1587_v25 = vor.u32 1.1754944e-38, %v1586_v30  ;;  %3193 = vpow2.f32 %v2970_v44 }
 0x171   : > { %v3184_v57 = vpop.eup %3183  ;;  %v1648_v11 = vsel %vm4226_vm4, %v4146_v0, %v1643_v8  ;;  %v1583_v43 = vsel %vm4310_vm12, %v4143_v20, %v1579_v42  ;;  %v2237_v45 = vsub.f32 1.0, %v2236_v31  ;;  %v2246_v16 = vand.u32 2147483648, %v4170_v24 }
 0x172   : > { %v1558_v15 = vsel %vm4230_vm5, %v1557_v37, %v1553_v5  ;;  %v4326_v28 = vpop.eup %3185  ;;  %3195 = vrcp.f32 %v4295_v59  ;;  %v3011_v30 = vmul.f32 -1.442695, %v4298_v62  ;;  %v1002_v23 = vadd.f32 %v1001_v51, %v3851_v49  ;;  %v1003_v37 = vpop.f32.mrf.mxu3 }
 0x173   : > { %v3188_v0 = vpop.eup %3187  ;;  %v4333_v55 = vmul.f32 %v2218_v41, %v3924_v26  ;;  %3197 = vrcp.f32 %v4305_v56  ;;  %v2244_v20 = vand.u32 2147483647, %v4170_v24  ;;  %v4337_v8 = vadd.f32 1.0, %v3182_v35  ;;  %v917_v26 = vpop.f32.mrf.mxu2 }
 0x174   : > { %v3190_v44 = vpop.eup %3189  ;;  %v4340_v18 = vmul.f32 %v1648_v11, %v3966_v4  ;;  %v1588_v42 = vsel %vm4314_vm13, %v1587_v25, %v1583_v43  ;;  %v4344_v31 = vadd.f32 1.0, %v3184_v57  ;;  %v863_v49 = vadd.f32 %v4236_v46, %v3737_v52 }
 0x175   : > { %6269 = vst [vmem:[#allocation65_spill] sm:$0xff] %v4333_v55  ;;  %v3192_v51 = vpop.eup %3191  ;;  %v4349_v5 = vmul.f32 %v1558_v15, %v3972_v3  ;;  %v2238_v33 = vmul.f32 %v4248_v50, %v2237_v45  ;;  %vm2240_vm14 = vweird.f32 %v4170_v24  ;;  %v1666_v4 = vmul.f32 %v4326_v28, %v4234_v7 }
 0x176   : > { %6270 = vst [vmem:[#allocation66_spill] sm:$0xff] %v4337_v8  ;;  %v3194_v35 = vpop.eup %3193  ;;  %v2247_v41 = vor.u32 1.1754944e-38, %v2246_v16  ;;  %v4355_v34 = vadd.f32 1.0, %v3188_v0  ;;  %3199 = vpow2.f32 %v3011_v30  ;;  %v4358_v52 = vadd.f32 %v3867_v63, %v1002_v23  ;;  %v958_v0 = vpop.f32.mrf.mxu1 }
 0x177   : > { %6271 = vst [vmem:[#allocation67_spill] sm:$0xff] %v4340_v18  ;;  %v4361_v46 = vmul.f32 %v1588_v42, %v3982_v6  ;;  %vm4363_vm15 = vcmp.eq.f32.partialorder %v2244_v20, 8.507059e+37  ;;  %3201 = vrcp.f32 %v4337_v8  ;;  %v1676_v10 = vand.u32 2147483648, %v4234_v7 }
 0x178   : > { %6272 = vst [vmem:[#allocation68_spill] sm:$0xff] %v4344_v31  ;;  %v4369_v25 = vadd.f32 1.0, %v3190_v44  ;;  %v4371_v57 = vpop.eup %3195  ;;  %3203 = vrcp.f32 %v4344_v31  ;;  %v4374_v11 = vadd.f32 1.0, %v3192_v51  ;;  %v4377_v63 = vadd.f32 %v3890_v21, %v863_v49 }
 0x179   : > { %6273 = vst [vmem:[#allocation69_spill] sm:$0xff] %v4349_v5  ;;  %v957_v6 = vadd.f32 %v956_v61, %v3739_v53  ;;  %v4380_v15 = vpop.eup %3197  ;;  %v2239_v43 = vadd.f32 %v4248_v50, %v2238_v33  ;;  %vm2241_vm0 = vweird.f32 %v4248_v50  ;;  %v1667_v45 = vsub.f32 1.0, %v1666_v4  ;;  %v867_v33 = vpop.f32.mrf.mxu0  ;;  %v6296_v5 = vld [vmem:[#allocation23_spill] sm:$0xff] }
 0x17a   : > { %6274 = vst [vmem:[#allocation70_spill] sm:$0xff] %v4358_v52  ;;  %v4384_v16 = vadd.f32 1.0, %v3194_v35  ;;  %v1674_v30 = vand.u32 2147483647, %v4234_v7  ;;  %3205 = vrcp.f32 %v4355_v34  ;;  %v918_v23 = vadd.f32 %v917_v26, %v3826_v36  ;;  %vm4399_vm2 = vmor %vm2240_vm14, %vm2241_vm0 }
 0x17b   : > { %6275 = vst [vmem:[#allocation71_spill] sm:$0xff] %v4361_v46  ;;  %v3010_v21 = vmul.f32 -1.442695, %v4358_v52  ;;  %vm1670_vm1 = vweird.f32 %v4234_v7  ;;  %v4391_v61 = vor.u32 1.1754944e-38, %v1676_v10  ;;  %3207 = vrcp.f32 %v4369_v25 }
 0x17c   : > { %6278 = vst [vmem:[#allocation72_spill] sm:$0xff] %v4369_v25  ;;  %v1696_v20 = vmul.f32 %v4371_v57, %v4295_v59  ;;  %v2972_v44 = vmul.f32 -1.442695, %v4242_v14  ;;  %v3200_v42 = vpop.eup %3199  ;;  %3209 = vrcp.f32 %v4374_v11  ;;  %v2969_v26 = vmul.f32 -1.442695, %v4377_v63 }
 0x17d   : > { %6279 = vst [vmem:[#allocation73_spill] sm:$0xff] %v4374_v11  ;;  %v865_v51 = vadd.f32 %v864_v17, %v3741_v54  ;;  %v4407_v4 = vadd.f32 %v3874_v9, %v957_v6  ;;  %v4409_v35 = vpop.eup %3201  ;;  %v2243_v24 = vsel %vm4399_vm2, %v4248_v50, %v2239_v43  ;;  %v1668_v10 = vmul.f32 %v4326_v28, %v1667_v45  ;;  %v919_v6 = vpop.f32.mrf.mxu2 }
 0x17e   : > { %6280 = vst [vmem:[#allocation74_spill] sm:$0xff] %v4377_v63  ;;  %3211 = vrcp.f32 %v4384_v16  ;;  %v959_v29 = vadd.f32 %v958_v0, %v3759_v2  ;;  %v4417_v52 = vpop.eup %3203  ;;  %v4421_v17 = vadd.f32 %v3849_v48, %v918_v23  ;;  %v1004_v55 = vadd.f32 %v1003_v37, %v3858_v58  ;;  %v1006_v45 = vpop.f32.mrf.mxu3 }
 0x17f   : > { %6283 = vst [vmem:[#allocation75_spill] sm:$0xff] %v4409_v35  ;;  %3213 = vpow2.f32 %v3010_v21  ;;  %vm1671_vm3 = vweird.f32 %v4326_v28  ;;  %v1697_v50 = vsub.f32 1.0, %v1696_v20  ;;  %v4425_v43 = vadd.f32 1.0, %v3200_v42  ;;  %v6290_v42 = vld [vmem:[#allocation21_spill] sm:$0xff] }
 0x180   : > { %6284 = vst [vmem:[#allocation76_spill] sm:$0xff] %v4417_v52  ;;  %3215 = vpow2.f32 %v2972_v44  ;;  %v4427_v49 = vpop.eup %3205  ;;  %v2248_v0 = vsel %vm4363_vm15, %v2247_v41, %v2243_v24  ;;  %v4432_v23 = vadd.f32 %v3893_v27, %v865_v51  ;;  %v2974_v21 = vmul.f32 -1.442695, %v4407_v4  ;;  %v6292_v24 = vld [vmem:[#allocation32_spill] sm:$0xff]  ;;  %vm4468_vm6 = vmor %vm1670_vm1, %vm1671_vm3 }
 0x181   : > { %3217 = vpow2.f32 %v2969_v26  ;;  %v4435_v54 = vpop.eup %3207  ;;  %v1669_v58 = vadd.f32 %v4326_v28, %v1668_v10  ;;  %vm4438_vm4 = vcmp.eq.f32.partialorder %v1674_v30, 8.507059e+37  ;;  %v2266_v20 = vmul.f32 %v4417_v52, %v4344_v31 }
 0x182   : > { %6285 = vst [vmem:[#allocation77_spill] sm:$0xff] %v4432_v23  ;;  %vm1700_vm5 = vweird.f32 %v4295_v59  ;;  %v4446_v41 = vadd.f32 %v3880_v13, %v959_v29  ;;  %v4448_v27 = vpop.eup %3209  ;;  %v1704_v3 = vand.u32 2147483647, %v4295_v59  ;;  %v3013_v44 = vmul.f32 -1.442695, %v4421_v17 }
 0x183   : > { %6286 = vst [vmem:[#allocation78_spill] sm:$0xff] %v4435_v54  ;;  %v920_v26 = vadd.f32 %v919_v6, %v6290_v42  ;;  %v4454_v30 = vadd.f32 %v3865_v60, %v1004_v55  ;;  %v4459_v10 = vmul.f32 %v2248_v0, %v6292_v24  ;;  %v1698_v31 = vmul.f32 %v4371_v57, %v1697_v50 }
 0x184   : > { %6289 = vst [vmem:[#allocation79_spill] sm:$0xff] %v4448_v27  ;;  %v4456_v51 = vpop.eup %3211  ;;  %3219 = vrcp.f32 %v4425_v43  ;;  %v868_v29 = vadd.f32 %v867_v33, %v3739_v53  ;;  %v1706_v60 = vand.u32 2147483648, %v4295_v59  ;;  %v2971_v55 = vmul.f32 -1.442695, %v4432_v23 }
 0x185   : > { %6291 = vst [vmem:[#allocation21_spill] sm:$0xff] %v4454_v30  ;;  %v3214_v46 = vpop.eup %3213  ;;  %3221 = vpow2.f32 %v2974_v21  ;;  %v1007_v50 = vadd.f32 %v1006_v45, %v3826_v36  ;;  %v1673_v53 = vsel %vm4468_vm6, %v4326_v28, %v1669_v58  ;;  %v2267_v33 = vsub.f32 1.0, %v2266_v20  ;;  %v4486_v45 = vpop.f32.mrf.mxu0 }
 0x186   : > { %6293 = vst [vmem:[#allocation32_spill] sm:$0xff] %v4459_v10  ;;  %v3216_v0 = vpop.eup %3215  ;;  %vm1701_vm7 = vweird.f32 %v4371_v57  ;;  %v2976_v7 = vmul.f32 -1.442695, %v4446_v41  ;;  %v1726_v10 = vmul.f32 %v4456_v51, %v4384_v16  ;;  %3223 = vpow2.f32 %v3013_v44 }
 0x187   : > { %v3218_v24 = vpop.eup %3217  ;;  %v4483_v18 = vadd.f32 %v6296_v5, %v920_v26  ;;  %v3012_v36 = vmul.f32 -1.442695, %v4454_v30  ;;  %v1699_v21 = vadd.f32 %v4371_v57, %v1698_v31  ;;  %v2296_v28 = vmul.f32 %v4448_v27, %v4374_v11  ;;  %v922_v26 = vpop.f32.mrf.mxu2  ;;  %vm4517_vm9 = vmor %vm1700_vm5, %vm1701_vm7 }
 0x188   : > { %v4491_v58 = vadd.f32 1.0, %v3214_v46  ;;  %v4494_v20 = vadd.f32 %v3874_v9, %v868_v29  ;;  %vm4496_vm8 = vcmp.eq.f32.partialorder %v1704_v3, 8.507059e+37  ;;  %3225 = vpow2.f32 %v2971_v55  ;;  %v1008_v9 = vpop.f32.mrf.mxu3 }
 0x189   : > { %v4500_v44 = vadd.f32 1.0, %v3216_v0  ;;  %v4503_v30 = vadd.f32 %v3849_v48, %v1007_v50  ;;  %v2268_v12 = vmul.f32 %v4417_v52, %v2267_v33  ;;  %v1707_v46 = vor.u32 1.1754944e-38, %v1706_v60  ;;  %v6305_v33 = vld [vmem:[#allocation48_spill] sm:$0xff]  ;;  %v6307_v48 = vld [vmem:[#allocation14_spill] sm:$0xff] }
 0x18a   : > { %6297 = vst [vmem:[#allocation23_spill] sm:$0xff] %v4491_v58  ;;  %v4505_v31 = vpop.eup %3219  ;;  %v4508_v47 = vadd.f32 1.0, %v3218_v24  ;;  %3227 = vpow2.f32 %v2976_v7  ;;  %v1678_v29 = vsel %vm4438_vm4, %v4391_v61, %v1673_v53  ;;  %v1727_v55 = vsub.f32 1.0, %v1726_v10 }
 0x18b   : > { %6298 = vst [vmem:[#allocation80_spill] sm:$0xff] %v4494_v20  ;;  %v3222_v3 = vpop.eup %3221  ;;  %v3015_v60 = vmul.f32 -1.442695, %v4483_v18  ;;  %3229 = vpow2.f32 %v3012_v36  ;;  %v1703_v50 = vsel %vm4517_vm9, %v4371_v57, %v1699_v21  ;;  %v2297_v0 = vsub.f32 1.0, %v2296_v28 }
 0x18c   : > { %6301 = vst [vmem:[#allocation81_spill] sm:$0xff] %v4503_v30  ;;  %3231 = vrcp.f32 %v4491_v58  ;;  %v2973_v61 = vmul.f32 -1.442695, %v4494_v20  ;;  %v3224_v37 = vpop.eup %3223  ;;  %v3014_v53 = vmul.f32 -1.442695, %v4503_v30  ;;  %v1009_v10 = vadd.f32 %v1008_v9, %v6290_v42 }
 0x18d   : > { %6302 = vst [vmem:[#allocation82_spill] sm:$0xff] %v4508_v47  ;;  %3233 = vrcp.f32 %v4500_v44  ;;  %v4532_v7 = vmul.f32 %v1678_v29, %v6305_v33  ;;  %v4536_v57 = vadd.f32 1.0, %v3222_v3  ;;  %v1708_v21 = vsel %vm4496_vm8, %v1707_v46, %v1703_v50  ;;  %v4553_v46 = vpop.f32.mrf.mxu0 }
 0x18e   : > { %3235 = vrcp.f32 %v4508_v47  ;;  %v3226_v36 = vpop.eup %3225  ;;  %v1728_v28 = vmul.f32 %v4456_v51, %v1727_v55  ;;  %v923_v59 = vadd.f32 %v922_v26, %v6307_v48  ;;  %v4543_v42 = vadd.f32 %v4417_v52, %v2268_v12  ;;  %v6311_v12 = vld [vmem:[#allocation53_spill] sm:$0xff] }
 0x18f   : > { %6306 = vst [vmem:[#allocation48_spill] sm:$0xff] %v4532_v7  ;;  %3237 = vpow2.f32 %v3015_v60  ;;  %v2298_v9 = vmul.f32 %v4448_v27, %v2297_v0  ;;  %v1734_v29 = vand.u32 2147483647, %v4384_v16  ;;  %v1736_v33 = vand.u32 2147483648, %v4384_v16 }
 0x190   : > { %v3228_v30 = vpop.eup %3227  ;;  %6308 = vst [vmem:[#allocation14_spill] sm:$0xff] %v4543_v42  ;;  %3239 = vpow2.f32 %v2973_v61  ;;  %v4548_v24 = vadd.f32 1.0, %v3224_v37  ;;  %v4551_v6 = vadd.f32 %v6296_v5, %v1009_v10  ;;  %v4558_v55 = vmul.f32 %v1708_v21, %v6311_v12  ;;  %v6314_v5 = vld [vmem:[#allocation19_spill] sm:$0xff]  ;;  %v961_v42 = vpop.f32.mrf.mxu1 }
 0x191   : > { %v3230_v3 = vpop.eup %3229  ;;  %3241 = vpow2.f32 %v3014_v53  ;;  %vm1730_vm10 = vweird.f32 %v4384_v16  ;;  %v4561_v60 = vadd.f32 1.0, %v3226_v36  ;;  %v1729_v0 = vadd.f32 %v4456_v51, %v1728_v28  ;;  %v924_v53 = vpop.f32.mrf.mxu2 }
 0x192   : > { %6309 = vst [vmem:[#allocation83_spill] sm:$0xff] %v4551_v6  ;;  %v4555_v26 = vpop.eup %3231  ;;  %3243 = vrcp.f32 %v4536_v57  ;;  %vm1731_vm11 = vweird.f32 %v4456_v51  ;;  %v4569_v61 = vadd.f32 %v6314_v5, %v923_v59  ;;  %v4571_v37 = vadd.f32 1.0, %v3228_v30  ;;  %v1011_v11 = vpop.f32.mrf.mxu3 }
 0x193   : > { %6310 = vst [vmem:[#allocation84_spill] sm:$0xff] %v4555_v26  ;;  %v4564_v50 = vpop.eup %3233  ;;  %v4576_v21 = vadd.f32 %v4448_v27, %v2298_v9  ;;  %vm4578_vm12 = vcmp.eq.f32.partialorder %v1734_v29, 8.507059e+37  ;;  %v4582_v12 = vadd.f32 1.0, %v3230_v3  ;;  %v870_v28 = vadd.f32 %v4486_v45, %v3759_v2  ;;  %vm4594_vm13 = vmor %vm1730_vm10, %vm1731_vm11  ;;  %v6322_v3 = vld [vmem:[#allocation15_spill] sm:$0xff] }
 0x194   : > { %6312 = vst [vmem:[#allocation53_spill] sm:$0xff] %v4558_v55  ;;  %v4573_v10 = vpop.eup %3235  ;;  %v1737_v52 = vor.u32 1.1754944e-38, %v1736_v33  ;;  %3245 = vrcp.f32 %v4548_v24  ;;  %v2326_v30 = vmul.f32 %v4555_v26, %v4491_v58  ;;  %v3016_v9 = vmul.f32 -1.442695, %v4551_v6  ;;  %v6323_v55 = vld [vmem:[#allocation8_spill] sm:$0xff] }
 0x195   : > { %6313 = vst [vmem:[#allocation85_spill] sm:$0xff] %v4561_v60  ;;  %v3238_v59 = vpop.eup %3237  ;;  %3247 = vrcp.f32 %v4561_v60  ;;  %v1756_v45 = vmul.f32 %v4564_v50, %v4500_v44  ;;  %v925_v33 = vadd.f32 %v924_v53, %v6322_v3  ;;  %v1733_v27 = vsel %vm4594_vm13, %v4456_v51, %v1729_v0 }
 0x196   : > { %6315 = vst [vmem:[#allocation19_spill] sm:$0xff] %v4573_v10  ;;  %v3017_v16 = vmul.f32 -1.442695, %v4569_v61  ;;  %3249 = vrcp.f32 %v4571_v37  ;;  %v962_v7 = vadd.f32 %v961_v42, %v6323_v55  ;;  %v1766_v22 = vand.u32 2147483648, %v4500_v44 }
 0x197   : > { %6316 = vst [vmem:[#allocation86_spill] sm:$0xff] %v4576_v21  ;;  %v3240_v21 = vpop.eup %3239  ;;  %v4612_v39 = vadd.f32 1.0, %v3238_v59  ;;  %3251 = vrcp.f32 %v4582_v12  ;;  %v4616_v53 = vadd.f32 %v3880_v13, %v870_v28  ;;  %v2327_v1 = vsub.f32 1.0, %v2326_v30  ;;  %v6327_v28 = vld [vmem:[#allocation24_spill] sm:$0xff] }
 0x198   : > { %6319 = vst [vmem:[#allocation87_spill] sm:$0xff] %v4582_v12  ;;  %v3242_v6 = vpop.eup %3241  ;;  %3253 = vpow2.f32 %v3016_v9  ;;  %v1012_v0 = vadd.f32 %v1011_v11, %v6307_v48  ;;  %v1738_v42 = vsel %vm4578_vm12, %v1737_v52, %v1733_v27  ;;  %v1757_v29 = vsub.f32 1.0, %v1756_v45  ;;  %v874_v11 = vpop.f32.mrf.mxu0 }
 0x199   : > { %v4609_v2 = vpop.eup %3243  ;;  %6324 = vst [vmem:[#allocation15_spill] sm:$0xff] %v4616_v53  ;;  %v4622_v40 = vadd.f32 1.0, %v3242_v6  ;;  %v4625_v59 = vadd.f32 %v6326_v19, %v925_v33  ;;  %v4629_v63 = vadd.f32 1.0, %v3240_v21  ;;  %3255 = vpow2.f32 %v3017_v16 }
 0x19a   : > { %v4627_v23 = vpop.eup %3245  ;;  %v1786_v13 = vmul.f32 %v4609_v2, %v4536_v57  ;;  %v4634_v30 = vadd.f32 %v6327_v28, %v962_v7  ;;  %vm1760_vm14 = vweird.f32 %v4500_v44  ;;  %v1764_v52 = vand.u32 2147483647, %v4500_v44 }
 0x19b   : > { %6325 = vst [vmem:[#allocation8_spill] sm:$0xff] %v4622_v40  ;;  %v4636_v48 = vpop.eup %3247  ;;  %v4640_v27 = vor.u32 1.1754944e-38, %v1766_v22  ;;  %3257 = vrcp.f32 %v4612_v39  ;;  %v2975_v6 = vmul.f32 -1.442695, %v4616_v53  ;;  %v4647_v36 = vmul.f32 %v1738_v42, %v4239_v32  ;;  %v963_v32 = vpop.f32.mrf.mxu1 }
 0x19c   : > { %6328 = vst [vmem:[#allocation18_spill] sm:$0xff] %v4636_v48  ;;  %v4644_v21 = vpop.eup %3249  ;;  %v2328_v7 = vmul.f32 %v4555_v26, %v2327_v1  ;;  %v873_v9 = vadd.f32 %v4553_v46, %v6323_v55  ;;  %v4653_v45 = vadd.f32 %v6314_v5, %v1012_v0  ;;  %v1758_v22 = vmul.f32 %v4564_v50, %v1757_v29  ;;  %v6334_v29 = vld [vmem:[#allocation9_spill] sm:$0xff] }
 0x19d   : > { %6329 = vst [vmem:[#allocation24_spill] sm:$0xff] %v4647_v36  ;;  %v4655_v33 = vpop.eup %3251  ;;  %3259 = vrcp.f32 %v4622_v40  ;;  %v3019_v51 = vmul.f32 -1.442695, %v4625_v59  ;;  %v1787_v46 = vsub.f32 1.0, %v1786_v13  ;;  %v2978_v55 = vmul.f32 -1.442695, %v4634_v30 }
 0x19e   : > { %6330 = vst [vmem:[#allocation88_spill] sm:$0xff] %v4653_v45  ;;  %v3254_v42 = vpop.eup %3253  ;;  %3261 = vrcp.f32 %v4629_v63  ;;  %vm1761_vm15 = vweird.f32 %v4564_v50  ;;  %vm4665_vm0 = vcmp.eq.f32.partialorder %v1764_v52, 8.507059e+37  ;;  %v1816_v0 = vmul.f32 %v4644_v21, %v4571_v37 }
 0x19f   : > { %6331 = vst [vmem:[#allocation89_spill] sm:$0xff] %v4655_v33  ;;  %3263 = vpow2.f32 %v2975_v6  ;;  %v875_v16 = vadd.f32 %v874_v11, %v6334_v29  ;;  %v3256_v58 = vpop.eup %3255  ;;  %v1794_v1 = vand.u32 2147483647, %v4536_v57  ;;  %v4674_v36 = vadd.f32 %v6327_v28, %v873_v9  ;;  %vm4704_vm2 = vmor %vm1760_vm14, %vm1761_vm15 }
 0x1a0   : > { %v3018_v13 = vmul.f32 -1.442695, %v4653_v45  ;;  %v964_v54 = vadd.f32 %v963_v32, %v6334_v29  ;;  %v1759_v25 = vadd.f32 %v4564_v50, %v1758_v22  ;;  %v2356_v6 = vmul.f32 %v4655_v33, %v4582_v12  ;;  %v1013_v45 = vpop.f32.mrf.mxu3  ;;  %v6339_v12 = vld [vmem:[#allocation25_spill] sm:$0xff] }
 0x1a1   : > { %6335 = vst [vmem:[#allocation9_spill] sm:$0xff] %v4674_v36  ;;  %v4678_v52 = vpop.eup %3257  ;;  %3265 = vpow2.f32 %v3019_v51  ;;  %v4683_v35 = vadd.f32 1.0, %v3254_v42  ;;  %v4686_v11 = vadd.f32 %v4555_v26, %v2328_v7  ;;  %v1788_v28 = vmul.f32 %v4609_v2, %v1787_v46 }
 0x1a2   : > { %v1796_v9 = vand.u32 2147483648, %v4536_v57  ;;  %3267 = vpow2.f32 %v2978_v55  ;;  %vm1790_vm1 = vweird.f32 %v4536_v57  ;;  %v4693_v22 = vadd.f32 1.0, %v3256_v58  ;;  %v877_v55 = vpop.f32.mrf.mxu0 }
 0x1a3   : > { %6336 = vst [vmem:[#allocation90_spill] sm:$0xff] %v4683_v35  ;;  %v4690_v32 = vpop.eup %3259  ;;  %v1817_v29 = vsub.f32 1.0, %v1816_v0  ;;  %v4696_v51 = vadd.f32 %v6339_v12, %v875_v16  ;;  %vm4708_vm3 = vcmp.eq.f32.partialorder %v1794_v1, 8.507059e+37  ;;  %v2977_v58 = vmul.f32 -1.442695, %v4674_v36 }
 0x1a4   : > { %6337 = vst [vmem:[#allocation91_spill] sm:$0xff] %v4686_v11  ;;  %v4698_v42 = vpop.eup %3261  ;;  %3269 = vpow2.f32 %v3018_v13  ;;  %v4714_v16 = vadd.f32 %v6339_v12, %v964_v54  ;;  %v1763_v44 = vsel %vm4704_vm2, %v4564_v50, %v1759_v25  ;;  %v2357_v11 = vsub.f32 1.0, %v2356_v6  ;;  %v6345_v50 = vld [vmem:[#allocation10_spill] sm:$0xff] }
 0x1a5   : > { %6338 = vst [vmem:[#allocation92_spill] sm:$0xff] %v4690_v32  ;;  %v3264_v0 = vpop.eup %3263  ;;  %3271 = vrcp.f32 %v4683_v35  ;;  %v1014_v1 = vadd.f32 %v1013_v45, %v6322_v3  ;;  %v1789_v26 = vadd.f32 %v4609_v2, %v1788_v28  ;;  %vm1791_vm4 = vweird.f32 %v4609_v2 }
 0x1a6   : > { %6340 = vst [vmem:[#allocation25_spill] sm:$0xff] %v4696_v51  ;;  %v1797_v8 = vor.u32 1.1754944e-38, %v1796_v9  ;;  %v2386_v54 = vmul.f32 %v4690_v32, %v4622_v40  ;;  %3273 = vrcp.f32 %v4693_v22  ;;  %v1818_v13 = vmul.f32 %v4644_v21, %v1817_v29  ;;  %v966_v9 = vpop.f32.mrf.mxu1  ;;  %vm4739_vm5 = vmor %vm1790_vm1, %vm1791_vm4 }
 0x1a7   : > { %v3266_v12 = vpop.eup %3265  ;;  %v2979_v25 = vmul.f32 -1.442695, %v4696_v51  ;;  %v878_v6 = vadd.f32 %v877_v55, %v6345_v50  ;;  %v1768_v3 = vsel %vm4665_vm0, %v4640_v27, %v1763_v44  ;;  %3275 = vpow2.f32 %v2977_v58 }
 0x1a8   : > { %v3268_v7 = vpop.eup %3267  ;;  %v2980_v28 = vmul.f32 -1.442695, %v4714_v16  ;;  %v2358_v53 = vmul.f32 %v4655_v33, %v2357_v11  ;;  %v4744_v5 = vadd.f32 1.0, %v3264_v0  ;;  %v4747_v27 = vadd.f32 %v6326_v19, %v1014_v1  ;;  %v6351_v0 = vld [vmem:[#allocation20_spill] sm:$0xff] }
 0x1a9   : > { %v1793_v11 = vsel %vm4739_vm5, %v4609_v2, %v1789_v26  ;;  %v2387_v44 = vsub.f32 1.0, %v2386_v54  ;;  %vm1821_vm6 = vweird.f32 %v4644_v21  ;;  %v4753_v57 = vadd.f32 1.0, %v3266_v12 }
 0x1aa   : > { %6348 = vst [vmem:[#allocation10_spill] sm:$0xff] %v4744_v5  ;;  %v3270_v58 = vpop.eup %3269  ;;  %v1819_v20 = vadd.f32 %v4644_v21, %v1818_v13  ;;  %v4758_v55 = vadd.f32 1.0, %v3268_v7  ;;  %3277 = vpow2.f32 %v2979_v25  ;;  %v4761_v19 = vadd.f32 %v6351_v0, %v878_v6  ;;  %v879_v7 = vpop.f32.mrf.mxu0 }
 0x1ab   : > { %6349 = vst [vmem:[#allocation93_spill] sm:$0xff] %v4747_v27  ;;  %v4755_v45 = vpop.eup %3271  ;;  %v4764_v1 = vmul.f32 %v1768_v3, %v4242_v14  ;;  %v1824_v26 = vand.u32 2147483647, %v4571_v37  ;;  %v1826_v2 = vand.u32 2147483648, %v4571_v37  ;;  %3279 = vpow2.f32 %v2980_v28 }
 0x1ac   : > { %6350 = vst [vmem:[#allocation94_spill] sm:$0xff] %v4755_v45  ;;  %v4768_v54 = vpop.eup %3273  ;;  %v1798_v12 = vsel %vm4708_vm3, %v1797_v8, %v1793_v11  ;;  %3281 = vrcp.f32 %v4744_v5  ;;  %vm1820_vm7 = vweird.f32 %v4571_v37  ;;  %v3020_v13 = vmul.f32 -1.442695, %v4747_v27 }
 0x1ad   : > { %6352 = vst [vmem:[#allocation20_spill] sm:$0xff] %v4764_v1  ;;  %v3276_v25 = vpop.eup %3275  ;;  %v2388_v14 = vmul.f32 %v4690_v32, %v2387_v44  ;;  %vm4778_vm8 = vmor %vm1820_vm7, %vm1821_vm6  ;;  %3283 = vrcp.f32 %v4753_v57  ;;  %v2416_v8 = vmul.f32 %v4755_v45, %v4683_v35  ;;  %v4785_v46 = vadd.f32 1.0, %v3270_v58 }
 0x1ae   : > { %v4788_v37 = vadd.f32 %v4655_v33, %v2358_v53  ;;  %v1823_v3 = vsel %vm4778_vm8, %v4644_v21, %v1819_v20  ;;  %3285 = vrcp.f32 %v4758_v55  ;;  %v2981_v28 = vmul.f32 -1.442695, %v4761_v19  ;;  %v6358_v53 = vld [vmem:[#allocation11_spill] sm:$0xff] }
 0x1af   : > { %6355 = vst [vmem:[#allocation95_spill] sm:$0xff] %v4785_v46  ;;  %v4796_v29 = vmul.f32 %v1798_v12, %v4407_v4  ;;  %vm1825_vm9 = vcmp.eq.f32.partialorder %v1824_v26, 8.507059e+37  ;;  %v1827_v11 = vor.u32 1.1754944e-38, %v1826_v2  ;;  %v967_v58 = vadd.f32 %v966_v9, %v6345_v50  ;;  %v968_v26 = vpop.f32.mrf.mxu1  ;;  %v6362_v50 = vld [vmem:[#allocation22_spill] sm:$0xff] }
 0x1b0   : > { %6356 = vst [vmem:[#allocation96_spill] sm:$0xff] %v4788_v37  ;;  %v3278_v44 = vpop.eup %3277  ;;  %v4799_v27 = vadd.f32 1.0, %v3276_v25  ;;  %3287 = vpow2.f32 %v3020_v13  ;;  %v880_v37 = vadd.f32 %v879_v7, %v6358_v53  ;;  %v2431_v20 = vmul.f32 %v4768_v54, %v4693_v22 }
 0x1b1   : > { %6357 = vst [vmem:[#allocation97_spill] sm:$0xff] %v4796_v29  ;;  %v3280_v21 = vpop.eup %3279  ;;  %v4805_v6 = vadd.f32 %v4690_v32, %v2388_v14  ;;  %v1828_v40 = vsel %vm1825_vm9, %v1827_v11, %v1823_v3  ;;  %v2417_v4 = vsub.f32 1.0, %v2416_v8  ;;  %3289 = vrcp.f32 %v4785_v46 }
 0x1b2   : > { %v4808_v2 = vpop.eup %3281  ;;  %v1856_v12 = vand.u32 2147483648, %v4758_v55  ;;  %3291 = vpow2.f32 %v2981_v28  ;;  %vm2420_vm10 = vweird.f32 %v4683_v35  ;;  %v2456_v25 = vand.u32 2147483648, %v4785_v46 }
 0x1b3   : > { %6359 = vst [vmem:[#allocation11_spill] sm:$0xff] %v4805_v6  ;;  %v4813_v13 = vpop.eup %3283  ;;  %v4817_v14 = vadd.f32 1.0, %v3278_v44  ;;  %v4820_v8 = vadd.f32 %v6351_v0, %v967_v58  ;;  %v2432_v7 = vsub.f32 1.0, %v2431_v20  ;;  %v4825_v11 = vmul.f32 %v1828_v40, %v4446_v41 }
 0x1b4   : > { %6360 = vst [vmem:[#allocation98_spill] sm:$0xff] %v4808_v2  ;;  %v4822_v3 = vpop.eup %3285  ;;  %3293 = vrcp.f32 %v4799_v27  ;;  %v4828_v28 = vadd.f32 1.0, %v3280_v21  ;;  %v4831_v9 = vadd.f32 %v6362_v50, %v880_v37  ;;  %v2418_v6 = vmul.f32 %v4755_v45, %v2417_v4 }
 0x1b5   : > { %6361 = vst [vmem:[#allocation99_spill] sm:$0xff] %v4825_v11  ;;  %vm2421_vm11 = vweird.f32 %v4755_v45  ;;  %v969_v0 = vadd.f32 %v968_v26, %v6358_v53  ;;  %v2433_v58 = vmul.f32 %v4768_v54, %v2432_v7  ;;  %v4838_v40 = vor.u32 1.1754944e-38, %v1856_v12 }
 0x1b6   : > { %v3288_v44 = vpop.eup %3287  ;;  %v2461_v21 = vmul.f32 %v4813_v13, %v4753_v57  ;;  %v1846_v4 = vmul.f32 %v4822_v3, %v4758_v55  ;;  %v4847_v33 = vor.u32 1.1754944e-38, %v2456_v25  ;;  %3295 = vrcp.f32 %v4817_v14  ;;  %vm4879_vm15 = vmor %vm2420_vm10, %vm2421_vm11 }
 0x1b7   : > { %v4843_v37 = vpop.eup %3289  ;;  %v2982_v53 = vmul.f32 -1.442695, %v4820_v8  ;;  %3297 = vrcp.f32 %v4828_v28  ;;  %v1886_v12 = vand.u32 2147483648, %v4828_v28  ;;  %v2434_v7 = vadd.f32 %v4768_v54, %v2433_v58 }
 0x1b8   : > { %6363 = vst [vmem:[#allocation22_spill] sm:$0xff] %v4843_v37  ;;  %v3292_v26 = vpop.eup %3291  ;;  %vm2436_vm12 = vweird.f32 %v4768_v54  ;;  %v4856_v41 = vadd.f32 %v4755_v45, %v2418_v6  ;;  %v4858_v20 = vadd.f32 1.0, %v3288_v44  ;;  %v2441_v25 = vand.u32 2147483648, %v4693_v22  ;;  %v971_v6 = vpop.f32.mrf.mxu1 }
 0x1b9   : > { %6364 = vst [vmem:[#allocation100_spill] sm:$0xff] %v4847_v33  ;;  %v2462_v33 = vsub.f32 1.0, %v2461_v21  ;;  %v2446_v29 = vmul.f32 %v4843_v37, %v4785_v46  ;;  %vm2435_vm13 = vweird.f32 %v4693_v22  ;;  %v2439_v58 = vand.u32 2147483647, %v4693_v22 }
 0x1ba   : > { %6365 = vst [vmem:[#allocation101_spill] sm:$0xff] %v4856_v41  ;;  %v4861_v11 = vpop.eup %3293  ;;  %v1847_v1 = vsub.f32 1.0, %v1846_v4  ;;  %v4868_v48 = vadd.f32 1.0, %v3292_v26  ;;  %3299 = vpow2.f32 %v2982_v53  ;;  %vm4870_vm14 = vmor %vm2435_vm13, %vm2436_vm12  ;;  %v6368_v32 = vmov 0  ;;  %v882_v41 = vpop.f32.mrf.mxu0 }
 0x1bb   : > { %v2463_v21 = vmul.f32 %v4813_v13, %v2462_v33  ;;  %v6369_v32 = vsel %vm4879_vm15, 4294967295, %v6368_v32  ;;  %v2438_v22 = vsel %vm4870_vm14, %v4768_v54, %v2434_v7  ;;  %vm2466_vm0 = vweird.f32 %v4813_v13 }
 0x1bc   : > { %6370 = vst [vmem:[#allocation102_spill] sm:$0xff] %v6369_v32  ;;  %v2469_v4 = vand.u32 2147483647, %v4753_v57  ;;  %v2471_v53 = vand.u32 2147483648, %v4753_v57  ;;  %v4889_v26 = vpop.eup %3295  ;;  %v4895_v35 = vor.u32 1.1754944e-38, %v1886_v12  ;;  %3301 = vrcp.f32 %v4858_v20 }
 0x1bd   : > { %v2442_v60 = vor.u32 1.1754944e-38, %v2441_v25  ;;  %v4898_v44 = vpop.eup %3297  ;;  %vm1851_vm1 = vweird.f32 %v4822_v3  ;;  %v2447_v54 = vsub.f32 1.0, %v2446_v29  ;;  %vm2440_vm2 = vcmp.eq.f32.partialorder %v2439_v58, 8.507059e+37 }
 0x1be   : > { %v2464_v7 = vadd.f32 %v4813_v13, %v2463_v21  ;;  %vm2465_vm3 = vweird.f32 %v4753_v57  ;;  %v1848_v10 = vmul.f32 %v4822_v3, %v1847_v1  ;;  %v2486_v32 = vand.u32 2147483648, %v4858_v20 }
 0x1bf   : > { %v2443_v33 = vsel %vm2440_vm2, %v2442_v60, %v2438_v22  ;;  %vm2467_vm4 = vmor %vm2465_vm3, %vm2466_vm0  ;;  %v2472_v12 = vor.u32 1.1754944e-38, %v2471_v53  ;;  %vm1850_vm5 = vweird.f32 %v4758_v55  ;;  %vm2470_vm6 = vcmp.eq.f32.partialorder %v2469_v4, 8.507059e+37 }
 0x1c0   : > { %v2468_v29 = vsel %vm2467_vm4, %v4813_v13, %v2464_v7  ;;  %v2371_v57 = vmul.f32 %v4627_v23, %v4548_v24  ;;  %v3300_v58 = vpop.eup %3299  ;;  %3303 = vrcp.f32 %v4868_v48  ;;  %v2983_v60 = vmul.f32 -1.442695, %v4831_v9  ;;  %vm4956_vm13 = vmor %vm1850_vm5, %vm1851_vm1 }
 0x1c1   : > { %v4915_v1 = vadd.f32 %v6362_v50, %v969_v0  ;;  %v2473_v21 = vsel %vm2470_vm6, %v2472_v12, %v2468_v29  ;;  %v2550_v22 = vmul.f32 %v2443_v33, %v4569_v61  ;;  %v2401_v13 = vmul.f32 %v4678_v52, %v4612_v39 }
 0x1c2   : > { %v2552_v53 = vmul.f32 %v2473_v21, %v4625_v59  ;;  %v2372_v25 = vsub.f32 1.0, %v2371_v57  ;;  %v4921_v4 = vpop.eup %3301  ;;  %v1849_v7 = vadd.f32 %v4822_v3, %v1848_v10  ;;  %v2448_v45 = vmul.f32 %v4843_v37, %v2447_v54  ;;  %v973_v54 = vpop.f32.mrf.mxu1 }
 0x1c3   : > { %v1876_v47 = vmul.f32 %v4898_v44, %v4828_v28  ;;  %v4927_v50 = vor.u32 1.1754944e-38, %v2486_v32  ;;  %v4929_v0 = vadd.f32 1.0, %v3300_v58  ;;  %v2379_v59 = vand.u32 2147483647, %v4548_v24  ;;  %v6374_v58 = vld [vmem:[#allocation12_spill] sm:$0xff] }
 0x1c4   : > { %v2587_v61 = vpack.c.bf16 %v2552_v53, %v2550_v22  ;;  %v2381_v33 = vand.u32 2147483648, %v4548_v24  ;;  %v6371_v12 = vand.u32 2147483647, %v4758_v55  ;;  %3305 = vpow2.f32 %v2983_v60 }
 0x1c5   : > { %v2373_v10 = vmul.f32 %v4627_v23, %v2372_v25  ;;  %vm2376_vm8 = vweird.f32 %v4627_v23  ;;  %v2402_v32 = vsub.f32 1.0, %v2401_v13  ;;  %v2984_v57 = vmul.f32 -1.442695, %v4915_v1 }
 0x1c6   : > { %vm4935_vm7 = vcmp.eq.f32.partialorder %v6371_v12, 8.507059e+37  ;;  %v972_v21 = vadd.f32 %v971_v6, %v6374_v58  ;;  %2642 = vmatpush.bf16.msrb.mxu3 %v2587_v61  ;;  %vm2375_vm9 = vweird.f32 %v4548_v24  ;;  %v2411_v22 = vand.u32 2147483648, %v4612_v39  ;;  %v4945_v53 = vpop.eup %3303  ;;  %v6375_v6 = vld [vmem:[#allocation13_spill] sm:$0xff] }
 0x1c7   : > { %v2374_v12 = vadd.f32 %v4627_v23, %v2373_v10  ;;  %v2403_v60 = vmul.f32 %v4678_v52, %v2402_v32  ;;  %vm2406_vm10 = vweird.f32 %v4678_v52  ;;  %v2409_v25 = vand.u32 2147483647, %v4612_v39  ;;  %vm2377_vm11 = vmor %vm2375_vm9, %vm2376_vm8 }
 0x1c8   : > { %v1877_v13 = vsub.f32 1.0, %v1876_v47  ;;  %vm2380_vm12 = vcmp.eq.f32.partialorder %v2379_v59, 8.507059e+37  ;;  %v2382_v51 = vor.u32 1.1754944e-38, %v2381_v33  ;;  %v974_v61 = vadd.f32 %v973_v54, %v6375_v6  ;;  %v4965_v59 = vpop.permute.xlu2 %639  ;;  %v6378_v54 = vld [vmem:[#allocation16_spill] sm:$0xff] }
 0x1c9   : > { %v2378_v10 = vsel %vm2377_vm11, %v4627_v23, %v2374_v12  ;;  %v2404_v32 = vadd.f32 %v4678_v52, %v2403_v60  ;;  %vm2405_vm14 = vweird.f32 %v4612_v39  ;;  %v2311_v47 = vmul.f32 %v4427_v49, %v4355_v34  ;;  %v884_v23 = vpop.f32.mrf.mxu0 }
 0x1ca   : > { %v883_v33 = vadd.f32 %v882_v41, %v6374_v58  ;;  %v4969_v36 = vadd.f32 %v6378_v54, %v972_v21  ;;  %v2383_v55 = vsel %vm2380_vm12, %v2382_v51, %v2378_v10  ;;  %vm2407_vm0 = vmor %vm2405_vm14, %vm2406_vm10  ;;  %v2412_v2 = vor.u32 1.1754944e-38, %v2411_v22  ;;  %v4973_v12 = vpop.eup %3305  ;;  %v6380_v21 = vld [vmem:[#allocation17_spill] sm:$0xff] }
 0x1cb   : > { %v1853_v39 = vsel %vm4956_vm13, %v4822_v3, %v1849_v7  ;;  %v2408_v60 = vsel %vm2407_vm0, %v4678_v52, %v2404_v32  ;;  %vm2410_vm1 = vcmp.eq.f32.partialorder %v2409_v25, 8.507059e+37  ;;  %v2312_v5 = vsub.f32 1.0, %v2311_v47  ;;  %v6382_v47 = vld [vmem:[#allocation55_spill] sm:$0xff] }
 0x1cc   : > { %v4980_v41 = vadd.f32 %v4843_v37, %v2448_v45  ;;  %v4984_v51 = vmul.f32 %v4921_v4, %v4858_v20  ;;  %v2413_v58 = vsel %vm2410_vm1, %v2412_v2, %v2408_v60  ;;  %v4987_v22 = vadd.f32 %v6380_v21, %v974_v61 }
 0x1cd   : > { %3307 = vrcp.f32 %v4929_v0  ;;  %v2546_v24 = vmul.f32 %v2383_v55, %v4421_v17  ;;  %v2548_v3 = vmul.f32 %v2413_v58, %v4483_v18  ;;  %v2313_v52 = vmul.f32 %v4427_v49, %v2312_v5 }
 0x1ce   : > { %6379 = vst [vmem:[#allocation12_spill] sm:$0xff] %v4980_v41  ;;  %v4996_v45 = vsel %vm4935_vm7, %v4838_v40, %v1853_v39  ;;  %v4999_v7 = vadd.f32 %v6378_v54, %v883_v33  ;;  %v2986_v2 = vmul.f32 -1.442695, %v4969_v36  ;;  %v2341_v25 = vmul.f32 %v4505_v31, %v4425_v43 }
 0x1cf   : > { %v5005_v61 = vmul.f32 %v4898_v44, %v1877_v13  ;;  %v2585_v17 = vpack.c.bf16 %v2548_v3, %v2546_v24  ;;  %v2314_v18 = vadd.f32 %v4427_v49, %v2313_v52  ;;  %vm2316_vm2 = vweird.f32 %v4427_v49  ;;  %v6381_v13 = vld [vmem:[#allocation46_spill] sm:$0xff] }
 0x1d0   : > { %3309 = vpow2.f32 %v2984_v57  ;;  %v2988_v5 = vmul.f32 -1.442695, %v4987_v22  ;;  %v2321_v40 = vand.u32 2147483648, %v4355_v34  ;;  %v2342_v29 = vsub.f32 1.0, %v2341_v25  ;;  %v5031_v3 = vpop.permute.xlu2 %1142 }
 0x1d1   : > { %v2477_v10 = vsub.f32 1.0, %v4984_v51  ;;  %2643 = vmatpush.bf16.msrb.mxu3 %v2585_v17  ;;  %vm2315_vm3 = vweird.f32 %v4355_v34  ;;  %v2319_v32 = vand.u32 2147483647, %v4355_v34  ;;  %v2251_v33 = vmul.f32 %v6382_v47, %v6381_v13  ;;  %v5035_v25 = vpop.f32.mrf.mxu0 }
 0x1d2   : > { %v2985_v54 = vmul.f32 -1.442695, %v4999_v7  ;;  %3311 = vpow2.f32 %v2986_v2  ;;  %vm5017_vm4 = vmor %vm2315_vm3, %vm2316_vm2  ;;  %v2343_v55 = vmul.f32 %v4505_v31, %v2342_v29  ;;  %v2351_v39 = vand.u32 2147483648, %v4425_v43 }
 0x1d3   : > { %v5023_v60 = vpop.eup %3307  ;;  %vm2451_vm5 = vweird.f32 %v4843_v37  ;;  %v2318_v34 = vsel %vm5017_vm4, %v4427_v49, %v2314_v18  ;;  %vm2346_vm6 = vweird.f32 %v4505_v31  ;;  %v2349_v58 = vand.u32 2147483647, %v4425_v43 }
 0x1d4   : > { %v2252_v24 = vsub.f32 1.0, %v2251_v33  ;;  %3313 = vpow2.f32 %v2988_v5  ;;  %v2322_v52 = vor.u32 1.1754944e-38, %v2321_v40  ;;  %v2344_v2 = vadd.f32 %v4505_v31, %v2343_v55 }
 0x1d5   : > { %vm2345_vm7 = vweird.f32 %v4425_v43  ;;  %vm2450_vm8 = vweird.f32 %v4785_v46  ;;  %vm2320_vm9 = vcmp.eq.f32.partialorder %v2319_v32, 8.507059e+37  ;;  %vm2256_vm10 = vweird.f32 %v6382_v47 }
 0x1d6   : > { %v2253_v49 = vmul.f32 %v6382_v47, %v2252_v24  ;;  %v2281_v17 = vmul.f32 %v4380_v15, %v4305_v56  ;;  %v3310_v18 = vpop.eup %3309  ;;  %v885_v5 = vadd.f32 %v884_v23, %v6375_v6  ;;  %v2323_v40 = vsel %vm2320_vm9, %v2322_v52, %v2318_v34  ;;  %vm2347_vm11 = vmor %vm2345_vm7, %vm2346_vm6 }
 0x1d7   : > { %v2352_v43 = vor.u32 1.1754944e-38, %v2351_v39  ;;  %vm2255_vm12 = vweird.f32 %v6381_v13  ;;  %v2348_v29 = vsel %vm2347_vm11, %v4505_v31, %v2344_v2  ;;  %vm2350_vm13 = vcmp.eq.f32.partialorder %v2349_v58, 8.507059e+37  ;;  %vm5091_vm7 = vmor %vm2450_vm8, %vm2451_vm5 }
 0x1d8   : > { %v2254_v32 = vadd.f32 %v6382_v47, %v2253_v49  ;;  %v2261_v33 = vand.u32 2147483648, %v6381_v13  ;;  %v3312_v57 = vpop.eup %3311  ;;  %vm1881_vm14 = vweird.f32 %v4898_v44  ;;  %3315 = vpow2.f32 %v2985_v54  ;;  %vm5052_vm0 = vmor %vm2255_vm12, %vm2256_vm10 }
 0x1d9   : > { %v2353_v55 = vsel %vm2350_vm13, %v2352_v43, %v2348_v29  ;;  %v2259_v23 = vand.u32 2147483647, %v6381_v13  ;;  %v2282_v39 = vsub.f32 1.0, %v2281_v17  ;;  %v5057_v31 = vadd.f32 1.0, %v3310_v18  ;;  %v5074_v18 = vpop.f32.mrf.mxu1  ;;  %v6388_v43 = vld [vmem:[#allocation44_spill] sm:$0xff] }
 0x1da   : > { %v2542_v34 = vmul.f32 %v2323_v40, %v4203_v38  ;;  %v2544_v58 = vmul.f32 %v2353_v55, %v4298_v62  ;;  %v2258_v54 = vsel %vm5052_vm0, %v6382_v47, %v2254_v32  ;;  %v3314_v24 = vpop.eup %3313  ;;  %vm1880_vm1 = vweird.f32 %v4828_v28  ;;  %v6387_v40 = vld [vmem:[#allocation38_spill] sm:$0xff] }
 0x1db   : > { %v2283_v52 = vmul.f32 %v4380_v15, %v2282_v39  ;;  %vm2286_vm2 = vweird.f32 %v4380_v15  ;;  %v2289_v13 = vand.u32 2147483647, %v4305_v56  ;;  %v2291_v2 = vand.u32 2147483648, %v4305_v56  ;;  %v5098_v39 = vpop.f32.mrf.mxu0  ;;  %vm5136_vm11 = vmor %vm1880_vm1, %vm1881_vm14 }
 0x1dc   : > { %v5069_v49 = vadd.f32 1.0, %v3312_v57  ;;  %v5072_v38 = vadd.f32 %v6380_v21, %v885_v5  ;;  %v2583_v62 = vpack.c.bf16 %v2544_v58, %v2542_v34  ;;  %v2262_v17 = vor.u32 1.1754944e-38, %v2261_v33  ;;  %v5085_v57 = vpop.permute.xlu2 %629 }
 0x1dd   : > { %vm2260_vm3 = vcmp.eq.f32.partialorder %v2259_v23, 8.507059e+37  ;;  %v2284_v47 = vadd.f32 %v4380_v15, %v2283_v52  ;;  %vm2285_vm4 = vweird.f32 %v4305_v56  ;;  %v2191_v29 = vmul.f32 %v6388_v43, %v6387_v40  ;;  %v6392_v52 = vld [vmem:[#allocation37_spill] sm:$0xff] }
 0x1de   : > { %v1906_v32 = vmul.f32 %v5023_v60, %v4929_v0  ;;  %3317 = vrcp.f32 %v5057_v31  ;;  %2644 = vmatpush.bf16.msrb.mxu3 %v2583_v62  ;;  %v2263_v21 = vsel %vm2260_vm3, %v2262_v17, %v2258_v54  ;;  %vm2287_vm6 = vmor %vm2285_vm4, %vm2286_vm2  ;;  %v2292_v5 = vor.u32 1.1754944e-38, %v2291_v2  ;;  %v3316_v33 = vpop.eup %3315 }
 0x1df   : > { %v6389_v56 = vmov 0  ;;  %v5095_v55 = vadd.f32 1.0, %v3314_v24  ;;  %v2288_v6 = vsel %vm2287_vm6, %v4380_v15, %v2284_v47  ;;  %vm2290_vm9 = vcmp.eq.f32.partialorder %v2289_v13, 8.507059e+37  ;;  %v6393_v15 = vld [vmem:[#allocation47_spill] sm:$0xff] }
 0x1e0   : > { %v6390_v56 = vsel %vm5091_vm7, 4294967295, %v6389_v56  ;;  %v2192_v23 = vsub.f32 1.0, %v2191_v29  ;;  %v1879_v58 = vadd.f32 %v4898_v44, %v5005_v61  ;;  %3319 = vrcp.f32 %v5069_v49 }
 0x1e1   : > { %6391 = vst [vmem:[#allocation13_spill] sm:$0xff] %v6390_v56  ;;  %v2293_v54 = vsel %vm2290_vm9, %v2292_v5, %v2288_v6  ;;  %v2987_v24 = vmul.f32 -1.442695, %v5072_v38  ;;  %v2538_v2 = vmul.f32 %v2263_v21, %v6392_v52  ;;  %v5113_v17 = vmul.f32 %v4996_v45, %v4634_v30  ;;  %v6398_v5 = vld [vmem:[#allocation41_spill] sm:$0xff] }
 0x1e2   : > { %v2540_v13 = vmul.f32 %v2293_v54, %v6393_v15  ;;  %v2193_v62 = vmul.f32 %v6388_v43, %v2192_v23  ;;  %v6395_v47 = vand.u32 2147483647, %v4828_v28  ;;  %v2478_v61 = vmul.f32 %v4921_v4, %v2477_v10  ;;  %v6399_v6 = vld [vmem:[#allocation45_spill] sm:$0xff] }
 0x1e3   : > { %6394 = vst [vmem:[#allocation16_spill] sm:$0xff] %v5113_v17  ;;  %vm2481_vm8 = vweird.f32 %v4921_v4  ;;  %v1907_v21 = vsub.f32 1.0, %v1906_v32  ;;  %v2221_v23 = vmul.f32 %v6399_v6, %v6398_v5  ;;  %3321 = vrcp.f32 %v5095_v55 }
 0x1e4   : > { %vm5117_vm5 = vcmp.eq.f32.partialorder %v6395_v47, 8.507059e+37  ;;  %v2581_v30 = vpack.c.bf16 %v2540_v13, %v2538_v2  ;;  %v2194_v45 = vadd.f32 %v6388_v43, %v2193_v62  ;;  %vm2196_vm10 = vweird.f32 %v6388_v43  ;;  %v5130_v54 = vpop.eup %3317  ;;  %v6402_v62 = vld [vmem:[#allocation33_spill] sm:$0xff]  ;;  %v1133_v41 = vpop.permute.xlu2 %1132 }
 0x1e5   : > { %vm2480_vm12 = vweird.f32 %v4858_v20  ;;  %v1914_v10 = vand.u32 2147483647, %v4929_v0  ;;  %v5142_v32 = vadd.f32 1.0, %v3316_v33  ;;  %v2201_v52 = vand.u32 2147483648, %v6387_v40 }
 0x1e6   : > { %v2222_v2 = vsub.f32 1.0, %v2221_v23  ;;  %v1883_v15 = vsel %vm5136_vm11, %v4898_v44, %v1879_v58  ;;  %3323 = vpow2.f32 %v2987_v24  ;;  %2645 = vmatpush.bf16.msrb.mxu3 %v2581_v30  ;;  %vm2195_vm13 = vweird.f32 %v6387_v40  ;;  %v5150_v13 = vpop.eup %3319  ;;  %v5163_v58 = vpop.f32.mrf.mxu1  ;;  %vm5209_vm11 = vmor %vm2480_vm12, %vm2481_vm8 }
 0x1e7   : > { %v2199_v28 = vand.u32 2147483647, %v6387_v40  ;;  %v888_v47 = vadd.f32 %v5035_v25, %v6402_v62  ;;  %vm5156_vm14 = vmor %vm2195_vm13, %vm2196_vm10  ;;  %vm2226_vm0 = vweird.f32 %v6399_v6  ;;  %v2231_v44 = vand.u32 2147483648, %v6398_v5 }
 0x1e8   : > { %v2223_v23 = vmul.f32 %v6399_v6, %v2222_v2  ;;  %v2479_v40 = vadd.f32 %v4921_v4, %v2478_v61  ;;  %v1908_v24 = vmul.f32 %v5023_v60, %v1907_v21  ;;  %vm1910_vm1 = vweird.f32 %v4929_v0 }
 0x1e9   : > { %v2198_v25 = vsel %vm5156_vm14, %v6388_v43, %v2194_v45  ;;  %v2229_v30 = vand.u32 2147483647, %v6398_v5  ;;  %v6405_v51 = vand.u32 2147483647, %v4858_v20  ;;  %3325 = vrcp.f32 %v5142_v32  ;;  %v5181_v21 = vpop.eup %3321 }
 0x1ea   : > { %v2202_v34 = vor.u32 1.1754944e-38, %v2201_v52  ;;  %v2224_v61 = vadd.f32 %v6399_v6, %v2223_v23  ;;  %vm2225_vm3 = vweird.f32 %v6398_v5  ;;  %v1936_v43 = vmul.f32 %v5130_v54, %v5057_v31  ;;  %v892_v52 = vpop.f32.mrf.mxu0 }
 0x1eb   : > { %vm5174_vm2 = vcmp.eq.f32.partialorder %v6405_v51, 8.507059e+37  ;;  %v1966_v45 = vmul.f32 %v5150_v13, %v5069_v49  ;;  %v977_v33 = vadd.f32 %v5074_v18, %v6402_v62  ;;  %vm2200_vm4 = vcmp.eq.f32.partialorder %v2199_v28, 8.507059e+37  ;;  %vm2227_vm6 = vmor %vm2225_vm3, %vm2226_vm0  ;;  %v6411_v62 = vld [vmem:[#allocation35_spill] sm:$0xff] }
 0x1ec   : > { %v5191_v23 = vadd.f32 %v1133_v41, %v888_v47  ;;  %v2203_v5 = vsel %vm2200_vm4, %v2202_v34, %v2198_v25  ;;  %v2228_v51 = vsel %vm2227_vm6, %v6399_v6, %v2224_v61  ;;  %v2232_v37 = vor.u32 1.1754944e-38, %v2231_v44  ;;  %v3324_v56 = vpop.eup %3323 }
 0x1ed   : > { %v1888_v46 = vsel %vm5117_vm5, %v4895_v35, %v1883_v15  ;;  %v1916_v17 = vand.u32 2147483648, %v4929_v0  ;;  %v5199_v18 = vadd.f32 1.0, %v4973_v12  ;;  %vm2230_vm9 = vcmp.eq.f32.partialorder %v2229_v30, 8.507059e+37  ;;  %v6410_v12 = vld [vmem:[#allocation34_spill] sm:$0xff] }
 0x1ee   : > { %v1909_v28 = vadd.f32 %v5023_v60, %v1908_v24  ;;  %vm1911_vm10 = vweird.f32 %v5023_v60  ;;  %v1996_v34 = vmul.f32 %v5181_v21, %v5095_v55  ;;  %v2233_v6 = vsel %vm2230_vm9, %v2232_v37, %v2228_v51  ;;  %v5231_v51 = vpop.permute.xlu0 %1137 }
 0x1ef   : > { %v5213_v29 = vadd.f32 %v1133_v41, %v977_v33  ;;  %v2534_v15 = vmul.f32 %v2203_v5, %v6410_v12  ;;  %v2536_v47 = vmul.f32 %v2233_v6, %v6411_v62  ;;  %v890_v44 = vadd.f32 %v5098_v39, %v5085_v57  ;;  %v5219_v24 = vpop.eup %3325  ;;  %vm5240_vm8 = vmor %vm1910_vm1, %vm1911_vm10 }
 0x1f0   : > { %v2483_v37 = vsel %vm5209_vm11, %v4921_v4, %v2479_v40  ;;  %v1937_v20 = vsub.f32 1.0, %v1936_v43  ;;  %v1967_v25 = vsub.f32 1.0, %v1966_v45  ;;  %v2989_v30 = vmul.f32 -1.442695, %v5191_v23 }
 0x1f1   : > { %vm5225_vm5 = vcmp.eq.f32.partialorder %v1914_v10, 8.507059e+37  ;;  %v1917_v61 = vor.u32 1.1754944e-38, %v1916_v17  ;;  %v5229_v33 = vadd.f32 1.0, %v3324_v56  ;;  %v2579_v5 = vpack.c.bf16 %v2536_v47, %v2534_v15  ;;  %v981_v10 = vpop.f32.mrf.mxu1 }
 0x1f2   : > { %v5234_v39 = vmul.f32 %v1888_v46, %v4714_v16  ;;  %3327 = vrcp.f32 %v5199_v18  ;;  %v1946_v17 = vand.u32 2147483648, %v5057_v31  ;;  %v1997_v56 = vsub.f32 1.0, %v1996_v34  ;;  %v6416_v34 = vld [vmem:[#allocation29_spill] sm:$0xff] }
 0x1f3   : > { %v5249_v40 = vsel %vm5174_vm2, %v4927_v50, %v2483_v37  ;;  %v1913_v16 = vsel %vm5240_vm8, %v5023_v60, %v1909_v28  ;;  %v2990_v46 = vmul.f32 -1.442695, %v5213_v29  ;;  %2646 = vmatpush.bf16.msrb.mxu3 %v2579_v5  ;;  %v5256_v0 = vadd.f32 %v5231_v51, %v890_v44  ;;  %v894_v60 = vpop.f32.mrf.mxu0 }
 0x1f4   : > { %v1938_v43 = vmul.f32 %v5130_v54, %v1937_v20  ;;  %v1968_v45 = vmul.f32 %v5150_v13, %v1967_v25  ;;  %3329 = vpow2.f32 %v2989_v30  ;;  %v893_v6 = vadd.f32 %v892_v52, %v6416_v34 }
 0x1f5   : > { %vm1940_vm12 = vweird.f32 %v5057_v31  ;;  %v1944_v50 = vand.u32 2147483647, %v5057_v31  ;;  %3331 = vrcp.f32 %v5229_v33  ;;  %v1951_v2 = vmul.f32 %v5219_v24, %v5142_v32 }
 0x1f6   : > { %v1918_v28 = vsel %vm5225_vm5, %v1917_v61, %v1913_v16  ;;  %vm1941_vm13 = vweird.f32 %v5130_v54  ;;  %v5269_v35 = vor.u32 1.1754944e-38, %v1946_v17  ;;  %v1998_v12 = vmul.f32 %v5181_v21, %v1997_v56 }
 0x1f7   : > { %3333 = vpow2.f32 %v2990_v46  ;;  %v2991_v52 = vmul.f32 -1.442695, %v5256_v0  ;;  %v982_v15 = vadd.f32 %v981_v10, %v6416_v34  ;;  %v1952_v62 = vsub.f32 1.0, %v1951_v2  ;;  %vm5296_vm1 = vmor %vm1940_vm12, %vm1941_vm13 }
 0x1f8   : > { %v5274_v47 = vpop.eup %3327  ;;  %v5277_v44 = vadd.f32 %v5130_v54, %v1938_v43  ;;  %v5280_v37 = vadd.f32 %v5150_v13, %v1968_v45  ;;  %vm1971_vm14 = vweird.f32 %v5150_v13  ;;  %v5284_v20 = vadd.f32 %v5031_v3, %v893_v6 }
 0x1f9   : > { %v5287_v25 = vmul.f32 %v1918_v28, %v4820_v8  ;;  %vm1970_vm0 = vweird.f32 %v5069_v49  ;;  %v2004_v30 = vand.u32 2147483647, %v5095_v55  ;;  %v1953_v41 = vmul.f32 %v5219_v24, %v1952_v62  ;;  %v983_v45 = vpop.f32.mrf.mxu1 }
 0x1fa   : > { %v3330_v61 = vpop.eup %3329  ;;  %v5301_v4 = vadd.f32 %v5181_v21, %v1998_v12  ;;  %vm2001_vm2 = vweird.f32 %v5181_v21  ;;  %v2006_v8 = vand.u32 2147483648, %v5095_v55  ;;  %v979_v17 = vadd.f32 %v5163_v58, %v5085_v57  ;;  %vm5309_vm3 = vmor %vm1970_vm0, %vm1971_vm14 }
 0x1fb   : > { %v5307_v56 = vpop.eup %3331  ;;  %v1974_v31 = vand.u32 2147483647, %v5069_v49  ;;  %3335 = vpow2.f32 %v2991_v52  ;;  %v5316_v46 = vadd.f32 %v5031_v3, %v982_v15  ;;  %vm2000_vm4 = vweird.f32 %v5095_v55 }
 0x1fc   : > { %v2993_v58 = vmul.f32 -1.442695, %v5284_v20  ;;  %vm5330_vm6 = vmor %vm2000_vm4, %vm2001_vm2  ;;  %v5334_v6 = vadd.f32 1.0, %v3330_v61  ;;  %v895_v2 = vadd.f32 %v894_v60, %v4965_v59  ;;  %v1954_v28 = vadd.f32 %v5219_v24, %v1953_v41 }
 0x1fd   : > { %v3334_v34 = vpop.eup %3333  ;;  %vm1956_vm9 = vweird.f32 %v5219_v24  ;;  %v2003_v55 = vsel %vm5330_vm6, %v5181_v21, %v5301_v4  ;;  %vm5343_vm10 = vcmp.eq.f32.partialorder %v2004_v30, 8.507059e+37  ;;  %v2007_v52 = vor.u32 1.1754944e-38, %v2006_v8  ;;  %v897_v21 = vpop.f32.mrf.mxu0 }
 0x1fe   : > { %v5348_v15 = vadd.f32 %v5231_v51, %v979_v17  ;;  %v1981_v60 = vmul.f32 %v5307_v56, %v5229_v33  ;;  %v2994_v62 = vmul.f32 -1.442695, %v5316_v46  ;;  %v984_v41 = vadd.f32 %v983_v45, %v4965_v59  ;;  %v6429_v45 = vld [vmem:[#allocation31_spill] sm:$0xff] }
 0x1ff   : > { %vm1955_vm11 = vweird.f32 %v5142_v32  ;;  %v1961_v61 = vand.u32 2147483648, %v5142_v32  ;;  %vm5356_vm5 = vcmp.eq.f32.partialorder %v1944_v50, 8.507059e+37  ;;  %v5360_v4 = vadd.f32 1.0, %v3334_v34 }
 0x200   : > { %3337 = vpow2.f32 %v2993_v58  ;;  %vm5362_vm8 = vmor %vm1955_vm11, %vm1956_vm9  ;;  %v1959_v8 = vand.u32 2147483647, %v5142_v32  ;;  %v1982_v17 = vsub.f32 1.0, %v1981_v60  ;;  %v5369_v3 = vadd.f32 %v6429_v45, %v895_v2  ;;  %v6432_v60 = vld [vmem:[#allocation26_spill] sm:$0xff] }
 0x201   : > { %v3336_v59 = vpop.eup %3335  ;;  %3339 = vrcp.f32 %v5334_v6  ;;  %v1958_v50 = vsel %vm5362_vm8, %v5219_v24, %v1954_v28  ;;  %v1991_v34 = vand.u32 2147483648, %v5229_v33  ;;  %vm5375_vm12 = vcmp.eq.f32.partialorder %v1974_v31, 8.507059e+37 }
 0x202   : > { %v1983_v57 = vmul.f32 %v5307_v56, %v1982_v17  ;;  %vm1986_vm13 = vweird.f32 %v5307_v56  ;;  %v1989_v32 = vand.u32 2147483647, %v5229_v33  ;;  %v898_v16 = vadd.f32 %v897_v21, %v6432_v60 }
 0x203   : > { %v2992_v2 = vmul.f32 -1.442695, %v5348_v15  ;;  %3341 = vpow2.f32 %v2994_v62  ;;  %v5385_v51 = vadd.f32 %v6429_v45, %v984_v41  ;;  %v1962_v24 = vor.u32 1.1754944e-38, %v1961_v61  ;;  %v6433_v41 = vld [vmem:[#allocation30_spill] sm:$0xff] }
 0x204   : > { %v5387_v28 = vadd.f32 1.0, %v3336_v59  ;;  %vm1960_vm14 = vcmp.eq.f32.partialorder %v1959_v8, 8.507059e+37  ;;  %v1984_v31 = vadd.f32 %v5307_v56, %v1983_v57  ;;  %vm1985_vm0 = vweird.f32 %v5229_v33 }
 0x205   : > { %3343 = vrcp.f32 %v5360_v4  ;;  %v2995_v17 = vmul.f32 -1.442695, %v5369_v3  ;;  %v1963_v43 = vsel %vm1960_vm14, %v1962_v24, %v1958_v50  ;;  %vm1987_vm2 = vmor %vm1985_vm0, %vm1986_vm13  ;;  %v1992_v21 = vor.u32 1.1754944e-38, %v1991_v34 }
 0x206   : > { %v3338_v60 = vpop.eup %3337  ;;  %v1988_v62 = vsel %vm1987_vm2, %v5307_v56, %v1984_v31  ;;  %vm1990_vm4 = vcmp.eq.f32.partialorder %v1989_v32, 8.507059e+37  ;;  %v5395_v61 = vadd.f32 %v6433_v41, %v898_v16  ;;  %v1891_v8 = vmul.f32 %v4945_v53, %v4868_v48 }
 0x207   : > { %v5399_v57 = vpop.eup %3339  ;;  %v2008_v33 = vsel %vm5343_vm10, %v2007_v52, %v2003_v55  ;;  %3345 = vpow2.f32 %v2992_v2  ;;  %v2996_v59 = vmul.f32 -1.442695, %v5385_v51  ;;  %v1993_v45 = vsel %vm1990_vm4, %v1992_v21, %v1988_v62 }
 0x208   : > { %3347 = vrcp.f32 %v5387_v28  ;;  %v2518_v56 = vmul.f32 %v1963_v43, %v4999_v7  ;;  %v2520_v50 = vmul.f32 %v1993_v45, %v5072_v38  ;;  %v1892_v16 = vsub.f32 1.0, %v1891_v8 }
 0x209   : > { %v3342_v34 = vpop.eup %3341  ;;  %v6434_v32 = vsel %vm5296_vm1, %v5130_v54, %v5277_v44  ;;  %v6435_v12 = vand.u32 2147483648, %v5069_v49  ;;  %v5417_v2 = vadd.f32 1.0, %v3338_v60  ;;  %3349 = vpow2.f32 %v2995_v17 }
 0x20a   : > { %v1948_v55 = vsel %vm5356_vm5, %v5269_v35, %v6434_v32  ;;  %v2571_v7 = vpack.c.bf16 %v2520_v50, %v2518_v56  ;;  %v2997_v38 = vmul.f32 -1.442695, %v5395_v61  ;;  %v1893_v43 = vmul.f32 %v4945_v53, %v1892_v16 }
 0x20b   : > { %v1977_v52 = vor.u32 1.1754944e-38, %v6435_v12  ;;  %vm1896_vm6 = vweird.f32 %v4945_v53  ;;  %v5422_v5 = vpop.eup %3343  ;;  %v6436_v54 = vsel %vm5309_vm3, %v5150_v13, %v5280_v37  ;;  %v5432_v35 = vmul.f32 %v2008_v33, %v4987_v22 }
 0x20c   : > { %3351 = vpow2.f32 %v2996_v59  ;;  %v1921_v44 = vmul.f32 %v5274_v47, %v5199_v18  ;;  %v5436_v30 = vadd.f32 1.0, %v3342_v34  ;;  %2624 = vmatpush.bf16.msrb.mxu2 %v2571_v7  ;;  %v1894_v24 = vadd.f32 %v4945_v53, %v1893_v43 }
 0x20d   : > { %v1978_v49 = vsel %vm5375_vm12, %v1977_v52, %v6436_v54  ;;  %vm1895_vm1 = vweird.f32 %v4868_v48  ;;  %v1901_v10 = vand.u32 2147483648, %v4868_v48  ;;  %v3346_v13 = vpop.eup %3345  ;;  %v5442_v37 = vmul.f32 %v1948_v55, %v4915_v1 }
 0x20e   : > { %3353 = vrcp.f32 %v5417_v2  ;;  %vm5445_vm3 = vmor %vm1895_vm1, %vm1896_vm6  ;;  %v1899_v58 = vand.u32 2147483647, %v4868_v48  ;;  %v1922_v31 = vsub.f32 1.0, %v1921_v44  ;;  %v5450_v17 = vpop.eup %3347  ;;  %v5453_v21 = vmul.f32 %v1978_v49, %v4969_v36  ;;  %v899_v49 = vpop.f32.mrf.mxu0 }
 0x20f   : > { %3355 = vpow2.f32 %v2997_v38  ;;  %v1898_v1 = vsel %vm5445_vm3, %v4945_v53, %v1894_v24  ;;  %v1929_v60 = vand.u32 2147483647, %v5199_v18  ;;  %v3350_v62 = vpop.eup %3349  ;;  %vm1926_vm9 = vweird.f32 %v5274_v47 }
 0x210   : > { %v1923_v41 = vmul.f32 %v5274_v47, %v1922_v31  ;;  %v1931_v48 = vand.u32 2147483648, %v5199_v18  ;;  %v1831_v8 = vmul.f32 %v4861_v11, %v4799_v27  ;;  %v2572_v36 = vpack.c.bf16 %v5432_v35, %v5453_v21  ;;  %v5681_v35 = vld [vmem:[%s6032_s7 + $0x10] sm:$0xff] }
 0x211   : > { %v5466_v33 = vadd.f32 1.0, %v3346_v13  ;;  %3357 = vrcp.f32 %v5436_v30  ;;  %v1902_v53 = vor.u32 1.1754944e-38, %v1901_v10  ;;  %vm1900_vm10 = vcmp.eq.f32.partialorder %v1899_v58, 8.507059e+37 }
 0x212   : > { %v3352_v59 = vpop.eup %3351  ;;  %v1924_v45 = vadd.f32 %v5274_v47, %v1923_v41  ;;  %vm1925_vm11 = vweird.f32 %v5199_v18  ;;  %v1832_v56 = vsub.f32 1.0, %v1831_v8  ;;  %v5471_v50 = vadd.f32 1.0, %v3350_v62  ;;  %v6439_v62 = vld [vmem:[#allocation27_spill] sm:$0xff]  ;;  %v6440_v8 = vld [vmem:[#allocation28_spill] sm:$0xff] }
 0x213   : > { %v1903_v16 = vsel %vm1900_vm10, %v1902_v53, %v1898_v1  ;;  %vm1927_vm5 = vmor %vm1925_vm11, %vm1926_vm9  ;;  %vm1930_vm8 = vcmp.eq.f32.partialorder %v1929_v60, 8.507059e+37  ;;  %v1932_v34 = vor.u32 1.1754944e-38, %v1931_v48  ;;  %vm1836_vm12 = vweird.f32 %v4861_v11 }
 0x214   : > { %v5473_v32 = vpop.eup %3353  ;;  %v1928_v55 = vsel %vm1927_vm5, %v5274_v47, %v1924_v45  ;;  %v1833_v12 = vmul.f32 %v4861_v11, %v1832_v56  ;;  %v1841_v52 = vand.u32 2147483648, %v4799_v27  ;;  %v5479_v38 = vadd.f32 1.0, %v3352_v59 }
 0x215   : > { %v3356_v7 = vpop.eup %3355  ;;  %v1933_v18 = vsel %vm1930_vm8, %v1932_v34, %v1928_v55  ;;  %v1839_v43 = vand.u32 2147483647, %v4799_v27  ;;  %v1861_v54 = vmul.f32 %v4889_v26, %v4817_v14  ;;  %v2514_v44 = vmul.f32 %v1903_v16, %v4761_v19  ;;  %v6441_v55 = vld [vmem:[#allocation10_spill] sm:$0xff] }
 0x216   : > { %v2516_v47 = vmul.f32 %v1933_v18, %v4831_v9  ;;  %v1834_v24 = vadd.f32 %v4861_v11, %v1833_v12  ;;  %vm1835_vm13 = vweird.f32 %v4799_v27  ;;  %v1842_v13 = vor.u32 1.1754944e-38, %v1841_v52  ;;  %v6442_v12 = vld [vmem:[#allocation98_spill] sm:$0xff] }
 0x217   : > { %v5488_v10 = vpop.eup %3357  ;;  %vm1837_vm14 = vmor %vm1835_vm13, %vm1836_vm12  ;;  %v1862_v22 = vsub.f32 1.0, %v1861_v54  ;;  %v1869_v58 = vand.u32 2147483647, %v4817_v14  ;;  %v1871_v31 = vand.u32 2147483648, %v4817_v14  ;;  %v900_v19 = vadd.f32 %v899_v49, %v6439_v62 }
 0x218   : > { %v2569_v1 = vpack.c.bf16 %v2516_v47, %v2514_v44  ;;  %v1838_v60 = vsel %vm1837_vm14, %v4861_v11, %v1834_v24  ;;  %v1771_v9 = vmul.f32 %v4698_v42, %v4629_v63  ;;  %v5496_v41 = vadd.f32 1.0, %v3356_v7  ;;  %v6443_v7 = vld [vmem:[#allocation9_spill] sm:$0xff] }
 0x219   : > { %vm1840_vm0 = vcmp.eq.f32.partialorder %v1839_v43, 8.507059e+37  ;;  %v1863_v27 = vmul.f32 %v4889_v26, %v1862_v22  ;;  %vm1866_vm2 = vweird.f32 %v4889_v26  ;;  %vm1865_vm4 = vweird.f32 %v4817_v14  ;;  %v6444_v47 = vld [vmem:[#allocation25_spill] sm:$0xff] }
 0x21a   : > { %2625 = vmatpush.bf16.msrb.mxu2 %v2569_v1  ;;  %v1843_v48 = vsel %vm1840_vm0, %v1842_v13, %v1838_v60  ;;  %v5502_v53 = vadd.f32 %v6440_v8, %v900_v19  ;;  %v1772_v11 = vsub.f32 1.0, %v1771_v9  ;;  %vm1870_vm6 = vcmp.eq.f32.partialorder %v1869_v58, 8.507059e+37  ;;  %vm1867_vm1 = vmor %vm1865_vm4, %vm1866_vm2  ;;  %v6445_v58 = vld [vmem:[#allocation82_spill] sm:$0xff]  ;;  %v6447_v8 = vld [vmem:[#allocation85_spill] sm:$0xff] }
 0x21b   : > { %v1864_v59 = vadd.f32 %v4889_v26, %v1863_v27  ;;  %v1872_v45 = vor.u32 1.1754944e-38, %v1871_v31  ;;  %v1781_v56 = vand.u32 2147483648, %v4629_v63  ;;  %vm1776_vm3 = vweird.f32 %v4698_v42  ;;  %v6446_v31 = vld [vmem:[#allocation19_spill] sm:$0xff] }
 0x21c   : > { %v2999_v16 = vmul.f32 -1.442695, %v5502_v53  ;;  %v1773_v34 = vmul.f32 %v4698_v42, %v1772_v11  ;;  %v1801_v14 = vmul.f32 %v6442_v12, %v6441_v55  ;;  %v2510_v18 = vmul.f32 %v1843_v48, %v6443_v7  ;;  %v6448_v11 = vld [vmem:[#allocation18_spill] sm:$0xff] }
 0x21d   : > { %v1868_v52 = vsel %vm1867_vm1, %v4889_v26, %v1864_v59  ;;  %vm1775_vm9 = vweird.f32 %v4629_v63  ;;  %v1779_v43 = vand.u32 2147483647, %v4629_v63  ;;  %v1782_v13 = vor.u32 1.1754944e-38, %v1781_v56 }
 0x21e   : > { %v1873_v54 = vsel %vm1870_vm6, %v1872_v45, %v1868_v52  ;;  %3359 = vpow2.f32 %v2999_v16  ;;  %v1774_v49 = vadd.f32 %v4698_v42, %v1773_v34  ;;  %v1802_v44 = vsub.f32 1.0, %v1801_v14  ;;  %vm1777_vm10 = vmor %vm1775_vm9, %vm1776_vm3  ;;  %v6449_v14 = vld [vmem:[#allocation80_spill] sm:$0xff] }
 0x21f   : > { %v2512_v24 = vmul.f32 %v1873_v54, %v6444_v47  ;;  %v1811_v22 = vand.u32 2147483648, %v6441_v55  ;;  %v1711_v26 = vmul.f32 %v6446_v31, %v6445_v58  ;;  %vm1806_vm11 = vweird.f32 %v6442_v12  ;;  %v6450_v54 = vld [vmem:[#allocation15_spill] sm:$0xff] }
 0x220   : > { %v1778_v1 = vsel %vm1777_vm10, %v4698_v42, %v1774_v49  ;;  %v1803_v60 = vmul.f32 %v6442_v12, %v1802_v44  ;;  %v1809_v63 = vand.u32 2147483647, %v6441_v55  ;;  %3361 = vrcp.f32 %v5496_v41 }
 0x221   : > { %v2567_v62 = vpack.c.bf16 %v2512_v24, %v2510_v18  ;;  %vm1780_vm5 = vcmp.eq.f32.partialorder %v1779_v43, 8.507059e+37  ;;  %vm1805_vm8 = vweird.f32 %v6441_v55  ;;  %v1712_v27 = vsub.f32 1.0, %v1711_v26  ;;  %v6452_v26 = vld [vmem:[#allocation75_spill] sm:$0xff] }
 0x222   : > { %v1783_v19 = vsel %vm1780_vm5, %v1782_v13, %v1778_v1  ;;  %v1804_v9 = vadd.f32 %v6442_v12, %v1803_v60  ;;  %vm1715_vm12 = vweird.f32 %v6445_v58  ;;  %vm1807_vm13 = vmor %vm1805_vm8, %vm1806_vm11  ;;  %v1812_v42 = vor.u32 1.1754944e-38, %v1811_v22  ;;  %v6451_v22 = vld [vmem:[#allocation66_spill] sm:$0xff] }
 0x223   : > { %2626 = vmatpush.bf16.msrb.mxu2 %v2567_v62  ;;  %vm1716_vm14 = vweird.f32 %v6446_v31  ;;  %v1721_v48 = vand.u32 2147483648, %v6445_v58  ;;  %v1741_v59 = vmul.f32 %v6448_v11, %v6447_v8  ;;  %vm1810_vm0 = vcmp.eq.f32.partialorder %v1809_v63, 8.507059e+37 }
 0x224   : > { %v3360_v45 = vpop.eup %3359  ;;  %v1808_v56 = vsel %vm1807_vm13, %v6442_v12, %v1804_v9  ;;  %v1713_v16 = vmul.f32 %v6446_v31, %v1712_v27  ;;  %v1719_v34 = vand.u32 2147483647, %v6445_v58  ;;  %v2506_v52 = vmul.f32 %v1783_v19, %v6449_v14  ;;  %vm1717_vm2 = vmor %vm1715_vm12, %vm1716_vm14  ;;  %v6456_v14 = vld [vmem:[#allocation77_spill] sm:$0xff] }
 0x225   : > { %v1813_v55 = vsel %vm1810_vm0, %v1812_v42, %v1808_v56  ;;  %v1742_v7 = vsub.f32 1.0, %v1741_v59  ;;  %v1749_v18 = vand.u32 2147483647, %v6447_v8  ;;  %v5537_v43 = vadd.f32 1.0, %v3360_v45  ;;  %v6453_v42 = vld [vmem:[#allocation72_spill] sm:$0xff] }
 0x226   : > { %v2508_v49 = vmul.f32 %v1813_v55, %v6450_v54  ;;  %v1714_v44 = vadd.f32 %v6446_v31, %v1713_v16  ;;  %v1751_v47 = vand.u32 2147483648, %v6447_v8  ;;  %v5542_v12 = vpop.eup %3361  ;;  %v1722_v24 = vor.u32 1.1754944e-38, %v1721_v48  ;;  %v6454_v48 = vld [vmem:[#allocation78_spill] sm:$0xff]  ;;  %v6457_v54 = vld [vmem:[#allocation43_spill] sm:$0xff] }
 0x227   : > { %v1743_v13 = vmul.f32 %v6448_v11, %v1742_v7  ;;  %vm1746_vm4 = vweird.f32 %v6448_v11  ;;  %v1651_v1 = vmul.f32 %v6452_v26, %v6451_v22  ;;  %vm1720_vm6 = vcmp.eq.f32.partialorder %v1719_v34, 8.507059e+37  ;;  %v6455_v16 = vld [vmem:[#allocation74_spill] sm:$0xff] }
 0x228   : > { %v2565_v60 = vpack.c.bf16 %v2508_v49, %v2506_v52  ;;  %v1718_v63 = vsel %vm1717_vm2, %v6446_v31, %v1714_v44  ;;  %vm1745_vm1 = vweird.f32 %v6447_v8  ;;  %vm1750_vm3 = vcmp.eq.f32.partialorder %v1749_v18, 8.507059e+37 }
 0x229   : > { %v1723_v62 = vsel %vm1720_vm6, %v1722_v24, %v1718_v63  ;;  %v1744_v19 = vadd.f32 %v6448_v11, %v1743_v13  ;;  %v1652_v58 = vsub.f32 1.0, %v1651_v1  ;;  %3363 = vrcp.f32 %v5537_v43  ;;  %vm1747_vm9 = vmor %vm1745_vm1, %vm1746_vm4 }
 0x22a   : > { %2627 = vmatpush.bf16.msrb.mxu2 %v2565_v60  ;;  %v1752_v9 = vor.u32 1.1754944e-38, %v1751_v47  ;;  %v1661_v27 = vand.u32 2147483648, %v6451_v22  ;;  %v1681_v59 = vmul.f32 %v6454_v48, %v6453_v42  ;;  %vm1656_vm10 = vweird.f32 %v6452_v26 }
 0x22b   : > { %v1748_v31 = vsel %vm1747_vm9, %v6448_v11, %v1744_v19  ;;  %v1653_v45 = vmul.f32 %v6452_v26, %v1652_v58  ;;  %v1659_v8 = vand.u32 2147483647, %v6451_v22  ;;  %v2502_v34 = vmul.f32 %v1723_v62, %v6455_v16  ;;  %v6458_v11 = vld [vmem:[#allocation51_spill] sm:$0xff] }
 0x22c   : > { %v1753_v56 = vsel %vm1750_vm3, %v1752_v9, %v1748_v31  ;;  %vm1655_vm11 = vweird.f32 %v6451_v22  ;;  %v1682_v55 = vsub.f32 1.0, %v1681_v59  ;;  %v1691_v18 = vand.u32 2147483648, %v6453_v42 }
 0x22d   : > { %v2504_v52 = vmul.f32 %v1753_v56, %v6456_v14  ;;  %v1654_v7 = vadd.f32 %v6452_v26, %v1653_v45  ;;  %v1591_v49 = vmul.f32 %v6458_v11, %v6457_v54  ;;  %vm1657_vm5 = vmor %vm1655_vm11, %vm1656_vm10  ;;  %v1662_v44 = vor.u32 1.1754944e-38, %v1661_v27  ;;  %v6459_v27 = vld [vmem:[#allocation50_spill] sm:$0xff] }
 0x22e   : > { %v1683_v47 = vmul.f32 %v6454_v48, %v1682_v55  ;;  %vm1686_vm8 = vweird.f32 %v6454_v48  ;;  %v1689_v24 = vand.u32 2147483647, %v6453_v42  ;;  %vm1660_vm12 = vcmp.eq.f32.partialorder %v1659_v8, 8.507059e+37  ;;  %v6461_v8 = vld [vmem:[#allocation56_spill] sm:$0xff]  ;;  %v6462_v55 = vld [vmem:[#allocation62_spill] sm:$0xff] }
 0x22f   : > { %v2563_v13 = vpack.c.bf16 %v2504_v52, %v2502_v34  ;;  %v1658_v22 = vsel %vm1657_vm5, %v6452_v26, %v1654_v7  ;;  %v1592_v1 = vsub.f32 1.0, %v1591_v49  ;;  %v5574_v60 = vpop.eup %3363  ;;  %vm1685_vm13 = vweird.f32 %v6453_v42  ;;  %v6460_v26 = vld [vmem:[#allocation57_spill] sm:$0xff]  ;;  %v6464_v49 = vld [vmem:[#allocation59_spill] sm:$0xff] }
 0x230   : > { %v1663_v63 = vsel %vm1660_vm12, %v1662_v44, %v1658_v22  ;;  %v1684_v62 = vadd.f32 %v6454_v48, %v1683_v47  ;;  %v1601_v19 = vand.u32 2147483648, %v6457_v54  ;;  %vm1687_vm14 = vmor %vm1685_vm13, %vm1686_vm8  ;;  %v1692_v58 = vor.u32 1.1754944e-38, %v1691_v18  ;;  %v6463_v18 = vld [vmem:[#allocation52_spill] sm:$0xff] }
 0x231   : > { %2628 = vmatpush.bf16.msrb.mxu2 %v2563_v13  ;;  %v1593_v9 = vmul.f32 %v6458_v11, %v1592_v1  ;;  %vm1596_vm0 = vweird.f32 %v6458_v11  ;;  %v1621_v59 = vmul.f32 %v6460_v26, %v6459_v27  ;;  %vm1690_vm2 = vcmp.eq.f32.partialorder %v1689_v24, 8.507059e+37 }
 0x232   : > { %v1688_v31 = vsel %vm1687_vm14, %v6454_v48, %v1684_v62  ;;  %vm1595_vm4 = vweird.f32 %v6457_v54  ;;  %v1599_v45 = vand.u32 2147483647, %v6457_v54  ;;  %v2498_v56 = vmul.f32 %v1663_v63, %v6461_v8 }
 0x233   : > { %v1693_v42 = vsel %vm1690_vm2, %v1692_v58, %v1688_v31  ;;  %v1594_v16 = vadd.f32 %v6458_v11, %v1593_v9  ;;  %v1622_v34 = vsub.f32 1.0, %v1621_v59  ;;  %vm1597_vm6 = vmor %vm1595_vm4, %vm1596_vm0  ;;  %v1602_v52 = vor.u32 1.1754944e-38, %v1601_v19  ;;  %v6465_v58 = vld [vmem:[#allocation60_spill] sm:$0xff] }
 0x234   : > { %v2500_v14 = vmul.f32 %v1693_v42, %v6462_v55  ;;  %v1631_v7 = vand.u32 2147483648, %v6459_v27  ;;  %v1531_v48 = vmul.f32 %v6464_v49, %v6463_v18  ;;  %vm1626_vm1 = vweird.f32 %v6460_v26  ;;  %v6466_v9 = vld [vmem:[#allocation64_spill] sm:$0xff] }
 0x235   : > { %v1598_v44 = vsel %vm1597_vm6, %v6458_v11, %v1594_v16  ;;  %v1623_v47 = vmul.f32 %v6460_v26, %v1622_v34  ;;  %v1629_v54 = vand.u32 2147483647, %v6459_v27  ;;  %vm1600_vm3 = vcmp.eq.f32.partialorder %v1599_v45, 8.507059e+37  ;;  %v6468_v34 = vld [vmem:[#allocation39_spill] sm:$0xff] }
 0x236   : > { %v2561_v24 = vpack.c.bf16 %v2500_v14, %v2498_v56  ;;  %vm1625_vm9 = vweird.f32 %v6459_v27  ;;  %v1532_v13 = vsub.f32 1.0, %v1531_v48  ;;  %v1603_v22 = vsel %vm1600_vm3, %v1602_v52, %v1598_v44  ;;  %v6467_v56 = vld [vmem:[#allocation36_spill] sm:$0xff]  ;;  %v3050_v48 = vld [vmem:[%s6032_s7 + $0x4] sm:$0xf0] }
 0x237   : > { %v1624_v1 = vadd.f32 %v6460_v26, %v1623_v47  ;;  %vm1536_vm10 = vweird.f32 %v6464_v49  ;;  %v1541_v63 = vand.u32 2147483648, %v6463_v18  ;;  %vm1627_vm11 = vmor %vm1625_vm9, %vm1626_vm1  ;;  %v1632_v11 = vor.u32 1.1754944e-38, %v1631_v7 }
 0x238   : > { %2629 = vmatpush.bf16.msrb.mxu2 %v2561_v24  ;;  %v1533_v62 = vmul.f32 %v6464_v49, %v1532_v13  ;;  %v1539_v19 = vand.u32 2147483647, %v6463_v18  ;;  %v1561_v59 = vmul.f32 %v6466_v9, %v6465_v58  ;;  %3365 = vrcp.f32 %v5471_v50  ;;  %v6470_v24 = vld [vmem:[#allocation20_spill] sm:$0xff] }
 0x239   : > { %v1628_v27 = vsel %vm1627_vm11, %v6460_v26, %v1624_v1  ;;  %vm1630_vm5 = vcmp.eq.f32.partialorder %v1629_v54, 8.507059e+37  ;;  %vm1535_vm8 = vweird.f32 %v6463_v18  ;;  %v1569_v8 = vand.u32 2147483647, %v6465_v58  ;;  %v3023_v18 = vld [vmem:[%s6032_s7] sm:$0xf] }
 0x23a   : > { %v1633_v31 = vsel %vm1630_vm5, %v1632_v11, %v1628_v27  ;;  %v1534_v45 = vadd.f32 %v6464_v49, %v1533_v62  ;;  %v1562_v42 = vsub.f32 1.0, %v1561_v59  ;;  %v2494_v16 = vmul.f32 %v1603_v22, %v6467_v56  ;;  %vm1537_vm12 = vmor %vm1535_vm8, %vm1536_vm10  ;;  %v6469_v54 = vld [vmem:[#allocation24_spill] sm:$0xff] }
 0x23b   : > { %v2496_v55 = vmul.f32 %v1633_v31, %v6468_v34  ;;  %v1542_v14 = vor.u32 1.1754944e-38, %v1541_v63  ;;  %v1571_v52 = vand.u32 2147483648, %v6465_v58  ;;  %vm1540_vm13 = vcmp.eq.f32.partialorder %v1539_v19, 8.507059e+37  ;;  %v6471_v19 = vld [vmem:[#allocation16_spill] sm:$0xff]  ;;  %v6473_v34 = vld [vmem:[#allocation42_spill] sm:$0xff] }
 0x23c   : > { %v1538_v26 = vsel %vm1537_vm12, %v6464_v49, %v1534_v45  ;;  %v1563_v7 = vmul.f32 %v6466_v9, %v1562_v42  ;;  %vm1566_vm14 = vweird.f32 %v6466_v9  ;;  %3367 = vrcp.f32 %v5479_v38 }
 0x23d   : > { %v2559_v44 = vpack.c.bf16 %v2496_v55, %v2494_v16  ;;  %v1543_v47 = vsel %vm1540_vm13, %v1542_v14, %v1538_v26  ;;  %v2564_v49 = vpack.c.bf16 %v6470_v24, %v6469_v54  ;;  %vm1565_vm0 = vweird.f32 %v6465_v58  ;;  %v6472_v58 = vld [vmem:[#allocation40_spill] sm:$0xff]  ;;  %v6475_v26 = vld [vmem:[#allocation53_spill] sm:$0xff] }
 0x23e   : > { %v1564_v13 = vadd.f32 %v6466_v9, %v1563_v7  ;;  %vm1570_vm2 = vcmp.eq.f32.partialorder %v1569_v8, 8.507059e+37  ;;  %v2131_v22 = vmul.f32 %v5542_v12, %v5496_v41  ;;  %v5630_v1 = vpop.eup %3365  ;;  %vm1567_vm4 = vmor %vm1565_vm0, %vm1566_vm14  ;;  %v1572_v63 = vor.u32 1.1754944e-38, %v1571_v52  ;;  %v6474_v52 = vld [vmem:[#allocation48_spill] sm:$0xff] }
 0x23f   : > { %2630 = vmatpush.bf16.msrb.mxu2 %v2559_v44  ;;  %v5632_v11 = vor.u32 %v3050_v48, %v3023_v18  ;;  %v2570_v62 = vpack.c.bf16 %v5442_v37, %v5287_v25  ;;  %v2568_v59 = vpack.c.bf16 %v5234_v39, %v6471_v19  ;;  %v2490_v31 = vmul.f32 %v1543_v47, %v6472_v58 }
 0x240   : > { %v1568_v27 = vsel %vm1567_vm4, %v6466_v9, %v1564_v13  ;;  %v2132_v45 = vsub.f32 1.0, %v2131_v22  ;;  %v2161_v42 = vmul.f32 %v5574_v60, %v5537_v43  ;;  %vm2135_vm6 = vweird.f32 %v5496_v41 }
 0x241   : > { %v1573_v8 = vsel %vm1570_vm2, %v1572_v63, %v1568_v27  ;;  %v2139_v56 = vand.u32 2147483647, %v5496_v41  ;;  %v2141_v16 = vand.u32 2147483648, %v5496_v41  ;;  %vm2136_vm1 = vweird.f32 %v5542_v12 }
 0x242   : > { %v2492_v25 = vmul.f32 %v1573_v8, %v6473_v34  ;;  %v2133_v37 = vmul.f32 %v5542_v12, %v2132_v45  ;;  %v2162_v9 = vsub.f32 1.0, %v2161_v42  ;;  %v5648_v55 = vpop.eup %3367  ;;  %vm2166_vm3 = vweird.f32 %v5574_v60  ;;  %vm2137_vm9 = vmor %vm2135_vm6, %vm2136_vm1  ;;  %v6492_v34 = vld [vmem:[#allocation23_spill] sm:$0xff] }
 0x243   : > { %v2171_v14 = vand.u32 2147483648, %v5537_v43  ;;  %v2562_v7 = vpack.c.bf16 %v6475_v26, %v6474_v52  ;;  %v2071_v18 = vmul.f32 %v5473_v32, %v5417_v2  ;;  %v2169_v13 = vand.u32 2147483647, %v5537_v43  ;;  %v6541_v52 = vld [vmem:[#allocation81_spill] sm:$0xff] }
 0x244   : > { %v2557_v48 = vpack.c.bf16 %v2492_v25, %v2490_v31  ;;  %v2134_v44 = vadd.f32 %v5542_v12, %v2133_v37  ;;  %v2163_v47 = vmul.f32 %v5574_v60, %v2162_v9  ;;  %vm2140_vm10 = vcmp.eq.f32.partialorder %v2139_v56, 8.507059e+37  ;;  %v6478_v9 = vld [vmem:[#allocation61_spill] sm:$0xff] }
 0x245   : > { %v2142_v22 = vor.u32 1.1754944e-38, %v2141_v16  ;;  %vm2165_vm11 = vweird.f32 %v5537_v43  ;;  %v2072_v63 = vsub.f32 1.0, %v2071_v18  ;;  %v2172_v31 = vor.u32 1.1754944e-38, %v2171_v14  ;;  %v6479_v14 = vld [vmem:[#allocation67_spill] sm:$0xff] }
 0x246   : > { %2631 = vmatpush.bf16.msrb.mxu2 %v2557_v48  ;;  %v2138_v27 = vsel %vm2137_vm9, %v5542_v12, %v2134_v44  ;;  %v2164_v58 = vadd.f32 %v5574_v60, %v2163_v47  ;;  %vm2075_vm5 = vweird.f32 %v5417_v2  ;;  %vm2167_vm8 = vmor %vm2165_vm11, %vm2166_vm3  ;;  %vm2076_vm12 = vweird.f32 %v5473_v32  ;;  %v6480_v48 = vld [vmem:[#allocation92_spill] sm:$0xff]  ;;  %v6481_v44 = vld [vmem:[#allocation97_spill] sm:$0xff] }
 0x247   : > { %v2143_v45 = vsel %vm2140_vm10, %v2142_v22, %v2138_v27  ;;  %v2073_v41 = vmul.f32 %v5473_v32, %v2072_v63  ;;  %v2101_v43 = vmul.f32 %v5630_v1, %v5471_v50  ;;  %vm2170_vm13 = vcmp.eq.f32.partialorder %v2169_v13, 8.507059e+37  ;;  %vm5688_vm14 = vmor %vm2075_vm5, %vm2076_vm12  ;;  %v6482_v47 = vld [vmem:[#allocation99_spill] sm:$0xff] }
 0x248   : > { %v2168_v12 = vsel %vm2167_vm8, %v5574_v60, %v2164_v58  ;;  %v2079_v42 = vand.u32 2147483647, %v5417_v2  ;;  %v2081_v8 = vand.u32 2147483648, %v5417_v2  ;;  %v2109_v25 = vand.u32 2147483647, %v5471_v50  ;;  %v6483_v58 = vld [vmem:[#allocation89_spill] sm:$0xff] }
 0x249   : > { %2632 = vmatmul.bf16.vlgmr.msrb.gmra.mxu2 %v5632_v11  ;;  %v2173_v21 = vsel %vm2170_vm13, %v2172_v31, %v2168_v12  ;;  %v2074_v56 = vadd.f32 %v5473_v32, %v2073_v41  ;;  %v2102_v16 = vsub.f32 1.0, %v2101_v43  ;;  %v2111_v37 = vand.u32 2147483648, %v5471_v50  ;;  %v6485_v31 = vld [vmem:[#allocation95_spill] sm:$0xff]  ;;  %v6489_v12 = vld [vmem:[#allocation84_spill] sm:$0xff] }
 0x24a   : > { %2660 = vmatpush.bf16.msra.mxu2 %v2572_v36  ;;  %v2530_v36 = vmul.f32 %v2143_v45, %v5395_v61  ;;  %v2532_v60 = vmul.f32 %v2173_v21, %v5502_v53  ;;  %v2560_v18 = vpack.c.bf16 %v6479_v14, %v6478_v9  ;;  %vm2391_vm0 = vweird.f32 %v6480_v48 }
 0x24b   : > { %v2078_v61 = vsel %vm5688_vm14, %v5473_v32, %v2074_v56  ;;  %v2103_v2 = vmul.f32 %v5630_v1, %v2102_v16  ;;  %vm2106_vm2 = vweird.f32 %v5630_v1  ;;  %v2011_v53 = vmul.f32 %v5399_v57, %v5334_v6  ;;  %v6490_v56 = vld [vmem:[#allocation87_spill] sm:$0xff] }
 0x24c   : > { %v2566_v13 = vpack.c.bf16 %v6482_v47, %v6481_v44  ;;  %v2614_v22 = vunpack.c.l.b16 %v5681_v35  ;;  %v2577_v63 = vpack.c.bf16 %v2532_v60, %v2530_v36  ;;  %v2082_v27 = vor.u32 1.1754944e-38, %v2081_v8  ;;  %v6491_v60 = vld [vmem:[#allocation79_spill] sm:$0xff]  ;;  %v6496_v47 = vld [vmem:[#allocation69_spill] sm:$0xff] }
 0x24d   : > { %vm2361_vm4 = vweird.f32 %v6483_v58  ;;  %v6486_v32 = vand.u32 2147483647, %v6485_v31  ;;  %vm2080_vm3 = vcmp.eq.f32.partialorder %v2079_v42, 8.507059e+37  ;;  %v2104_v41 = vadd.f32 %v5630_v1, %v2103_v2  ;;  %v6493_v2 = vld [vmem:[#allocation73_spill] sm:$0xff] }
 0x24e   : > { %2661 = vmatpush.bf16.msra.mxu2 %v2570_v62  ;;  %v6484_v62 = vld [vmem:[#allocation8_spill] sm:$0xff]  ;;  %vm2105_vm9 = vweird.f32 %v5471_v50  ;;  %v2012_v43 = vsub.f32 1.0, %v2011_v53  ;;  %vm2331_vm10 = vweird.f32 %v6489_v12  ;;  %2647 = vmatpush.bf16.msrb.mxu3 %v2577_v63  ;;  %v2083_v8 = vsel %vm2080_vm3, %v2082_v27, %v2078_v61  ;;  %v6512_v53 = vld [vmem:[#allocation22_spill] sm:$0xff] }
 0x24f   : > { %vm2390_vm6 = vweird.f32 %v6484_v62  ;;  %vm5711_vm1 = vcmp.eq.f32.partialorder %v6486_v32, 8.507059e+37  ;;  %vm2107_vm11 = vmor %vm2105_vm9, %vm2106_vm2  ;;  %vm2110_vm5 = vcmp.eq.f32.partialorder %v2109_v25, 8.507059e+37  ;;  %v2112_v21 = vor.u32 1.1754944e-38, %v2111_v37 }
 0x250   : > { %v2041_v36 = vmul.f32 %v5450_v17, %v5387_v28  ;;  %vm2360_vm8 = vweird.f32 %v6490_v56  ;;  %v2108_v50 = vsel %vm2107_vm11, %v5630_v1, %v2104_v41  ;;  %v2013_v42 = vmul.f32 %v5399_v57, %v2012_v43 }
 0x251   : > { %vm2016_vm12 = vweird.f32 %v5399_v57  ;;  %v2021_v16 = vand.u32 2147483648, %v5334_v6  ;;  %vm2330_vm14 = vweird.f32 %v6492_v34  ;;  %v2113_v25 = vsel %vm2110_vm5, %v2112_v21, %v2108_v50  ;;  %v6502_v21 = vld [vmem:[#allocation65_spill] sm:$0xff] }
 0x252   : > { %2662 = vmatpush.bf16.msra.mxu2 %v2568_v59  ;;  %vm2015_vm2 = vweird.f32 %v5334_v6  ;;  %v2019_v37 = vand.u32 2147483647, %v5334_v6  ;;  %v2042_v61 = vsub.f32 1.0, %v2041_v36  ;;  %v2526_v39 = vmul.f32 %v2083_v8, %v5284_v20  ;;  %v6497_v20 = vld [vmem:[#allocation71_spill] sm:$0xff]  ;;  %v6503_v36 = vld [vmem:[#allocation32_spill] sm:$0xff] }
 0x253   : > { %v2528_v1 = vmul.f32 %v2113_v25, %v5369_v3  ;;  %v2014_v19 = vadd.f32 %v5399_v57, %v2013_v42  ;;  %v2051_v59 = vand.u32 2147483648, %v5387_v28  ;;  %vm5739_vm9 = vmor %vm2015_vm2, %vm2016_vm12  ;;  %vm2046_vm11 = vweird.f32 %v5450_v17  ;;  %v6498_v3 = vld [vmem:[#allocation76_spill] sm:$0xff] }
 0x254   : > { %v2043_v44 = vmul.f32 %v5450_v17, %v2042_v61  ;;  %v2049_v6 = vand.u32 2147483647, %v5387_v28  ;;  %v2558_v63 = vpack.c.bf16 %v6497_v20, %v6496_v47  ;;  %v6499_v27 = vand.u32 2147483647, %v6490_v56  ;;  %v6504_v42 = vld [vmem:[#allocation68_spill] sm:$0xff] }
 0x255   : > { %3369 = vrcp.f32 %v5466_v33  ;;  %v2575_v32 = vpack.c.bf16 %v2528_v1, %v2526_v39  ;;  %v2018_v41 = vsel %vm5739_vm9, %v5399_v57, %v2014_v19  ;;  %v2022_v43 = vor.u32 1.1754944e-38, %v2021_v16  ;;  %v6505_v57 = vld [vmem:[#allocation49_spill] sm:$0xff]  ;;  %v6506_v16 = vld [vmem:[#allocation54_spill] sm:$0xff]  ;;  %vm5774_vm9 = vmor %vm2390_vm6, %vm2391_vm0 }
 0x256   : > { %vm5751_vm13 = vcmp.eq.f32.partialorder %v6499_v27, 8.507059e+37  ;;  %2663 = vmatpush.bf16.msra.mxu2 %v2566_v13  ;;  %vm2020_vm12 = vcmp.eq.f32.partialorder %v2019_v37, 8.507059e+37  ;;  %v2044_v8 = vadd.f32 %v5450_v17, %v2043_v44  ;;  %vm2045_vm2 = vweird.f32 %v5387_v28  ;;  %v6509_v39 = vld [vmem:[#allocation90_spill] sm:$0xff]  ;;  %v6513_v44 = vld [vmem:[#allocation12_spill] sm:$0xff] }
 0x257   : > { %vm2270_vm5 = vweird.f32 %v6504_v42  ;;  %v5764_v25 = vpack.c.b16 %v2614_v22, %v2614_v22  ;;  %2648 = vmatpush.bf16.msrb.mxu3 %v2575_v32  ;;  %v2023_v13 = vsel %vm2020_vm12, %v2022_v43, %v2018_v41  ;;  %vm2047_vm3 = vmor %vm2045_vm2, %vm2046_vm11  ;;  %v2052_v61 = vor.u32 1.1754944e-38, %v2051_v59  ;;  %v6515_v59 = vld [vmem:[#allocation100_spill] sm:$0xff]  ;;  %v6516_v43 = vld [vmem:[#allocation11_spill] sm:$0xff] }
 0x258   : > { %v6510_v22 = vand.u32 2147483648, %v6509_v39  ;;  %v6514_v27 = vsel %vm5091_vm7, %v6512_v53, %v6513_v44  ;;  %v2048_v41 = vsel %vm2047_vm3, %v5450_v17, %v2044_v8  ;;  %vm2050_vm11 = vcmp.eq.f32.partialorder %v2049_v6, 8.507059e+37  ;;  %vm5804_vm7 = vmor %vm2360_vm8, %vm2361_vm4  ;;  %v6530_v44 = vld [vmem:[#allocation88_spill] sm:$0xff] }
 0x259   : > { %v2458_v32 = vsel %vm5711_vm1, %v6515_v59, %v6514_v27  ;;  %v2393_v37 = vsel %vm5774_vm9, %v6480_v48, %v6516_v43  ;;  %v6517_v50 = vand.u32 2147483647, %v6509_v39  ;;  %v2053_v45 = vsel %vm2050_vm11, %v2052_v61, %v2048_v41  ;;  %v3025_v61 = vld [vmem:[%s6032_s7 + $0x8] sm:$0xf0]  ;;  %2637 = vmatmul.bf16.gmra.mxu2 %v5764_v25  ;;  %v6531_v41 = vld [vmem:[#allocation91_spill] sm:$0xff] }
 0x25a   : > { %v2427_v1 = vor.u32 1.1754944e-38, %v6510_v22  ;;  %v6518_v22 = vld [vmem:[#allocation93_spill] sm:$0xff]  ;;  %2664 = vmatpush.bf16.msra.mxu2 %v2564_v49  ;;  %v6521_v48 = vand.u32 2147483648, %v6484_v62  ;;  %v2522_v54 = vmul.f32 %v2023_v13, %v5191_v23  ;;  %v2524_v24 = vmul.f32 %v2053_v45, %v5256_v0  ;;  %v6528_v23 = vld [vmem:[#allocation96_spill] sm:$0xff] }
 0x25b   : > { %vm2425_vm0 = vcmp.eq.f32.partialorder %v6517_v50, 8.507059e+37  ;;  %v2553_v19 = vmul.f32 %v5249_v40, %v6518_v22  ;;  %v6523_v50 = vld [vmem:[#allocation94_spill] sm:$0xff]  ;;  %v6524_v40 = vld [vmem:[#allocation101_spill] sm:$0xff]  ;;  %v5823_v53 = vpop.eup %3369  ;;  %v2363_v0 = vsel %vm5804_vm7, %v6483_v58, %v6528_v23  ;;  %v6529_v13 = vand.u32 2147483647, %v6484_v62  ;;  %v6551_v62 = vld [vmem:[#allocation63_spill] sm:$0xff] }
 0x25c   : > { %v2397_v6 = vor.u32 1.1754944e-38, %v6521_v48  ;;  %v6525_v28 = vsel %vm4879_vm15, %v6523_v50, %v6524_v40  ;;  %v3049_v49 = vld [vmem:[%s6032_s7 + $0x4] sm:$0xf]  ;;  %vm5829_vm15 = vmor %vm2330_vm14, %vm2331_vm10  ;;  %v2551_v27 = vmul.f32 %v2458_v32, %v6530_v44  ;;  %v2116_v59 = vmul.f32 %v5648_v55, %v5479_v38  ;;  %v6537_v32 = vld [vmem:[#allocation83_spill] sm:$0xff] }
 0x25d   : > { %v2428_v39 = vsel %vm2425_vm0, %v2427_v1, %v6525_v28  ;;  %vm2395_vm4 = vcmp.eq.f32.partialorder %v6529_v13, 8.507059e+37  ;;  %v2333_v43 = vsel %vm5829_vm15, %v6489_v12, %v6531_v41  ;;  %v6532_v22 = vand.u32 2147483648, %v6490_v56  ;;  %v6547_v1 = vld [vmem:[#allocation14_spill] sm:$0xff] }
 0x25e   : > { %v2398_v17 = vsel %vm2395_vm4, %v2397_v6, %v2393_v37  ;;  %v2573_v58 = vpack.c.bf16 %v2524_v24, %v2522_v54  ;;  %vm6533_vm6 = vweird.f32 %v6491_v60  ;;  %vm6534_vm1 = vweird.f32 %v6493_v2  ;;  %2665 = vmatpush.bf16.msra.mxu2 %v2562_v7  ;;  %v6538_v37 = vld [vmem:[#allocation86_spill] sm:$0xff] }
 0x25f   : > { %v2367_v45 = vor.u32 1.1754944e-38, %v6532_v22  ;;  %vm5853_vm10 = vmor %vm6534_vm1, %vm6533_vm6  ;;  %v2549_v48 = vmul.f32 %v2428_v39, %v6537_v32  ;;  %v2588_v8 = vpack.c.bf16 %v2553_v19, %v2551_v27  ;;  %v2086_v50 = vmul.f32 %v5488_v10, %v5436_v30 }
 0x260   : > { %v5863_v12 = vor.u32 %v3049_v49, %v3025_v61  ;;  %v2276_v56 = vand.u32 2147483648, %v6504_v42  ;;  %v2303_v6 = vsel %vm5853_vm10, %v6491_v60, %v6538_v37  ;;  %v6539_v40 = vand.u32 2147483648, %v6492_v34  ;;  %2649 = vmatpush.bf16.msrb.mxu3 %v2573_v58 }
 0x261   : > { %v2368_v19 = vsel %vm5751_vm13, %v2367_v45, %v2363_v0  ;;  %v6540_v39 = vand.u32 2147483647, %v6492_v34  ;;  %v2547_v26 = vmul.f32 %v2398_v17, %v6541_v52  ;;  %v2056_v7 = vmul.f32 %v5823_v53, %v5466_v33  ;;  %v6548_v0 = vld [vmem:[#allocation21_spill] sm:$0xff] }
 0x262   : > { %v2337_v28 = vor.u32 1.1754944e-38, %v6539_v40  ;;  %v2117_v54 = vsub.f32 1.0, %v2116_v59  ;;  %vm6542_vm14 = vweird.f32 %v6498_v3  ;;  %v6545_v31 = vand.u32 2147483647, %v6493_v2  ;;  %2666 = vmatpush.bf16.msra.mxu2 %v2560_v18  ;;  %v6552_v18 = vld [vmem:[#allocation58_spill] sm:$0xff] }
 0x263   : > { %vm2335_vm8 = vcmp.eq.f32.partialorder %v6540_v39, 8.507059e+37  ;;  %vm5883_vm3 = vmor %vm2270_vm5, %vm6542_vm14  ;;  %v6546_v34 = vand.u32 2147483648, %v6493_v2  ;;  %v2026_v61 = vmul.f32 %v5422_v5, %v5360_v4  ;;  %v2545_v13 = vmul.f32 %v2368_v19, %v6548_v0  ;;  %2650 = vmatmul.bf16.vlgmr.msrb.gmra.mxu3 %v5863_v12 }
 0x264   : > { %2678 = vmatpush.bf16.msra.mxu3 %v2588_v8  ;;  %vm2305_vm13 = vcmp.eq.f32.partialorder %v6545_v31, 8.507059e+37  ;;  %v2338_v49 = vsel %vm2335_vm8, %v2337_v28, %v2333_v43  ;;  %v2273_v23 = vsel %vm5883_vm3, %v6498_v3, %v6547_v1  ;;  %v2087_v44 = vsub.f32 1.0, %v2086_v50  ;;  %v6550_v43 = vld [vmem:[#allocation70_spill] sm:$0xff] }
 0x265   : > { %v2307_v24 = vor.u32 1.1754944e-38, %v6546_v34  ;;  %v2586_v2 = vpack.c.bf16 %v2549_v48, %v2547_v26  ;;  %v2277_v27 = vor.u32 1.1754944e-38, %v2276_v56  ;;  %v6549_v41 = vand.u32 2147483647, %v6504_v42 }
 0x266   : > { %v2543_v22 = vmul.f32 %v2338_v49, %v6550_v43  ;;  %v2057_v45 = vsub.f32 1.0, %v2056_v7  ;;  %v2118_v3 = vmul.f32 %v5648_v55, %v2117_v54  ;;  %v2027_v58 = vsub.f32 1.0, %v2026_v61  ;;  %2667 = vmatpush.bf16.msra.mxu2 %v2558_v63 }
 0x267   : > { %v2308_v59 = vsel %vm2305_vm13, %v2307_v24, %v2303_v6  ;;  %vm2275_vm5 = vcmp.eq.f32.partialorder %v6549_v41, 8.507059e+37  ;;  %v2088_v9 = vmul.f32 %v5488_v10, %v2087_v44  ;;  %vm2121_vm12 = vweird.f32 %v5648_v55 }
 0x268   : > { %2679 = vmatpush.bf16.msra.mxu3 %v2586_v2  ;;  %v2278_v17 = vsel %vm2275_vm5, %v2277_v27, %v2273_v23  ;;  %v2541_v32 = vmul.f32 %v2308_v59, %v6551_v62  ;;  %v2584_v14 = vpack.c.bf16 %v2545_v13, %v2543_v22  ;;  %v2058_v48 = vmul.f32 %v5823_v53, %v2057_v45 }
 0x269   : > { %v2539_v42 = vmul.f32 %v2278_v17, %v6552_v18  ;;  %v2119_v8 = vadd.f32 %v5648_v55, %v2118_v3  ;;  %v2028_v50 = vmul.f32 %v5422_v5, %v2027_v58  ;;  %vm2091_vm2 = vweird.f32 %v5488_v10  ;;  %2668 = vmatmul.bf16.vlgmr.msra.gmra.mxu2 %v5632_v11  ;;  %v2595_v3 = vpop.permute.xlu1 %2594  ;;  %v2605_v17 = vpop.permute.xlu0 %2604  ;;  %v6561_v18 = vld [vmem:[#allocation7_spill] sm:$0xff] }
 0x26a   : > { %vm2120_vm9 = vweird.f32 %v5479_v38  ;;  %v2126_v56 = vand.u32 2147483648, %v5479_v38  ;;  %v2089_v47 = vadd.f32 %v5488_v10, %v2088_v9  ;;  %v2124_v20 = vand.u32 2147483647, %v5479_v38 }
 0x26b   : > { %v2582_v63 = vpack.c.bf16 %v2541_v32, %v2539_v42  ;;  %v2615_v37 = vunpack.c.h.b16 %v5681_v35  ;;  %vm2031_vm11 = vweird.f32 %v5422_v5  ;;  %vm2090_vm0 = vweird.f32 %v5436_v30  ;;  %vm5925_vm7 = vmor %vm2120_vm9, %vm2121_vm12 }
 0x26c   : > { %2680 = vmatpush.bf16.msra.mxu3 %v2584_v14  ;;  %v2096_v6 = vand.u32 2147483648, %v5436_v30  ;;  %v2059_v28 = vadd.f32 %v5823_v53, %v2058_v48  ;;  %vm2061_vm15 = vweird.f32 %v5823_v53  ;;  %v2094_v19 = vand.u32 2147483647, %v5436_v30  ;;  %vm5941_vm6 = vmor %vm2090_vm0, %vm2091_vm2 }
 0x26d   : > { %v2123_v38 = vsel %vm5925_vm7, %v5648_v55, %v2119_v8  ;;  %vm2060_vm4 = vweird.f32 %v5466_v33  ;;  %v2064_v35 = vand.u32 2147483647, %v5466_v33  ;;  %v2066_v39 = vand.u32 2147483648, %v5466_v33  ;;  %v6563_v8 = vld [vmem:[#allocation6_spill] sm:$0xff] }
 0x26e   : > { %v2127_v30 = vor.u32 1.1754944e-38, %v2126_v56  ;;  %v2029_v26 = vadd.f32 %v5422_v5, %v2028_v50  ;;  %v2093_v11 = vsel %vm5941_vm6, %v5488_v10, %v2089_v47  ;;  %vm2125_vm1 = vcmp.eq.f32.partialorder %v2124_v20, 8.507059e+37  ;;  %vm5952_vm10 = vmor %vm2060_vm4, %vm2061_vm15  ;;  %v6565_v47 = vld [vmem:[#allocation5_spill] sm:$0xff] }
 0x26f   : > { %v2619_v55 = vpack.c.b16 %v2615_v37, %v2615_v37  ;;  %v2036_v7 = vand.u32 2147483648, %v5360_v4  ;;  %v2097_v54 = vor.u32 1.1754944e-38, %v2096_v6  ;;  %vm2030_vm8 = vweird.f32 %v5360_v4 }
 0x270   : > { %2681 = vmatpush.bf16.msra.mxu3 %v2582_v63  ;;  %v2128_v60 = vsel %vm2125_vm1, %v2127_v30, %v2123_v38  ;;  %v2034_v31 = vand.u32 2147483647, %v5360_v4  ;;  %v2063_v10 = vsel %vm5952_vm10, %v5823_v53, %v2059_v28  ;;  %vm2095_vm14 = vcmp.eq.f32.partialorder %v2094_v19, 8.507059e+37  ;;  %vm2032_vm3 = vmor %vm2030_vm8, %vm2031_vm11 }
 0x271   : > { %v6559_v34 = vpack.c.bf16 %v6503_v36, %v6502_v21  ;;  %v2067_v24 = vor.u32 1.1754944e-38, %v2066_v39  ;;  %v2098_v49 = vsel %vm2095_vm14, %v2097_v54, %v2093_v11  ;;  %v2033_v61 = vsel %vm2032_vm3, %v5422_v5, %v2029_v26 }
 0x272   : > { %vm2065_vm13 = vcmp.eq.f32.partialorder %v2064_v35, 8.507059e+37  ;;  %v2529_v1 = vmul.f32 %v2128_v60, %v5385_v51  ;;  %v2037_v4 = vor.u32 1.1754944e-38, %v2036_v7  ;;  %vm2035_vm5 = vcmp.eq.f32.partialorder %v2034_v31, 8.507059e+37 }
 0x273   : > { %2655 = vmatmul.bf16.gmra.mxu3 %v2619_v55  ;;  %v2068_v23 = vsel %vm2065_vm13, %v2067_v24, %v2063_v10  ;;  %v2527_v53 = vmul.f32 %v2098_v49, %v5316_v46  ;;  %v6560_v21 = vpack.c.bf16 %v6506_v16, %v6505_v57  ;;  %v6562_v42 = vunpack.c.l.bf16 %v6561_v18 }
 0x274   : > { %2682 = vmatpush.bf16.msra.mxu3 %v6559_v34  ;;  %v2038_v36 = vsel %vm2035_vm5, %v2037_v4, %v2033_v61  ;;  %v2525_v0 = vmul.f32 %v2068_v23, %v5348_v15  ;;  %v6564_v50 = vunpack.c.l.bf16 %v6563_v8  ;;  %v6566_v20 = vunpack.c.l.bf16 %v6565_v47 }
 0x275   : > { %v2576_v13 = vpack.c.bf16 %v2529_v1, %v2527_v53  ;;  %v2523_v44 = vmul.f32 %v2038_v36, %v5213_v29  ;;  %v2600_v29 = vpop.permute.xlu2 %2599  ;;  %v6567_v26 = vunpack.c.h.bf16 %v6561_v18  ;;  %v6568_v7 = vunpack.c.h.bf16 %v6563_v8 }
 0x276   : > { %v6569_v24 = vunpack.c.h.bf16 %v6565_v47  ;;  %vm2727_vm12 = vcmask 1040384  }
 0x277   : > { %v2574_v5 = vpack.c.bf16 %v2525_v0, %v2523_v44 }
 0x278   : > { %2683 = vmatpush.bf16.msra.mxu3 %v6560_v21 }
 0x279   : > { %2673 = vmatmul.bf16.gmra.mxu2 %v5764_v25 }
 0x27c   : > { %2684 = vmatpush.bf16.msra.mxu3 %v2576_v13 }
 0x280   : > { %2685 = vmatpush.bf16.msra.mxu3 %v2574_v5 }
 0x283   : > { %2686 = vmatmul.bf16.vlgmr.msra.gmra.mxu3 %v5863_v12 }
 0x293   : > { %2691 = vmatmul.bf16.gmra.mxu3 %v2619_v55 }
 0x2cc   : > { %v2633_v51 = vpop.f32.mrf.mxu2 }
 0x2cd   : > { %v2634_v25 = vadd.f32 %v2633_v51, %v2595_v3 }
 0x2d4   : > { %v2635_v46 = vpop.f32.mrf.mxu2 }
 0x2d5   : > { %v2636_v45 = vadd.f32 %v2635_v46, %v2600_v29 }
 0x2dc   : > { %v2638_v2 = vpop.f32.mrf.mxu2 }
 0x2dd   : > { %v2639_v58 = vadd.f32 %v2638_v2, %v2605_v17  ;;  %v2730_v2 = vlaneseq }
 0x2df   : > { %vm2732_vm2 = vcmp.lt.s32.totalorder %v2730_v2, 256 }
 0x2e4   : > { %v2640_v57 = vpop.f32.mrf.mxu2 }
 0x2e6   : > { %v2651_v27 = vpop.f32.mrf.mxu3 }
 0x2e7   : > { %v2652_v32 = vadd.f32 %v2651_v27, %v2634_v25 }
 0x2e9   : > { %v2696_v56 = vsub.f32 %v2652_v32, %v6564_v50 }
 0x2eb   : > { %v2702_v28 = vmul.f32 %v2696_v56, %v2696_v56 }
 0x2ec   : > { %v2669_v59 = vpop.f32.mrf.mxu2 }
 0x2ed   : > { %v2670_v19 = vadd.f32 %v2669_v59, %v2595_v3 }
 0x2ee   : > { %v2653_v16 = vpop.f32.mrf.mxu3 }
 0x2ef   : > { %v2654_v62 = vadd.f32 %v2653_v16, %v2636_v45 }
 0x2f1   : > { %v2698_v48 = vsub.f32 %v2654_v62, %v6562_v42 }
 0x2f3   : > { %v2704_v37 = vmul.f32 %v2698_v48, %v2698_v48 }
 0x2f4   : > { %v2671_v15 = vpop.f32.mrf.mxu2 }
 0x2f5   : > { %v2672_v6 = vadd.f32 %v2671_v15, %v2600_v29  ;;  %v2708_v39 = vadd.f32 %v2704_v37, %v2702_v28 }
 0x2f6   : > { %v2656_v41 = vpop.f32.mrf.mxu3 }
 0x2f7   : > { %v2657_v9 = vadd.f32 %v2656_v41, %v2639_v58 }
 0x2f9   : > { %v2700_v63 = vsub.f32 %v2657_v9, %v6566_v20 }
 0x2fb   : > { %v2706_v38 = vmul.f32 %v2700_v63, %v2700_v63 }
 0x2fc   : > { %v2674_v22 = vpop.f32.mrf.mxu2 }
 0x2fd   : > { %v2709_v30 = vadd.f32 %v2708_v39, %v2706_v38  ;;  %v2675_v55 = vadd.f32 %v2674_v22, %v2605_v17 }
 0x2fe   : > { %v2658_v43 = vpop.f32.mrf.mxu3 }
 0x2ff   : > { %v2710_v60 = vrot.slane %v2709_v30, 4 }
 0x301   : > { %v2711_v61 = vadd.f32 %v2710_v60, %v2709_v30 }
 0x303   : > { %v2712_v21 = vrot.slane %v2711_v61, 2 }
 0x304   : > { %v2676_v14 = vpop.f32.mrf.mxu2 }
 0x305   : > { %v2713_v13 = vadd.f32 %v2712_v21, %v2711_v61 }
 0x306   : > { %v2687_v12 = vpop.f32.mrf.mxu3 }
 0x307   : > { %v2688_v52 = vadd.f32 %v2687_v12, %v2670_v19  ;;  %v2714_v51 = vrot.slane %v2713_v13, 1 }
 0x309   : > { %v2697_v33 = vsub.f32 %v2688_v52, %v6568_v7  ;;  %v2715_v57 = vadd.f32 %v2714_v51, %v2713_v13 }
 0x30b   : > { %v2703_v34 = vmul.f32 %v2697_v33, %v2697_v33 }
 0x30e   : > { %v2689_v40 = vpop.f32.mrf.mxu3 }
 0x30f   : > { %v2690_v35 = vadd.f32 %v2689_v40, %v2672_v6 }
 0x311   : > { %v2699_v11 = vsub.f32 %v2690_v35, %v6567_v26 }
 0x313   : > { %v2705_v31 = vmul.f32 %v2699_v11, %v2699_v11 }
 0x315   : > { %v2716_v1 = vadd.f32 %v2705_v31, %v2703_v34 }
 0x316   : > { %v2692_v54 = vpop.f32.mrf.mxu3 }
 0x317   : > { %v2693_v10 = vadd.f32 %v2692_v54, %v2675_v55 }
 0x319   : > { %v2701_v49 = vsub.f32 %v2693_v10, %v6569_v24 }
 0x31b   : > { %v2707_v4 = vmul.f32 %v2701_v49, %v2701_v49 }
 0x31d   : > { %v2717_v23 = vadd.f32 %v2716_v1, %v2707_v4 }
 0x31e   : > { %v2694_v53 = vpop.f32.mrf.mxu3 }
 0x31f   : > { %v2718_v36 = vrot.slane %v2717_v23, 4 }
 0x321   : > { %v2719_v0 = vadd.f32 %v2718_v36, %v2717_v23 }
 0x323   : > { %v2720_v44 = vrot.slane %v2719_v0, 2 }
 0x325   : > { %v2721_v5 = vadd.f32 %v2720_v44, %v2719_v0 }
 0x327   : > { %v2722_v46 = vrot.slane %v2721_v5, 1 }
 0x329   : > { %v2723_v27 = vadd.f32 %v2722_v46, %v2721_v5 }
 0x32b   : > { %v2726_v16 = vrot.slane %v2723_v27, 7 }
 0x32d   : > { %v2728_v59 = vsel %vm2727_vm12, %v2715_v57, %v2726_v16 }
 0x32e   : > { %2734 = vst.msk [vmem:[%s376_s20] sm:$0x3] %vm2732_vm2, %v2728_v59 }
 0x32f   : > { %3398 = shalt.err (!%p3395_p5)
}
 0x330   : > { %3056 = dma.vmem_to_hbm [thread:$0]  (%p3542_p4), %s2751_s25, 32, %s2753_s23, %s2736_s12  }
 0x331 PF: > { %p3062_p6 = scmp.ge.s32.totalorder %s3449_s14, 2  ;;  %s2764_s27 = sand.u32 1, %s3429_s30  }
 0x332   : > { %s2765_s20 = scalar_lea.sflag [#allocation3], %s2764_s27 }
 0x333   : > { %p3059_p7 = pnand %p3062_p6, %p3549_p8 }
 0x335   : > { %p3060_p9 = pneg %p3059_p7 }
 0x337   : > { %3424 = dma.done.wait (%p3060_p9), %s2765_s20, 32  }
 0x338   : > { %3426 = vsyncadd (%p3060_p9), %s2765_s20, 4294967264  ;;  %s22_s14 = sadd.s32 1, %s3449_s14   ;;  %s6570_s30 = smov %s3433_s10 }
 0x339   : > { %p19_p10 = scmp.ge.s32.totalorder %s22_s14, 4   ;;  %s6571_s10 = smov %s3437_s11 }
 0x33a   : > { %s6572_s11 = smov %s3555_s22  ;;  %s6573_s12 = smov %s3445_s13 }
 0x33b   : > { %s6574_s13 = smov %s6576_s17  ;;  %21 = sbr.rel (!%p19_p10) target bundleno = 4 (0x4), region = 97 }
 0x340   :  { %2771 = vsyncpa [#allocation3], 1 }
 0x341   :  { %2773 = vsyncpa [#allocation3 + $0x1], 1 }

</bundles_post_ra>
